<compile_context>
chip_gen: v5e
topology: v5e:2x2
jax: 0.10.0
libtpu: 0.0.40
codegen_flags: <defaults>
</compile_context>

<pallas_src>
import functools
import math

import jax
import jax.numpy as jnp
from jax.experimental import pallas as pl
from jax.experimental.pallas import tpu as pltpu


# ----------------------------------------------------------------------------
# small helpers
# ----------------------------------------------------------------------------
_FFN_RESIDENT_BYTES = 24 * 1024 * 1024   # wi + wo2 (bf16) budget for resident FFN
_FFN_TI = 1024                           # intermediate-dim tile when streaming
_SERIES_TK = 2048                        # contraction tile for the series head


def _ceil_to(x, m):
    return ((x + m - 1) // m) * m


@functools.lru_cache(maxsize=1)
def _vmem_limit():
    # 128 MiB physical VMEM on v4/v5/v6 -> 96 MiB scoped; 64 MiB on v7x -> 48 MiB.
    try:
        kind = jax.devices()[0].device_kind.lower()
    except Exception:
        return 48 * 1024 * 1024
    if any(v in kind for v in ("v4", "v5", "v6")):
        return 96 * 1024 * 1024
    return 48 * 1024 * 1024


def _cparams(dims):
    return pltpu.CompilerParams(dimension_semantics=dims,
                                vmem_limit_bytes=_vmem_limit())


def _gelu(x):
    # TODO(synk): HF BERT "gelu" is erf-exact; tanh approximation used here
    # (EUP-friendly), max abs diff ~1e-3.
    c = math.sqrt(2.0 / math.pi)
    return 0.5 * x * (1.0 + jnp.tanh(c * (x + 0.044715 * x * x * x)))


def _choose_tb(bd, p):
    """BD-rows per grid step: target ~256 matmul rows, keep >= 2 grid steps."""
    tb = max(1, min(32, -(-256 // p)))
    tb = min(tb, bd)
    tb = min(tb, max(1, -(-bd // 2)))     # leave work for both TCs on v7x
    return tb


def _ffn_fits_resident(h, i):
    return 2 * h * i * 2 <= _FFN_RESIDENT_BYTES


def _series_kdim(k):
    if k <= _SERIES_TK:
        return k, k
    return _SERIES_TK, _ceil_to(k, _SERIES_TK)


# ----------------------------------------------------------------------------
# Kernel 1: DataEmbedding (value linear + positional embedding), row-batched
# ----------------------------------------------------------------------------
def _embed_kernel(x_ref, w_ref, b_ref, pos_ref, o_ref):
    tb, p, pln = x_ref.shape
    hdim = w_ref.shape[1]
    x2 = x_ref[...].reshape(tb * p, pln)                       # bf16
    y = jnp.dot(x2, w_ref[...], preferred_element_type=jnp.float32) + b_ref[...]
    y = y.reshape(tb, p, hdim) + pos_ref[...][None]
    o_ref[...] = y.astype(o_ref.dtype)


def embed_tokens(patches, w, b, pos, tb):
    """patches: [BDp, P, patch_len] bf16 -> [BDp, P, H] bf16."""
    BDp, P, PL = patches.shape
    H = w.shape[1]
    return pl.pallas_call(
        _embed_kernel,
        grid=(BDp // tb,),
        in_specs=[
            pl.BlockSpec((tb, P, PL), lambda i: (i, 0, 0)),
            pl.BlockSpec((PL, H), lambda i: (0, 0)),
            pl.BlockSpec((1, H), lambda i: (0, 0)),
            pl.BlockSpec((P, H), lambda i: (0, 0)),
        ],
        out_specs=pl.BlockSpec((tb, P, H), lambda i: (i, 0, 0)),
        out_shape=jax.ShapeDtypeStruct((BDp, P, H), jnp.bfloat16),
        compiler_params=_cparams(("parallel",)),
    )(patches, w, b.reshape(1, H), pos)


# ----------------------------------------------------------------------------
# Kernel 2: fused attention block (row-batched)
#   one QKV matmul + batched per-head softmax attention + single concat-heads
#   output projection + residual + LayerNorm1; the head-MEAN attention probs
#   are accumulated across layers in-kernel (lane-padded output).
# ----------------------------------------------------------------------------
def _attn_block_kernel(h_ref, wqkv_ref, bqkv_ref, wo_ref, bo_ref, g1_ref, b1_ref,
                       pacc_ref, h1_ref, pout_ref, *, num_heads, d_head, eps):
    tb, p, hdim = h_ref.shape                                  # hdim = nh * d_head
    x3 = h_ref[...]                                            # (tb, p, H) bf16
    x2 = x3.reshape(tb * p, hdim)

    qkv2 = jnp.dot(x2, wqkv_ref[...],
                   preferred_element_type=jnp.float32) + bqkv_ref[...]
    qkv = qkv2.reshape(tb, p, 3 * hdim)                        # (tb, p, 3H) f32

    scale = 1.0 / math.sqrt(d_head)
    ctx_parts = []
    probs_sum = None
    for hd in range(num_heads):                                # static unroll
        lo = hd * d_head
        q = qkv[:, :, lo:lo + d_head].astype(jnp.bfloat16)
        k = qkv[:, :, hdim + lo:hdim + lo + d_head].astype(jnp.bfloat16)
        v = qkv[:, :, 2 * hdim + lo:2 * hdim + lo + d_head].astype(jnp.bfloat16)
        # 'bqd,bkd->bqk'
        s = jax.lax.dot_general(q, k, (((2,), (2,)), ((0,), (0,))),
                                preferred_element_type=jnp.float32) * scale
        m = jnp.max(s, axis=-1, keepdims=True)
        e = jnp.exp(s - m)
        denom = jnp.sum(e, axis=-1, keepdims=True)
        pr = e * pl.reciprocal(denom, approx=True)             # (tb, p, p) f32
        probs_sum = pr if probs_sum is None else probs_sum + pr
        # 'bqk,bkd->bqd'
        ctx = jax.lax.dot_general(pr.astype(jnp.bfloat16), v,
                                  (((2,), (1,)), ((0,), (0,))),
                                  preferred_element_type=jnp.float32)
        ctx_parts.append(ctx)

    ctx_all = jnp.concatenate(ctx_parts, axis=-1)              # (tb, p, H) f32
    ctx2 = ctx_all.reshape(tb * p, hdim).astype(jnp.bfloat16)
    attn_out = jnp.dot(ctx2, wo_ref[...], preferred_element_type=jnp.float32)

    y = attn_out + bo_ref[...] + x2.astype(jnp.float32)        # residual
    mu = jnp.mean(y, axis=-1, keepdims=True)
    var = jnp.mean((y - mu) ** 2, axis=-1, keepdims=True)
    y = (y - mu) * jax.lax.rsqrt(var + eps) * g1_ref[...] + b1_ref[...]
    h1_ref[...] = y.reshape(tb, p, hdim).astype(h1_ref.dtype)

    # head-mean probs, lane-padded, accumulated across layers in-kernel
    pm = probs_sum * (1.0 / num_heads)                         # (tb, p, p)
    p_pad = pout_ref.shape[2]
    if p_pad > p:
        pm = jnp.concatenate(
            [pm, jnp.zeros((tb, p, p_pad - p), jnp.float32)], axis=-1)
    pout_ref[...] = pacc_ref[...] + pm


def attn_block(h, pacc, wqkv, bqkv, wo, bo, g1, b1, num_heads, eps, tb):
    BDp, P, H = h.shape
    Ppad = pacc.shape[2]
    d_head = H // num_heads
    M = BDp * P
    cost = pl.CostEstimate(
        flops=2 * M * H * 3 * H + 4 * BDp * num_heads * P * P * d_head
              + 2 * M * H * H,
        transcendentals=BDp * num_heads * P * P,
        bytes_accessed=2 * M * H * 2 + 4 * H * H * 2 + 2 * BDp * P * Ppad * 4)
    kern = functools.partial(_attn_block_kernel, num_heads=num_heads,
                             d_head=d_head, eps=eps)
    return pl.pallas_call(
        kern,
        grid=(BDp // tb,),
        in_specs=[
            pl.BlockSpec((tb, P, H), lambda i: (i, 0, 0)),
            pl.BlockSpec((H, 3 * H), lambda i: (0, 0)),
            pl.BlockSpec((1, 3 * H), lambda i: (0, 0)),
            pl.BlockSpec((H, H), lambda i: (0, 0)),
            pl.BlockSpec((1, H), lambda i: (0, 0)),
            pl.BlockSpec((1, H), lambda i: (0, 0)),
            pl.BlockSpec((1, H), lambda i: (0, 0)),
            pl.BlockSpec((tb, P, Ppad), lambda i: (i, 0, 0)),
        ],
        out_specs=(
            pl.BlockSpec((tb, P, H), lambda i: (i, 0, 0)),
            pl.BlockSpec((tb, P, Ppad), lambda i: (i, 0, 0)),
        ),
        out_shape=(
            jax.ShapeDtypeStruct((BDp, P, H), jnp.bfloat16),
            jax.ShapeDtypeStruct((BDp, P, Ppad), jnp.float32),
        ),
        compiler_params=_cparams(("parallel",)),
        cost_estimate=cost,
    )(h, wqkv, bqkv.reshape(1, 3 * H), wo, bo.reshape(1, H),
      g1.reshape(1, H), b1.reshape(1, H), pacc)


# ----------------------------------------------------------------------------
# Kernel 3: fused FFN block
#   GELU(x @ wi + bi) @ wo2 + bo2 + residual -> LayerNorm2
#   resident-weight kernel when wi/wo2 fit VMEM; I-tiled fallback otherwise.
# ----------------------------------------------------------------------------
def _ffn_res_kernel(h_ref, wi_ref, bi_ref, wo2_ref, bo2_ref, g2_ref, b2_ref,
                    o_ref, *, eps):
    x_bf = h_ref[...]                                          # (tm, H) bf16
    t = jnp.dot(x_bf, wi_ref[...], preferred_element_type=jnp.float32)
    t = _gelu(t + bi_ref[...])
    y = jnp.dot(t.astype(jnp.bfloat16), wo2_ref[...],
                preferred_element_type=jnp.float32)
    y = y + bo2_ref[...] + x_bf.astype(jnp.float32)
    mu = jnp.mean(y, axis=-1, keepdims=True)
    var = jnp.mean((y - mu) ** 2, axis=-1, keepdims=True)
    y = (y - mu) * jax.lax.rsqrt(var + eps) * g2_ref[...] + b2_ref[...]
    o_ref[...] = y.astype(o_ref.dtype)


def _ffn_tiled_kernel(h_ref, wi_ref, bi_ref, wo2_ref, bo2_ref, g2_ref, b2_ref,
                      o_ref, acc_ref, *, eps):
    j = pl.program_id(1)

    @pl.when(j == 0)
    def _():
        acc_ref[...] = jnp.zeros_like(acc_ref)

    x_bf = h_ref[...]                                          # (tm, H) bf16
    t = jnp.dot(x_bf, wi_ref[...], preferred_element_type=jnp.float32)
    t = _gelu(t + bi_ref[...])
    acc_ref[...] += jnp.dot(t.astype(jnp.bfloat16), wo2_ref[...],
                            preferred_element_type=jnp.float32)

    @pl.when(j == pl.num_programs(1) - 1)
    def _():
        y = acc_ref[...] + bo2_ref[...] + x_bf.astype(jnp.float32)
        mu = jnp.mean(y, axis=-1, keepdims=True)
        var = jnp.mean((y - mu) ** 2, axis=-1, keepdims=True)
        y = (y - mu) * jax.lax.rsqrt(var + eps) * g2_ref[...] + b2_ref[...]
        o_ref[...] = y.astype(o_ref.dtype)


def ffn_block(h2d, wi, bi, wo2, bo2, g2, b2, eps):
    M, H = h2d.shape
    Ip = wi.shape[1]                                           # padded at init if tiled
    tm = min(512, _ceil_to(M, 8))
    Mp = _ceil_to(M, tm)
    if Mp != M:
        h2d = jnp.pad(h2d, ((0, Mp - M), (0, 0)))
    cost = pl.CostEstimate(flops=4 * Mp * H * Ip, transcendentals=Mp * Ip,
                           bytes_accessed=4 * Mp * H + 4 * H * Ip)

    if _ffn_fits_resident(H, Ip):
        out = pl.pallas_call(
            functools.partial(_ffn_res_kernel, eps=eps),
            grid=(Mp // tm,),
            in_specs=[
                pl.BlockSpec((tm, H), lambda i: (i, 0)),
                pl.BlockSpec((H, Ip), lambda i: (0, 0)),
                pl.BlockSpec((1, Ip), lambda i: (0, 0)),
                pl.BlockSpec((Ip, H), lambda i: (0, 0)),
                pl.BlockSpec((1, H), lambda i: (0, 0)),
                pl.BlockSpec((1, H), lambda i: (0, 0)),
                pl.BlockSpec((1, H), lambda i: (0, 0)),
            ],
            out_specs=pl.BlockSpec((tm, H), lambda i: (i, 0)),
            out_shape=jax.ShapeDtypeStruct((Mp, H), jnp.bfloat16),
            compiler_params=_cparams(("parallel",)),
            cost_estimate=cost,
        )(h2d, wi, bi.reshape(1, Ip), wo2, bo2.reshape(1, H),
          g2.reshape(1, H), b2.reshape(1, H))
    else:
        ti = _FFN_TI
        out = pl.pallas_call(
            functools.partial(_ffn_tiled_kernel, eps=eps),
            grid=(Mp // tm, Ip // ti),
            in_specs=[
                pl.BlockSpec((tm, H), lambda i, j: (i, 0)),
                pl.BlockSpec((H, ti), lambda i, j: (0, j)),
                pl.BlockSpec((1, ti), lambda i, j: (0, j)),
                pl.BlockSpec((ti, H), lambda i, j: (j, 0)),
                pl.BlockSpec((1, H), lambda i, j: (0, 0)),
                pl.BlockSpec((1, H), lambda i, j: (0, 0)),
                pl.BlockSpec((1, H), lambda i, j: (0, 0)),
            ],
            out_specs=pl.BlockSpec((tm, H), lambda i, j: (i, 0)),
            out_shape=jax.ShapeDtypeStruct((Mp, H), jnp.bfloat16),
            scratch_shapes=[pltpu.VMEM((tm, H), jnp.float32)],
            compiler_params=_cparams(("parallel", "arbitrary")),
            cost_estimate=cost,
        )(h2d, wi, bi.reshape(1, Ip), wo2, bo2.reshape(1, H),
          g2.reshape(1, H), b2.reshape(1, H))
    return out[:M]


# ----------------------------------------------------------------------------
# Kernel 4: SPC heads (block-diagonal per-channel linears + fused sigmoid)
#   weight/bias lane-padded once at init; output sliced in wrapper.
# ----------------------------------------------------------------------------
def _spc_kernel(x_ref, w_ref, b_ref, o_ref):
    y = jnp.dot(x_ref[...], w_ref[...], preferred_element_type=jnp.float32)
    o_ref[...] = jax.nn.sigmoid(y + b_ref[...])


def spc_head(cls_flat, wblk, bias_p, n_out):
    B, K = cls_flat.shape
    Np = wblk.shape[1]
    tm = min(256, _ceil_to(B, 8))
    Bp = _ceil_to(B, tm)
    x = jnp.pad(cls_flat, ((0, Bp - B), (0, 0))) if Bp != B else cls_flat
    out = pl.pallas_call(
        _spc_kernel,
        grid=(Bp // tm,),
        in_specs=[pl.BlockSpec((tm, K), lambda i: (i, 0)),
                  pl.BlockSpec((K, Np), lambda i: (0, 0)),
                  pl.BlockSpec((1, Np), lambda i: (0, 0))],
        out_specs=pl.BlockSpec((tm, Np), lambda i: (i, 0)),
        out_shape=jax.ShapeDtypeStruct((Bp, Np), jnp.float32),
        compiler_params=_cparams(("parallel",)),
    )(x, wblk, bias_p.reshape(1, Np))
    return out[:B, :n_out]


# ----------------------------------------------------------------------------
# Kernel 5: UnPatchify1D series head (flatten + shared linear) + fused RevIN
#   denormalize (y * std + mean); contraction dim tiled as an "arbitrary"
#   reduction axis (f32 accumulator) so the weight never has to be resident.
# ----------------------------------------------------------------------------
def _series_kernel(x_ref, w_ref, b_ref, std_ref, mean_ref, o_ref, acc_ref):
    j = pl.program_id(1)

    @pl.when(j == 0)
    def _():
        acc_ref[...] = jnp.zeros_like(acc_ref)

    acc_ref[...] += jnp.dot(x_ref[...], w_ref[...],
                            preferred_element_type=jnp.float32)

    @pl.when(j == pl.num_programs(1) - 1)
    def _():
        y = acc_ref[...] + b_ref[...]
        o_ref[...] = y * std_ref[...] + mean_ref[...]


def series_head(tok, w_p, b_p, std_r, mean_r, win):
    M, K = tok.shape
    tk, Kp = _series_kdim(K)
    Wp = w_p.shape[1]
    tm = min(512, _ceil_to(M, 8))
    Mp = _ceil_to(M, tm)
    if Mp != M:
        tok = jnp.pad(tok, ((0, Mp - M), (0, 0)))
        std_r = jnp.pad(std_r, ((0, Mp - M), (0, 0)))
        mean_r = jnp.pad(mean_r, ((0, Mp - M), (0, 0)))
    if Kp != K:
        tok = jnp.pad(tok, ((0, 0), (0, Kp - K)))
    out = pl.pallas_call(
        _series_kernel,
        grid=(Mp // tm, Kp // tk),
        in_specs=[pl.BlockSpec((tm, tk), lambda i, j: (i, j)),
                  pl.BlockSpec((tk, Wp), lambda i, j: (j, 0)),
                  pl.BlockSpec((1, Wp), lambda i, j: (0, 0)),
                  pl.BlockSpec((tm, 1), lambda i, j: (i, 0)),
                  pl.BlockSpec((tm, 1), lambda i, j: (i, 0))],
        out_specs=pl.BlockSpec((tm, Wp), lambda i, j: (i, 0)),
        out_shape=jax.ShapeDtypeStruct((Mp, Wp), jnp.float32),
        scratch_shapes=[pltpu.VMEM((tm, Wp), jnp.float32)],
        compiler_params=_cparams(("parallel", "arbitrary")),
    )(tok, w_p, b_p.reshape(1, Wp), std_r, mean_r)
    return out[:M, :win]


# ----------------------------------------------------------------------------
# JAX-glue: patchify + full forward
# ----------------------------------------------------------------------------
def patchify(x_nlc, patch_len, stride):
    """x: [B, W, D] -> [B, D, patch_num, patch_len] (unfold over time)."""
    # TODO(synk): original Patchify1D may replication-pad the series end
    # (PatchTST style, +1 patch); plain unfold used here.
    B, W, D = x_nlc.shape
    patch_num = (W - patch_len) // stride + 1
    xt = jnp.transpose(x_nlc, (0, 2, 1))                       # [B, D, W]
    if stride == patch_len and patch_num * patch_len == W:
        return xt.reshape(B, D, patch_num, patch_len)          # layout-only
    idx = jnp.arange(patch_num)[:, None] * stride + jnp.arange(patch_len)[None, :]
    return xt[:, :, idx]


def spcpatchbert_forward(params, x, cfg):
    """Mirrors SPCPatchBert.forward (mode=0, non-ensemble, output_attention).

    Returns (attn [B,D,P,P], norm_out [B,W,D], spc_out [B,spc_rule_num],
             series_out [B,W,D])."""
    B, W, Din = x.shape
    H = cfg["hidden_size"]
    nh = cfg["num_heads"]
    eps_ln = cfg["layer_norm_eps"]
    L = cfg["num_layers"]

    # ---- RevIN normalize (affine=False, eval-mode dropout=identity) ----
    # TODO(synk): affine RevIN / ensemble encoders / mode=1 not implemented.
    mean = jnp.mean(x, axis=1, keepdims=True)                  # [B, 1, D]
    std = jnp.sqrt(jnp.var(x, axis=1, keepdims=True) + cfg["eps"])
    norm_out = (x - mean) / std                                # [B, W, D]

    # ---- Patchify + zero [SPC] patch (F.pad(out, (0,0,1,0))) ----
    patches = patchify(norm_out, cfg["patch_len"], cfg["stride"])
    patches = jnp.pad(patches, ((0, 0), (0, 0), (1, 0), (0, 0)))
    _, _, P, PL = patches.shape
    BD = B * Din
    tb = _choose_tb(BD, P)
    BDp = _ceil_to(BD, tb)
    patches = patches.reshape(BD, P, PL)
    if BDp != BD:
        patches = jnp.pad(patches, ((0, BDp - BD), (0, 0), (0, 0)))
    patches = patches.astype(jnp.bfloat16)

    # ---- DataEmbedding (value linear + positional), fused Pallas kernel ----
    h = embed_tokens(patches, params["emb_w"], params["emb_b"],
                     params["pos_emb"], tb)                    # [BDp, P, H] bf16

    # ---- BertEncoder: 2 fused kernels / layer; probs accumulated in-kernel --
    Ppad = _ceil_to(P, 128)
    pacc = jnp.zeros((BDp, P, Ppad), jnp.float32)
    for lp in params["layers"]:
        h, pacc = attn_block(h, pacc, lp["wqkv"], lp["bqkv"], lp["wo"], lp["bo"],
                             lp["ln1_g"], lp["ln1_b"], nh, eps_ln, tb)
        h2d = ffn_block(h.reshape(BDp * P, H), lp["wi"], lp["bi"],
                        lp["wo2"], lp["bo2"], lp["ln2_g"], lp["ln2_b"], eps_ln)
        h = h2d.reshape(BDp, P, H)

    # mean over layers (heads already averaged inside the attention kernel)
    attn = (pacc[:BD, :, :P] / L).reshape(B, Din, P, P)
    enc = h[:BD].reshape(B, Din, P, H)                         # [B, D, P, H]

    # ---- SPC heads: per-channel [CLS] reps -> block-diag matmul + sigmoid ----
    cls_flat = enc[:, :, 0, :].reshape(B, Din * H)
    spc_out = spc_head(cls_flat, params["spc_wblk"], params["spc_b"],
                       cfg["spc_rule_num"])                    # [B, spc_rule_num]

    # ---- UnPatchify1D series head (shared linear) with fused denormalize ----
    tok = enc[:, :, 1:, :].reshape(BD, (P - 1) * H)
    std_r = std[:, 0, :].reshape(BD, 1).astype(jnp.float32)
    mean_r = mean[:, 0, :].reshape(BD, 1).astype(jnp.float32)
    series_bd = series_head(tok, params["out_w"], params["out_b"],
                            std_r, mean_r, cfg["window_size"])  # [BD, W]
    series_out = jnp.transpose(series_bd.reshape(B, Din, cfg["window_size"]),
                               (0, 2, 1))                       # [B, W, D]

    return attn, norm_out, spc_out, series_out


# ----------------------------------------------------------------------------
# parameter init (all tile padding done ONCE here, not per forward)
# ----------------------------------------------------------------------------
def init_params(key, cfg):
    H = cfg["hidden_size"]
    I = cfg["intermediate_size"]
    PL = cfg["patch_len"]
    D = cfg["input_dim"]
    W = cfg["window_size"]
    patch_num = (W - PL) // cfg["stride"] + 1
    P = patch_num + 1
    keys = iter(jax.random.split(key, 4096))

    def w(shape, dtype=jnp.bfloat16, scale=0.02):
        return (scale * jax.random.normal(next(keys), shape)).astype(dtype)

    def zeros(shape, dtype=jnp.float32):
        return jnp.zeros(shape, dtype)

    assert sum(cfg["spc_head_lst"]) == cfg["spc_rule_num"]
    assert len(cfg["spc_head_lst"]) == D

    rules = cfg["spc_rule_num"]
    Np = _ceil_to(rules, 128)
    Wp = _ceil_to(W, 128)
    K_series = patch_num * H
    _, Kp = _series_kdim(K_series)

    params = {
        "emb_w": w((PL, H)), "emb_b": zeros((H,)),
        "pos_emb": w((P, H), dtype=jnp.float32),
        "layers": [],
    }

    # series head (UnPatchify1D shared linear), padded to tile multiples
    out_w = w((K_series, W))
    params["out_w"] = jnp.pad(out_w, ((0, Kp - K_series), (0, Wp - W)))
    params["out_b"] = jnp.pad(zeros((W,)), ((0, Wp - W),))

    # per-channel SPC heads folded into one block-diagonal weight, lane-padded
    wblk = jnp.zeros((D * H, rules), jnp.float32)
    start = 0
    for i, n in enumerate(cfg["spc_head_lst"]):
        wblk = wblk.at[i * H:(i + 1) * H, start:start + n].set(
            w((H, n), dtype=jnp.float32))
        start += n
    params["spc_wblk"] = jnp.pad(wblk, ((0, 0), (0, Np - rules))).astype(jnp.bfloat16)
    params["spc_b"] = jnp.pad(zeros((rules,)), ((0, Np - rules),))

    ffn_resident = _ffn_fits_resident(H, I)
    Ip = I if ffn_resident else _ceil_to(I, _FFN_TI)
    for _ in range(cfg["num_layers"]):
        wi = w((H, I))
        bi = zeros((I,))
        wo2 = w((I, H))
        if Ip != I:
            wi = jnp.pad(wi, ((0, 0), (0, Ip - I)))
            bi = jnp.pad(bi, ((0, Ip - I),))
            wo2 = jnp.pad(wo2, ((0, Ip - I), (0, 0)))
        params["layers"].append({
            "wqkv": w((H, 3 * H)), "bqkv": zeros((3 * H,)),
            "wo": w((H, H)), "bo": zeros((H,)),
            "ln1_g": jnp.ones((H,), jnp.float32), "ln1_b": zeros((H,)),
            "wi": wi, "bi": bi, "wo2": wo2, "bo2": zeros((H,)),
            "ln2_g": jnp.ones((H,), jnp.float32), "ln2_b": zeros((H,)),
        })
    return params


# ----------------------------------------------------------------------------
# demo
# ----------------------------------------------------------------------------
if __name__ == "__main__":
    cfg = dict(
        input_dim=4,
        window_size=16,
        patch_len=8,
        stride=8,
        hidden_size=32,
        num_heads=4,
        num_layers=2,
        intermediate_size=64,
        spc_head_lst=[1, 1, 1, 1],
        spc_rule_num=4,
        eps=1e-5,
        layer_norm_eps=1e-12,
        norm=True,
        output_attention=True,
    )

    key = jax.random.PRNGKey(0)
    kx, kp = jax.random.split(key)
    x = jax.random.normal(kx, (2, cfg["window_size"], cfg["input_dim"]),
                          jnp.float32)
    params = init_params(kp, cfg)

    fwd = jax.jit(functools.partial(spcpatchbert_forward, cfg=cfg))
    attn, norm_out, spc_out, series_out = fwd(params, x)
    jax.block_until_ready((attn, norm_out, spc_out, series_out))

    patch_num = (cfg["window_size"] - cfg["patch_len"]) // cfg["stride"] + 1
    P = patch_num + 1
    assert attn.shape == (2, cfg["input_dim"], P, P)
    assert norm_out.shape == x.shape
    assert spc_out.shape == (2, cfg["spc_rule_num"])
    assert series_out.shape == (2, cfg["window_size"], cfg["input_dim"])
    assert bool(jnp.all(jnp.isfinite(attn)))
    assert bool(jnp.all(jnp.isfinite(spc_out)))
    assert bool(jnp.all(jnp.isfinite(series_out)))

    print("KERNEL_OK")
</pallas_src>

<mosaic_0001>
module attributes {stable_mosaic.version = 11 : i64} {
  func.func @_embed_kernel(%arg0: i32, %arg1: memref<4x3x8xbf16, #tpu.memory_space<vmem>>, %arg2: memref<8x32xbf16, #tpu.memory_space<vmem>>, %arg3: memref<1x32xf32, #tpu.memory_space<vmem>>, %arg4: memref<3x32xf32, #tpu.memory_space<vmem>>, %arg5: memref<4x3x32xbf16, #tpu.memory_space<vmem>>) attributes {dimension_semantics = [#tpu.dimension_semantics<parallel>], iteration_bounds = array<i64: 2>, scalar_prefetch = 0 : i64, scratch_operands = 0 : i64, tpu.core_type = #tpu.core_type<tc>, window_params = [{transform_indices = @transform_0, window_bounds = array<i64: 4, 3, 8>}, {pipeline_mode = #tpu.pipeline_mode<synchronous>, transform_indices = @transform_1, window_bounds = array<i64: 8, 32>}, {pipeline_mode = #tpu.pipeline_mode<synchronous>, transform_indices = @transform_2, window_bounds = array<i64: 1, 32>}, {pipeline_mode = #tpu.pipeline_mode<synchronous>, transform_indices = @transform_3, window_bounds = array<i64: 3, 32>}, {transform_indices = @transform_4, window_bounds = array<i64: 4, 3, 32>}]} {
    %c0 = arith.constant 0 : index
    %c0_0 = arith.constant 0 : index
    %c0_1 = arith.constant 0 : index
    %0 = vector.load %arg1[%c0, %c0_0, %c0_1] : memref<4x3x8xbf16, #tpu.memory_space<vmem>>, vector<4x3x8xbf16>
    %1 = vector.shape_cast %0 : vector<4x3x8xbf16> to vector<12x8xbf16>
    %c0_2 = arith.constant 0 : index
    %c0_3 = arith.constant 0 : index
    %2 = vector.load %arg2[%c0_2, %c0_3] : memref<8x32xbf16, #tpu.memory_space<vmem>>, vector<8x32xbf16>
    %cst = arith.constant dense<0.000000e+00> : vector<12x32xf32>
    %3 = tpu.matmul %1, %2, %cst {dimension_numbers = #tpu.dot_dimension_numbers<[1], [0], [0], [1], [0, 0, 1, 1], [], []>} : vector<12x8xbf16>, vector<8x32xbf16>, vector<12x32xf32> -> vector<12x32xf32>
    %c0_4 = arith.constant 0 : index
    %c0_5 = arith.constant 0 : index
    %4 = vector.load %arg3[%c0_4, %c0_5] : memref<1x32xf32, #tpu.memory_space<vmem>>, vector<1x32xf32>
    %5 = vector.broadcast %4 : vector<1x32xf32> to vector<12x32xf32>
    %6 = arith.addf %3, %5 : vector<12x32xf32>
    %7 = vector.shape_cast %6 : vector<12x32xf32> to vector<4x3x32xf32>
    %c0_6 = arith.constant 0 : index
    %c0_7 = arith.constant 0 : index
    %8 = vector.load %arg4[%c0_6, %c0_7] : memref<3x32xf32, #tpu.memory_space<vmem>>, vector<3x32xf32>
    %9 = vector.shape_cast %8 : vector<3x32xf32> to vector<1x3x32xf32>
    %10 = vector.broadcast %9 : vector<1x3x32xf32> to vector<4x3x32xf32>
    %11 = arith.addf %7, %10 : vector<4x3x32xf32>
    %12 = arith.truncf %11 : vector<4x3x32xf32> to vector<4x3x32xbf16>
    %c0_8 = arith.constant 0 : index
    %c0_9 = arith.constant 0 : index
    %c0_10 = arith.constant 0 : index
    %13 = vector.load %arg5[%c0_8, %c0_9, %c0_10] : memref<4x3x32xbf16, #tpu.memory_space<vmem>>, vector<4x3x32xbf16>
    tpu.vector_store %arg5[%c0_8, %c0_9, %c0_10], %12 {strides = array<i32>} : memref<4x3x32xbf16, #tpu.memory_space<vmem>>, vector<4x3x32xbf16>,
    return
  }
  func.func @transform_0(%arg0: i32) -> (i32, i32, i32) {
    %c0_i32 = arith.constant 0 : i32
    %c0_i32_0 = arith.constant 0 : i32
    %c0_i32_1 = arith.constant 0 : i32
    return %arg0, %c0_i32, %c0_i32_0 : i32, i32, i32
  }
  func.func @transform_1(%arg0: i32) -> (i32, i32) {
    %c0_i32 = arith.constant 0 : i32
    %c0_i32_0 = arith.constant 0 : i32
    %c0_i32_1 = arith.constant 0 : i32
    return %c0_i32, %c0_i32_0 : i32, i32
  }
  func.func @transform_2(%arg0: i32) -> (i32, i32) {
    %c0_i32 = arith.constant 0 : i32
    %c0_i32_0 = arith.constant 0 : i32
    %c0_i32_1 = arith.constant 0 : i32
    return %c0_i32, %c0_i32_0 : i32, i32
  }
  func.func @transform_3(%arg0: i32) -> (i32, i32) {
    %c0_i32 = arith.constant 0 : i32
    %c0_i32_0 = arith.constant 0 : i32
    %c0_i32_1 = arith.constant 0 : i32
    return %c0_i32, %c0_i32_0 : i32, i32
  }
  func.func @transform_4(%arg0: i32) -> (i32, i32, i32) {
    %c0_i32 = arith.constant 0 : i32
    %c0_i32_0 = arith.constant 0 : i32
    %c0_i32_1 = arith.constant 0 : i32
    return %arg0, %c0_i32, %c0_i32_0 : i32, i32, i32
  }
}

module attributes {stable_mosaic.version = 11 : i64} {
  func.func @_attn_block_kernel(%arg0: i32, %arg1: memref<4x3x32xbf16, #tpu.memory_space<vmem>>, %arg2: memref<32x96xbf16, #tpu.memory_space<vmem>>, %arg3: memref<1x96xf32, #tpu.memory_space<vmem>>, %arg4: memref<32x32xbf16, #tpu.memory_space<vmem>>, %arg5: memref<1x32xf32, #tpu.memory_space<vmem>>, %arg6: memref<1x32xf32, #tpu.memory_space<vmem>>, %arg7: memref<1x32xf32, #tpu.memory_space<vmem>>, %arg8: memref<4x3x128xf32, #tpu.memory_space<vmem>>, %arg9: memref<4x3x32xbf16, #tpu.memory_space<vmem>>, %arg10: memref<4x3x128xf32, #tpu.memory_space<vmem>>) attributes {dimension_semantics = [#tpu.dimension_semantics<parallel>], iteration_bounds = array<i64: 2>, scalar_prefetch = 0 : i64, scratch_operands = 0 : i64, tpu.core_type = #tpu.core_type<tc>, window_params = [{transform_indices = @transform_0, window_bounds = array<i64: 4, 3, 32>}, {pipeline_mode = #tpu.pipeline_mode<synchronous>, transform_indices = @transform_1, window_bounds = array<i64: 32, 96>}, {pipeline_mode = #tpu.pipeline_mode<synchronous>, transform_indices = @transform_2, window_bounds = array<i64: 1, 96>}, {pipeline_mode = #tpu.pipeline_mode<synchronous>, transform_indices = @transform_3, window_bounds = array<i64: 32, 32>}, {pipeline_mode = #tpu.pipeline_mode<synchronous>, transform_indices = @transform_4, window_bounds = array<i64: 1, 32>}, {pipeline_mode = #tpu.pipeline_mode<synchronous>, transform_indices = @transform_5, window_bounds = array<i64: 1, 32>}, {pipeline_mode = #tpu.pipeline_mode<synchronous>, transform_indices = @transform_6, window_bounds = array<i64: 1, 32>}, {transform_indices = @transform_7, window_bounds = array<i64: 4, 3, 128>}, {transform_indices = @transform_8, window_bounds = array<i64: 4, 3, 32>}, {transform_indices = @transform_9, window_bounds = array<i64: 4, 3, 128>}]} {
    %c0 = arith.constant 0 : index
    %c0_0 = arith.constant 0 : index
    %c0_1 = arith.constant 0 : index
    %0 = vector.load %arg1[%c0, %c0_0, %c0_1] : memref<4x3x32xbf16, #tpu.memory_space<vmem>>, vector<4x3x32xbf16>
    %1 = vector.shape_cast %0 : vector<4x3x32xbf16> to vector<12x32xbf16>
    %c0_2 = arith.constant 0 : index
    %c0_3 = arith.constant 0 : index
    %2 = vector.load %arg2[%c0_2, %c0_3] : memref<32x96xbf16, #tpu.memory_space<vmem>>, vector<32x96xbf16>
    %cst = arith.constant dense<0.000000e+00> : vector<12x96xf32>
    %3 = tpu.matmul %1, %2, %cst {dimension_numbers = #tpu.dot_dimension_numbers<[1], [0], [0], [1], [0, 0, 1, 1], [], []>} : vector<12x32xbf16>, vector<32x96xbf16>, vector<12x96xf32> -> vector<12x96xf32>
    %c0_4 = arith.constant 0 : index
    %c0_5 = arith.constant 0 : index
    %4 = vector.load %arg3[%c0_4, %c0_5] : memref<1x96xf32, #tpu.memory_space<vmem>>, vector<1x96xf32>
    %5 = vector.broadcast %4 : vector<1x96xf32> to vector<12x96xf32>
    %6 = arith.addf %3, %5 : vector<12x96xf32>
    %7 = vector.shape_cast %6 : vector<12x96xf32> to vector<4x3x96xf32>
    %8 = vector.extract_strided_slice %7 {offsets = [0, 0, 0], sizes = [4, 3, 8], strides = [1, 1, 1]} : vector<4x3x96xf32> to vector<4x3x8xf32>
    %9 = arith.truncf %8 : vector<4x3x8xf32> to vector<4x3x8xbf16>
    %10 = vector.extract_strided_slice %7 {offsets = [0, 0, 32], sizes = [4, 3, 8], strides = [1, 1, 1]} : vector<4x3x96xf32> to vector<4x3x8xf32>
    %11 = arith.truncf %10 : vector<4x3x8xf32> to vector<4x3x8xbf16>
    %12 = vector.extract_strided_slice %7 {offsets = [0, 0, 64], sizes = [4, 3, 8], strides = [1, 1, 1]} : vector<4x3x96xf32> to vector<4x3x8xf32>
    %13 = arith.truncf %12 : vector<4x3x8xf32> to vector<4x3x8xbf16>
    %cst_6 = arith.constant dense<0.000000e+00> : vector<4x3x3xf32>
    %14 = tpu.matmul %9, %11, %cst_6 {dimension_numbers = #tpu.dot_dimension_numbers<[2], [2], [1], [1], [0, 0, 0, 1, 1, 1], [0], [0]>} : vector<4x3x8xbf16>, vector<4x3x8xbf16>, vector<4x3x3xf32> -> vector<4x3x3xf32>
    %cst_7 = arith.constant 0.353553385 : f32
    %15 = vector.broadcast %cst_7 : f32 to vector<4x3x3xf32>
    %16 = arith.mulf %14, %15 : vector<4x3x3xf32>
    %cst_8 = arith.constant dense<0xFF800000> : vector<4x3xf32>
    %17 = vector.multi_reduction <maximumf>, %16, %cst_8 [2] : vector<4x3x3xf32> to vector<4x3xf32>
    %18 = vector.shape_cast %17 : vector<4x3xf32> to vector<4x3x1xf32>
    %19 = vector.broadcast %18 : vector<4x3x1xf32> to vector<4x3x3xf32>
    %20 = arith.subf %16, %19 : vector<4x3x3xf32>
    %21 = math.exp %20 : vector<4x3x3xf32>
    %cst_9 = arith.constant dense<0.000000e+00> : vector<4x3xf32>
    %22 = vector.multi_reduction <add>, %21, %cst_9 [2] : vector<4x3x3xf32> to vector<4x3xf32>
    %23 = vector.shape_cast %22 : vector<4x3xf32> to vector<4x3x1xf32>
    %24 = tpu.reciprocal %23 {approx = true} : vector<4x3x1xf32> -> vector<4x3x1xf32>
    %25 = vector.broadcast %24 : vector<4x3x1xf32> to vector<4x3x3xf32>
    %26 = arith.mulf %21, %25 : vector<4x3x3xf32>
    %27 = arith.truncf %26 : vector<4x3x3xf32> to vector<4x3x3xbf16>
    %cst_10 = arith.constant dense<0.000000e+00> : vector<4x3x8xf32>
    %28 = tpu.matmul %27, %13, %cst_10 {dimension_numbers = #tpu.dot_dimension_numbers<[2], [1], [1], [2], [0, 0, 0, 1, 1, 2], [0], [0]>} : vector<4x3x3xbf16>, vector<4x3x8xbf16>, vector<4x3x8xf32> -> vector<4x3x8xf32>
    %29 = vector.extract_strided_slice %7 {offsets = [0, 0, 8], sizes = [4, 3, 8], strides = [1, 1, 1]} : vector<4x3x96xf32> to vector<4x3x8xf32>
    %30 = arith.truncf %29 : vector<4x3x8xf32> to vector<4x3x8xbf16>
    %31 = vector.extract_strided_slice %7 {offsets = [0, 0, 40], sizes = [4, 3, 8], strides = [1, 1, 1]} : vector<4x3x96xf32> to vector<4x3x8xf32>
    %32 = arith.truncf %31 : vector<4x3x8xf32> to vector<4x3x8xbf16>
    %33 = vector.extract_strided_slice %7 {offsets = [0, 0, 72], sizes = [4, 3, 8], strides = [1, 1, 1]} : vector<4x3x96xf32> to vector<4x3x8xf32>
    %34 = arith.truncf %33 : vector<4x3x8xf32> to vector<4x3x8xbf16>
    %cst_11 = arith.constant dense<0.000000e+00> : vector<4x3x3xf32>
    %35 = tpu.matmul %30, %32, %cst_11 {dimension_numbers = #tpu.dot_dimension_numbers<[2], [2], [1], [1], [0, 0, 0, 1, 1, 1], [0], [0]>} : vector<4x3x8xbf16>, vector<4x3x8xbf16>, vector<4x3x3xf32> -> vector<4x3x3xf32>
    %cst_12 = arith.constant 0.353553385 : f32
    %36 = vector.broadcast %cst_12 : f32 to vector<4x3x3xf32>
    %37 = arith.mulf %35, %36 : vector<4x3x3xf32>
    %cst_13 = arith.constant dense<0xFF800000> : vector<4x3xf32>
    %38 = vector.multi_reduction <maximumf>, %37, %cst_13 [2] : vector<4x3x3xf32> to vector<4x3xf32>
    %39 = vector.shape_cast %38 : vector<4x3xf32> to vector<4x3x1xf32>
    %40 = vector.broadcast %39 : vector<4x3x1xf32> to vector<4x3x3xf32>
    %41 = arith.subf %37, %40 : vector<4x3x3xf32>
    %42 = math.exp %41 : vector<4x3x3xf32>
    %cst_14 = arith.constant dense<0.000000e+00> : vector<4x3xf32>
    %43 = vector.multi_reduction <add>, %42, %cst_14 [2] : vector<4x3x3xf32> to vector<4x3xf32>
    %44 = vector.shape_cast %43 : vector<4x3xf32> to vector<4x3x1xf32>
    %45 = tpu.reciprocal %44 {approx = true} : vector<4x3x1xf32> -> vector<4x3x1xf32>
    %46 = vector.broadcast %45 : vector<4x3x1xf32> to vector<4x3x3xf32>
    %47 = arith.mulf %42, %46 : vector<4x3x3xf32>
    %48 = arith.addf %26, %47 : vector<4x3x3xf32>
    %49 = arith.truncf %47 : vector<4x3x3xf32> to vector<4x3x3xbf16>
    %cst_15 = arith.constant dense<0.000000e+00> : vector<4x3x8xf32>
    %50 = tpu.matmul %49, %34, %cst_15 {dimension_numbers = #tpu.dot_dimension_numbers<[2], [1], [1], [2], [0, 0, 0, 1, 1, 2], [0], [0]>} : vector<4x3x3xbf16>, vector<4x3x8xbf16>, vector<4x3x8xf32> -> vector<4x3x8xf32>
    %51 = vector.extract_strided_slice %7 {offsets = [0, 0, 16], sizes = [4, 3, 8], strides = [1, 1, 1]} : vector<4x3x96xf32> to vector<4x3x8xf32>
    %52 = arith.truncf %51 : vector<4x3x8xf32> to vector<4x3x8xbf16>
    %53 = vector.extract_strided_slice %7 {offsets = [0, 0, 48], sizes = [4, 3, 8], strides = [1, 1, 1]} : vector<4x3x96xf32> to vector<4x3x8xf32>
    %54 = arith.truncf %53 : vector<4x3x8xf32> to vector<4x3x8xbf16>
    %55 = vector.extract_strided_slice %7 {offsets = [0, 0, 80], sizes = [4, 3, 8], strides = [1, 1, 1]} : vector<4x3x96xf32> to vector<4x3x8xf32>
    %56 = arith.truncf %55 : vector<4x3x8xf32> to vector<4x3x8xbf16>
    %cst_16 = arith.constant dense<0.000000e+00> : vector<4x3x3xf32>
    %57 = tpu.matmul %52, %54, %cst_16 {dimension_numbers = #tpu.dot_dimension_numbers<[2], [2], [1], [1], [0, 0, 0, 1, 1, 1], [0], [0]>} : vector<4x3x8xbf16>, vector<4x3x8xbf16>, vector<4x3x3xf32> -> vector<4x3x3xf32>
    %cst_17 = arith.constant 0.353553385 : f32
    %58 = vector.broadcast %cst_17 : f32 to vector<4x3x3xf32>
    %59 = arith.mulf %57, %58 : vector<4x3x3xf32>
    %cst_18 = arith.constant dense<0xFF800000> : vector<4x3xf32>
    %60 = vector.multi_reduction <maximumf>, %59, %cst_18 [2] : vector<4x3x3xf32> to vector<4x3xf32>
    %61 = vector.shape_cast %60 : vector<4x3xf32> to vector<4x3x1xf32>
    %62 = vector.broadcast %61 : vector<4x3x1xf32> to vector<4x3x3xf32>
    %63 = arith.subf %59, %62 : vector<4x3x3xf32>
    %64 = math.exp %63 : vector<4x3x3xf32>
    %cst_19 = arith.constant dense<0.000000e+00> : vector<4x3xf32>
    %65 = vector.multi_reduction <add>, %64, %cst_19 [2] : vector<4x3x3xf32> to vector<4x3xf32>
    %66 = vector.shape_cast %65 : vector<4x3xf32> to vector<4x3x1xf32>
    %67 = tpu.reciprocal %66 {approx = true} : vector<4x3x1xf32> -> vector<4x3x1xf32>
    %68 = vector.broadcast %67 : vector<4x3x1xf32> to vector<4x3x3xf32>
    %69 = arith.mulf %64, %68 : vector<4x3x3xf32>
    %70 = arith.addf %48, %69 : vector<4x3x3xf32>
    %71 = arith.truncf %69 : vector<4x3x3xf32> to vector<4x3x3xbf16>
    %cst_20 = arith.constant dense<0.000000e+00> : vector<4x3x8xf32>
    %72 = tpu.matmul %71, %56, %cst_20 {dimension_numbers = #tpu.dot_dimension_numbers<[2], [1], [1], [2], [0, 0, 0, 1, 1, 2], [0], [0]>} : vector<4x3x3xbf16>, vector<4x3x8xbf16>, vector<4x3x8xf32> -> vector<4x3x8xf32>
    %73 = vector.extract_strided_slice %7 {offsets = [0, 0, 24], sizes = [4, 3, 8], strides = [1, 1, 1]} : vector<4x3x96xf32> to vector<4x3x8xf32>
    %74 = arith.truncf %73 : vector<4x3x8xf32> to vector<4x3x8xbf16>
    %75 = vector.extract_strided_slice %7 {offsets = [0, 0, 56], sizes = [4, 3, 8], strides = [1, 1, 1]} : vector<4x3x96xf32> to vector<4x3x8xf32>
    %76 = arith.truncf %75 : vector<4x3x8xf32> to vector<4x3x8xbf16>
    %77 = vector.extract_strided_slice %7 {offsets = [0, 0, 88], sizes = [4, 3, 8], strides = [1, 1, 1]} : vector<4x3x96xf32> to vector<4x3x8xf32>
    %78 = arith.truncf %77 : vector<4x3x8xf32> to vector<4x3x8xbf16>
    %cst_21 = arith.constant dense<0.000000e+00> : vector<4x3x3xf32>
    %79 = tpu.matmul %74, %76, %cst_21 {dimension_numbers = #tpu.dot_dimension_numbers<[2], [2], [1], [1], [0, 0, 0, 1, 1, 1], [0], [0]>} : vector<4x3x8xbf16>, vector<4x3x8xbf16>, vector<4x3x3xf32> -> vector<4x3x3xf32>
    %cst_22 = arith.constant 0.353553385 : f32
    %80 = vector.broadcast %cst_22 : f32 to vector<4x3x3xf32>
    %81 = arith.mulf %79, %80 : vector<4x3x3xf32>
    %cst_23 = arith.constant dense<0xFF800000> : vector<4x3xf32>
    %82 = vector.multi_reduction <maximumf>, %81, %cst_23 [2] : vector<4x3x3xf32> to vector<4x3xf32>
    %83 = vector.shape_cast %82 : vector<4x3xf32> to vector<4x3x1xf32>
    %84 = vector.broadcast %83 : vector<4x3x1xf32> to vector<4x3x3xf32>
    %85 = arith.subf %81, %84 : vector<4x3x3xf32>
    %86 = math.exp %85 : vector<4x3x3xf32>
    %cst_24 = arith.constant dense<0.000000e+00> : vector<4x3xf32>
    %87 = vector.multi_reduction <add>, %86, %cst_24 [2] : vector<4x3x3xf32> to vector<4x3xf32>
    %88 = vector.shape_cast %87 : vector<4x3xf32> to vector<4x3x1xf32>
    %89 = tpu.reciprocal %88 {approx = true} : vector<4x3x1xf32> -> vector<4x3x1xf32>
    %90 = vector.broadcast %89 : vector<4x3x1xf32> to vector<4x3x3xf32>
    %91 = arith.mulf %86, %90 : vector<4x3x3xf32>
    %92 = arith.addf %70, %91 : vector<4x3x3xf32>
    %93 = arith.truncf %91 : vector<4x3x3xf32> to vector<4x3x3xbf16>
    %cst_25 = arith.constant dense<0.000000e+00> : vector<4x3x8xf32>
    %94 = tpu.matmul %93, %78, %cst_25 {dimension_numbers = #tpu.dot_dimension_numbers<[2], [1], [1], [2], [0, 0, 0, 1, 1, 2], [0], [0]>} : vector<4x3x3xbf16>, vector<4x3x8xbf16>, vector<4x3x8xf32> -> vector<4x3x8xf32>
    %95 = tpu.concatenate %28, %50, %72, %94 in 2 : vector<4x3x8xf32>, vector<4x3x8xf32>, vector<4x3x8xf32>, vector<4x3x8xf32> -> vector<4x3x32xf32>
    %96 = vector.shape_cast %95 : vector<4x3x32xf32> to vector<12x32xf32>
    %97 = arith.truncf %96 : vector<12x32xf32> to vector<12x32xbf16>
    %c0_26 = arith.constant 0 : index
    %c0_27 = arith.constant 0 : index
    %98 = vector.load %arg4[%c0_26, %c0_27] : memref<32x32xbf16, #tpu.memory_space<vmem>>, vector<32x32xbf16>
    %cst_28 = arith.constant dense<0.000000e+00> : vector<12x32xf32>
    %99 = tpu.matmul %97, %98, %cst_28 {dimension_numbers = #tpu.dot_dimension_numbers<[1], [0], [0], [1], [0, 0, 1, 1], [], []>} : vector<12x32xbf16>, vector<32x32xbf16>, vector<12x32xf32> -> vector<12x32xf32>
    %c0_29 = arith.constant 0 : index
    %c0_30 = arith.constant 0 : index
    %100 = vector.load %arg5[%c0_29, %c0_30] : memref<1x32xf32, #tpu.memory_space<vmem>>, vector<1x32xf32>
    %101 = vector.broadcast %100 : vector<1x32xf32> to vector<12x32xf32>
    %102 = arith.addf %99, %101 : vector<12x32xf32>
    %103 = arith.extf %1 : vector<12x32xbf16> to vector<12x32xf32>
    %104 = arith.addf %102, %103 : vector<12x32xf32>
    %cst_31 = arith.constant dense<0.000000e+00> : vector<12xf32>
    %105 = vector.multi_reduction <add>, %104, %cst_31 [1] : vector<12x32xf32> to vector<12xf32>
    %106 = vector.shape_cast %105 : vector<12xf32> to vector<12x1xf32>
    %cst_32 = arith.constant 3.200000e+01 : f32
    %107 = vector.broadcast %cst_32 : f32 to vector<12x1xf32>
    %108 = arith.divf %106, %107 : vector<12x1xf32>
    %109 = vector.broadcast %108 : vector<12x1xf32> to vector<12x32xf32>
    %110 = arith.subf %104, %109 : vector<12x32xf32>
    %111 = arith.mulf %110, %110 : vector<12x32xf32>
    %cst_33 = arith.constant dense<0.000000e+00> : vector<12xf32>
    %112 = vector.multi_reduction <add>, %111, %cst_33 [1] : vector<12x32xf32> to vector<12xf32>
    %113 = vector.shape_cast %112 : vector<12xf32> to vector<12x1xf32>
    %cst_34 = arith.constant 3.200000e+01 : f32
    %114 = vector.broadcast %cst_34 : f32 to vector<12x1xf32>
    %115 = arith.divf %113, %114 : vector<12x1xf32>
    %116 = vector.broadcast %108 : vector<12x1xf32> to vector<12x32xf32>
    %117 = arith.subf %104, %116 : vector<12x32xf32>
    %cst_35 = arith.constant 9.99999996E-13 : f32
    %118 = vector.broadcast %cst_35 : f32 to vector<12x1xf32>
    %119 = arith.addf %115, %118 : vector<12x1xf32>
    %120 = math.rsqrt %119 : vector<12x1xf32>
    %121 = vector.broadcast %120 : vector<12x1xf32> to vector<12x32xf32>
    %122 = arith.mulf %117, %121 : vector<12x32xf32>
    %c0_36 = arith.constant 0 : index
    %c0_37 = arith.constant 0 : index
    %123 = vector.load %arg6[%c0_36, %c0_37] : memref<1x32xf32, #tpu.memory_space<vmem>>, vector<1x32xf32>
    %124 = vector.broadcast %123 : vector<1x32xf32> to vector<12x32xf32>
    %125 = arith.mulf %122, %124 : vector<12x32xf32>
    %c0_38 = arith.constant 0 : index
    %c0_39 = arith.constant 0 : index
    %126 = vector.load %arg7[%c0_38, %c0_39] : memref<1x32xf32, #tpu.memory_space<vmem>>, vector<1x32xf32>
    %127 = vector.broadcast %126 : vector<1x32xf32> to vector<12x32xf32>
    %128 = arith.addf %125, %127 : vector<12x32xf32>
    %129 = vector.shape_cast %128 : vector<12x32xf32> to vector<4x3x32xf32>
    %130 = arith.truncf %129 : vector<4x3x32xf32> to vector<4x3x32xbf16>
    %c0_40 = arith.constant 0 : index
    %c0_41 = arith.constant 0 : index
    %c0_42 = arith.constant 0 : index
    %131 = vector.load %arg9[%c0_40, %c0_41, %c0_42] : memref<4x3x32xbf16, #tpu.memory_space<vmem>>, vector<4x3x32xbf16>
    tpu.vector_store %arg9[%c0_40, %c0_41, %c0_42], %130 {strides = array<i32>} : memref<4x3x32xbf16, #tpu.memory_space<vmem>>, vector<4x3x32xbf16>,
    %cst_43 = arith.constant 2.500000e-01 : f32
    %132 = vector.broadcast %cst_43 : f32 to vector<4x3x3xf32>
    %133 = arith.mulf %92, %132 : vector<4x3x3xf32>
    %cst_44 = arith.constant 0.000000e+00 : f32
    %134 = vector.broadcast %cst_44 : f32 to vector<4x3x125xf32>
    %135 = tpu.concatenate %133, %134 in 2 : vector<4x3x3xf32>, vector<4x3x125xf32> -> vector<4x3x128xf32>
    %c0_45 = arith.constant 0 : index
    %c0_46 = arith.constant 0 : index
    %c0_47 = arith.constant 0 : index
    %136 = vector.load %arg8[%c0_45, %c0_46, %c0_47] : memref<4x3x128xf32, #tpu.memory_space<vmem>>, vector<4x3x128xf32>
    %137 = arith.addf %136, %135 : vector<4x3x128xf32>
    %c0_48 = arith.constant 0 : index
    %c0_49 = arith.constant 0 : index
    %c0_50 = arith.constant 0 : index
    %138 = vector.load %arg10[%c0_48, %c0_49, %c0_50] : memref<4x3x128xf32, #tpu.memory_space<vmem>>, vector<4x3x128xf32>
    tpu.vector_store %arg10[%c0_48, %c0_49, %c0_50], %137 {strides = array<i32>} : memref<4x3x128xf32, #tpu.memory_space<vmem>>, vector<4x3x128xf32>,
    return
  }
  func.func @transform_0(%arg0: i32) -> (i32, i32, i32) {
    %c0_i32 = arith.constant 0 : i32
    %c0_i32_0 = arith.constant 0 : i32
    %c0_i32_1 = arith.constant 0 : i32
    return %arg0, %c0_i32, %c0_i32_0 : i32, i32, i32
  }
  func.func @transform_1(%arg0: i32) -> (i32, i32) {
    %c0_i32 = arith.constant 0 : i32
    %c0_i32_0 = arith.constant 0 : i32
    %c0_i32_1 = arith.constant 0 : i32
    return %c0_i32, %c0_i32_0 : i32, i32
  }
  func.func @transform_2(%arg0: i32) -> (i32, i32) {
    %c0_i32 = arith.constant 0 : i32
    %c0_i32_0 = arith.constant 0 : i32
    %c0_i32_1 = arith.constant 0 : i32
    return %c0_i32, %c0_i32_0 : i32, i32
  }
  func.func @transform_3(%arg0: i32) -> (i32, i32) {
    %c0_i32 = arith.constant 0 : i32
    %c0_i32_0 = arith.constant 0 : i32
    %c0_i32_1 = arith.constant 0 : i32
    return %c0_i32, %c0_i32_0 : i32, i32
  }
  func.func @transform_4(%arg0: i32) -> (i32, i32) {
    %c0_i32 = arith.constant 0 : i32
    %c0_i32_0 = arith.constant 0 : i32
    %c0_i32_1 = arith.constant 0 : i32
    return %c0_i32, %c0_i32_0 : i32, i32
  }
  func.func @transform_5(%arg0: i32) -> (i32, i32) {
    %c0_i32 = arith.constant 0 : i32
    %c0_i32_0 = arith.constant 0 : i32
    %c0_i32_1 = arith.constant 0 : i32
    return %c0_i32, %c0_i32_0 : i32, i32
  }
  func.func @transform_6(%arg0: i32) -> (i32, i32) {
    %c0_i32 = arith.constant 0 : i32
    %c0_i32_0 = arith.constant 0 : i32
    %c0_i32_1 = arith.constant 0 : i32
    return %c0_i32, %c0_i32_0 : i32, i32
  }
  func.func @transform_7(%arg0: i32) -> (i32, i32, i32) {
    %c0_i32 = arith.constant 0 : i32
    %c0_i32_0 = arith.constant 0 : i32
    %c0_i32_1 = arith.constant 0 : i32
    return %arg0, %c0_i32, %c0_i32_0 : i32, i32, i32
  }
  func.func @transform_8(%arg0: i32) -> (i32, i32, i32) {
    %c0_i32 = arith.constant 0 : i32
    %c0_i32_0 = arith.constant 0 : i32
    %c0_i32_1 = arith.constant 0 : i32
    return %arg0, %c0_i32, %c0_i32_0 : i32, i32, i32
  }
  func.func @transform_9(%arg0: i32) -> (i32, i32, i32) {
    %c0_i32 = arith.constant 0 : i32
    %c0_i32_0 = arith.constant 0 : i32
    %c0_i32_1 = arith.constant 0 : i32
    return %arg0, %c0_i32, %c0_i32_0 : i32, i32, i32
  }
}

module attributes {stable_mosaic.version = 11 : i64} {
  func.func @_ffn_res_kernel(%arg0: i32, %arg1: memref<24x32xbf16, #tpu.memory_space<vmem>>, %arg2: memref<32x64xbf16, #tpu.memory_space<vmem>>, %arg3: memref<1x64xf32, #tpu.memory_space<vmem>>, %arg4: memref<64x32xbf16, #tpu.memory_space<vmem>>, %arg5: memref<1x32xf32, #tpu.memory_space<vmem>>, %arg6: memref<1x32xf32, #tpu.memory_space<vmem>>, %arg7: memref<1x32xf32, #tpu.memory_space<vmem>>, %arg8: memref<24x32xbf16, #tpu.memory_space<vmem>>) attributes {dimension_semantics = [#tpu.dimension_semantics<parallel>], iteration_bounds = array<i64: 1>, scalar_prefetch = 0 : i64, scratch_operands = 0 : i64, tpu.core_type = #tpu.core_type<tc>, window_params = [{transform_indices = @transform_0, window_bounds = array<i64: 24, 32>}, {pipeline_mode = #tpu.pipeline_mode<synchronous>, transform_indices = @transform_1, window_bounds = array<i64: 32, 64>}, {pipeline_mode = #tpu.pipeline_mode<synchronous>, transform_indices = @transform_2, window_bounds = array<i64: 1, 64>}, {pipeline_mode = #tpu.pipeline_mode<synchronous>, transform_indices = @transform_3, window_bounds = array<i64: 64, 32>}, {pipeline_mode = #tpu.pipeline_mode<synchronous>, transform_indices = @transform_4, window_bounds = array<i64: 1, 32>}, {pipeline_mode = #tpu.pipeline_mode<synchronous>, transform_indices = @transform_5, window_bounds = array<i64: 1, 32>}, {pipeline_mode = #tpu.pipeline_mode<synchronous>, transform_indices = @transform_6, window_bounds = array<i64: 1, 32>}, {transform_indices = @transform_7, window_bounds = array<i64: 24, 32>}]} {
    %c0 = arith.constant 0 : index
    %c0_0 = arith.constant 0 : index
    %0 = vector.load %arg1[%c0, %c0_0] : memref<24x32xbf16, #tpu.memory_space<vmem>>, vector<24x32xbf16>
    %c0_1 = arith.constant 0 : index
    %c0_2 = arith.constant 0 : index
    %1 = vector.load %arg2[%c0_1, %c0_2] : memref<32x64xbf16, #tpu.memory_space<vmem>>, vector<32x64xbf16>
    %cst = arith.constant dense<0.000000e+00> : vector<24x64xf32>
    %2 = tpu.matmul %0, %1, %cst {dimension_numbers = #tpu.dot_dimension_numbers<[1], [0], [0], [1], [0, 0, 1, 1], [], []>} : vector<24x32xbf16>, vector<32x64xbf16>, vector<24x64xf32> -> vector<24x64xf32>
    %c0_3 = arith.constant 0 : index
    %c0_4 = arith.constant 0 : index
    %3 = vector.load %arg3[%c0_3, %c0_4] : memref<1x64xf32, #tpu.memory_space<vmem>>, vector<1x64xf32>
    %4 = vector.broadcast %3 : vector<1x64xf32> to vector<24x64xf32>
    %5 = arith.addf %2, %4 : vector<24x64xf32>
    %cst_5 = arith.constant 5.000000e-01 : f32
    %6 = vector.broadcast %cst_5 : f32 to vector<24x64xf32>
    %7 = arith.mulf %6, %5 : vector<24x64xf32>
    %cst_6 = arith.constant 4.471500e-02 : f32
    %8 = vector.broadcast %cst_6 : f32 to vector<24x64xf32>
    %9 = arith.mulf %8, %5 : vector<24x64xf32>
    %10 = arith.mulf %9, %5 : vector<24x64xf32>
    %11 = arith.mulf %10, %5 : vector<24x64xf32>
    %12 = arith.addf %5, %11 : vector<24x64xf32>
    %cst_7 = arith.constant 0.797884583 : f32
    %13 = vector.broadcast %cst_7 : f32 to vector<24x64xf32>
    %14 = arith.mulf %13, %12 : vector<24x64xf32>
    %15 = math.tanh %14 : vector<24x64xf32>
    %cst_8 = arith.constant 1.000000e+00 : f32
    %16 = vector.broadcast %cst_8 : f32 to vector<24x64xf32>
    %17 = arith.addf %16, %15 : vector<24x64xf32>
    %18 = arith.mulf %7, %17 : vector<24x64xf32>
    %19 = arith.truncf %18 : vector<24x64xf32> to vector<24x64xbf16>
    %c0_9 = arith.constant 0 : index
    %c0_10 = arith.constant 0 : index
    %20 = vector.load %arg4[%c0_9, %c0_10] : memref<64x32xbf16, #tpu.memory_space<vmem>>, vector<64x32xbf16>
    %cst_11 = arith.constant dense<0.000000e+00> : vector<24x32xf32>
    %21 = tpu.matmul %19, %20, %cst_11 {dimension_numbers = #tpu.dot_dimension_numbers<[1], [0], [0], [1], [0, 0, 1, 1], [], []>} : vector<24x64xbf16>, vector<64x32xbf16>, vector<24x32xf32> -> vector<24x32xf32>
    %c0_12 = arith.constant 0 : index
    %c0_13 = arith.constant 0 : index
    %22 = vector.load %arg5[%c0_12, %c0_13] : memref<1x32xf32, #tpu.memory_space<vmem>>, vector<1x32xf32>
    %23 = vector.broadcast %22 : vector<1x32xf32> to vector<24x32xf32>
    %24 = arith.addf %21, %23 : vector<24x32xf32>
    %25 = arith.extf %0 : vector<24x32xbf16> to vector<24x32xf32>
    %26 = arith.addf %24, %25 : vector<24x32xf32>
    %cst_14 = arith.constant dense<0.000000e+00> : vector<24xf32>
    %27 = vector.multi_reduction <add>, %26, %cst_14 [1] : vector<24x32xf32> to vector<24xf32>
    %28 = vector.shape_cast %27 : vector<24xf32> to vector<24x1xf32>
    %cst_15 = arith.constant 3.200000e+01 : f32
    %29 = vector.broadcast %cst_15 : f32 to vector<24x1xf32>
    %30 = arith.divf %28, %29 : vector<24x1xf32>
    %31 = vector.broadcast %30 : vector<24x1xf32> to vector<24x32xf32>
    %32 = arith.subf %26, %31 : vector<24x32xf32>
    %33 = arith.mulf %32, %32 : vector<24x32xf32>
    %cst_16 = arith.constant dense<0.000000e+00> : vector<24xf32>
    %34 = vector.multi_reduction <add>, %33, %cst_16 [1] : vector<24x32xf32> to vector<24xf32>
    %35 = vector.shape_cast %34 : vector<24xf32> to vector<24x1xf32>
    %cst_17 = arith.constant 3.200000e+01 : f32
    %36 = vector.broadcast %cst_17 : f32 to vector<24x1xf32>
    %37 = arith.divf %35, %36 : vector<24x1xf32>
    %38 = vector.broadcast %30 : vector<24x1xf32> to vector<24x32xf32>
    %39 = arith.subf %26, %38 : vector<24x32xf32>
    %cst_18 = arith.constant 9.99999996E-13 : f32
    %40 = vector.broadcast %cst_18 : f32 to vector<24x1xf32>
    %41 = arith.addf %37, %40 : vector<24x1xf32>
    %42 = math.rsqrt %41 : vector<24x1xf32>
    %43 = vector.broadcast %42 : vector<24x1xf32> to vector<24x32xf32>
    %44 = arith.mulf %39, %43 : vector<24x32xf32>
    %c0_19 = arith.constant 0 : index
    %c0_20 = arith.constant 0 : index
    %45 = vector.load %arg6[%c0_19, %c0_20] : memref<1x32xf32, #tpu.memory_space<vmem>>, vector<1x32xf32>
    %46 = vector.broadcast %45 : vector<1x32xf32> to vector<24x32xf32>
    %47 = arith.mulf %44, %46 : vector<24x32xf32>
    %c0_21 = arith.constant 0 : index
    %c0_22 = arith.constant 0 : index
    %48 = vector.load %arg7[%c0_21, %c0_22] : memref<1x32xf32, #tpu.memory_space<vmem>>, vector<1x32xf32>
    %49 = vector.broadcast %48 : vector<1x32xf32> to vector<24x32xf32>
    %50 = arith.addf %47, %49 : vector<24x32xf32>
    %51 = arith.truncf %50 : vector<24x32xf32> to vector<24x32xbf16>
    %c0_23 = arith.constant 0 : index
    %c0_24 = arith.constant 0 : index
    %52 = vector.load %arg8[%c0_23, %c0_24] : memref<24x32xbf16, #tpu.memory_space<vmem>>, vector<24x32xbf16>
    tpu.vector_store %arg8[%c0_23, %c0_24], %51 {strides = array<i32>} : memref<24x32xbf16, #tpu.memory_space<vmem>>, vector<24x32xbf16>,
    return
  }
  func.func @transform_0(%arg0: i32) -> (i32, i32) {
    %c0_i32 = arith.constant 0 : i32
    %c0_i32_0 = arith.constant 0 : i32
    return %arg0, %c0_i32 : i32, i32
  }
  func.func @transform_1(%arg0: i32) -> (i32, i32) {
    %c0_i32 = arith.constant 0 : i32
    %c0_i32_0 = arith.constant 0 : i32
    %c0_i32_1 = arith.constant 0 : i32
    return %c0_i32, %c0_i32_0 : i32, i32
  }
  func.func @transform_2(%arg0: i32) -> (i32, i32) {
    %c0_i32 = arith.constant 0 : i32
    %c0_i32_0 = arith.constant 0 : i32
    %c0_i32_1 = arith.constant 0 : i32
    return %c0_i32, %c0_i32_0 : i32, i32
  }
  func.func @transform_3(%arg0: i32) -> (i32, i32) {
    %c0_i32 = arith.constant 0 : i32
    %c0_i32_0 = arith.constant 0 : i32
    %c0_i32_1 = arith.constant 0 : i32
    return %c0_i32, %c0_i32_0 : i32, i32
  }
  func.func @transform_4(%arg0: i32) -> (i32, i32) {
    %c0_i32 = arith.constant 0 : i32
    %c0_i32_0 = arith.constant 0 : i32
    %c0_i32_1 = arith.constant 0 : i32
    return %c0_i32, %c0_i32_0 : i32, i32
  }
  func.func @transform_5(%arg0: i32) -> (i32, i32) {
    %c0_i32 = arith.constant 0 : i32
    %c0_i32_0 = arith.constant 0 : i32
    %c0_i32_1 = arith.constant 0 : i32
    return %c0_i32, %c0_i32_0 : i32, i32
  }
  func.func @transform_6(%arg0: i32) -> (i32, i32) {
    %c0_i32 = arith.constant 0 : i32
    %c0_i32_0 = arith.constant 0 : i32
    %c0_i32_1 = arith.constant 0 : i32
    return %c0_i32, %c0_i32_0 : i32, i32
  }
  func.func @transform_7(%arg0: i32) -> (i32, i32) {
    %c0_i32 = arith.constant 0 : i32
    %c0_i32_0 = arith.constant 0 : i32
    return %arg0, %c0_i32 : i32, i32
  }
}

module attributes {stable_mosaic.version = 11 : i64} {
  func.func @_series_kernel(%arg0: i32, %arg1: i32, %arg2: memref<8x64xbf16, #tpu.memory_space<vmem>>, %arg3: memref<64x128xbf16, #tpu.memory_space<vmem>>, %arg4: memref<1x128xf32, #tpu.memory_space<vmem>>, %arg5: memref<8x1xf32, #tpu.memory_space<vmem>>, %arg6: memref<8x1xf32, #tpu.memory_space<vmem>>, %arg7: memref<8x128xf32, #tpu.memory_space<vmem>>, %arg8: memref<8x128xf32, #tpu.memory_space<vmem>>) attributes {dimension_semantics = [#tpu.dimension_semantics<parallel>, #tpu.dimension_semantics<arbitrary>], iteration_bounds = array<i64: 1, 1>, scalar_prefetch = 0 : i64, scratch_operands = 1 : i64, tpu.core_type = #tpu.core_type<tc>, window_params = [{transform_indices = @transform_0, window_bounds = array<i64: 8, 64>}, {transform_indices = @transform_1, window_bounds = array<i64: 64, 128>}, {pipeline_mode = #tpu.pipeline_mode<synchronous>, transform_indices = @transform_2, window_bounds = array<i64: 1, 128>}, {transform_indices = @transform_3, window_bounds = array<i64: 8, 1>}, {transform_indices = @transform_4, window_bounds = array<i64: 8, 1>}, {transform_indices = @transform_5, window_bounds = array<i64: 8, 128>}]} {
    %c0_i32 = arith.constant 0 : i32
    %0 = arith.cmpi eq, %arg1, %c0_i32 : i32
    %1 = arith.extui %0 : i1 to i32
    %c0_i32_0 = arith.constant 0 : i32
    %2 = arith.cmpi ne, %1, %c0_i32_0 : i32
    scf.if %2 {
      %cst_10 = arith.constant 0.000000e+00 : f32
      %12 = vector.broadcast %cst_10 : f32 to vector<8x128xf32>
      %c0_11 = arith.constant 0 : index
      %c0_12 = arith.constant 0 : index
      %13 = vector.load %arg8[%c0_11, %c0_12] : memref<8x128xf32, #tpu.memory_space<vmem>>, vector<8x128xf32>
      tpu.vector_store %arg8[%c0_11, %c0_12], %12 {strides = array<i32>} : memref<8x128xf32, #tpu.memory_space<vmem>>, vector<8x128xf32>,
    } else {
    }
    %c0 = arith.constant 0 : index
    %c0_1 = arith.constant 0 : index
    %3 = vector.load %arg8[%c0, %c0_1] : memref<8x128xf32, #tpu.memory_space<vmem>>, vector<8x128xf32>
    %c0_2 = arith.constant 0 : index
    %c0_3 = arith.constant 0 : index
    %4 = vector.load %arg2[%c0_2, %c0_3] : memref<8x64xbf16, #tpu.memory_space<vmem>>, vector<8x64xbf16>
    %c0_4 = arith.constant 0 : index
    %c0_5 = arith.constant 0 : index
    %5 = vector.load %arg3[%c0_4, %c0_5] : memref<64x128xbf16, #tpu.memory_space<vmem>>, vector<64x128xbf16>
    %cst = arith.constant dense<0.000000e+00> : vector<8x128xf32>
    %6 = tpu.matmul %4, %5, %cst {dimension_numbers = #tpu.dot_dimension_numbers<[1], [0], [0], [1], [0, 0, 1, 1], [], []>} : vector<8x64xbf16>, vector<64x128xbf16>, vector<8x128xf32> -> vector<8x128xf32>
    %7 = arith.addf %3, %6 : vector<8x128xf32>
    %c0_6 = arith.constant 0 : index
    %c0_7 = arith.constant 0 : index
    %8 = vector.load %arg8[%c0_6, %c0_7] : memref<8x128xf32, #tpu.memory_space<vmem>>, vector<8x128xf32>
    tpu.vector_store %arg8[%c0_6, %c0_7], %7 {strides = array<i32>} : memref<8x128xf32, #tpu.memory_space<vmem>>, vector<8x128xf32>,
    %c0_i32_8 = arith.constant 0 : i32
    %9 = arith.cmpi eq, %arg1, %c0_i32_8 : i32
    %10 = arith.extui %9 : i1 to i32
    %c0_i32_9 = arith.constant 0 : i32
    %11 = arith.cmpi ne, %10, %c0_i32_9 : i32
    scf.if %11 {
      %c0_10 = arith.constant 0 : index
      %c0_11 = arith.constant 0 : index
      %12 = vector.load %arg8[%c0_10, %c0_11] : memref<8x128xf32, #tpu.memory_space<vmem>>, vector<8x128xf32>
      %c0_12 = arith.constant 0 : index
      %c0_13 = arith.constant 0 : index
      %13 = vector.load %arg4[%c0_12, %c0_13] : memref<1x128xf32, #tpu.memory_space<vmem>>, vector<1x128xf32>
      %14 = vector.broadcast %13 : vector<1x128xf32> to vector<8x128xf32>
      %15 = arith.addf %12, %14 : vector<8x128xf32>
      %c0_14 = arith.constant 0 : index
      %c0_15 = arith.constant 0 : index
      %16 = vector.load %arg5[%c0_14, %c0_15] : memref<8x1xf32, #tpu.memory_space<vmem>>, vector<8x1xf32>
      %17 = vector.broadcast %16 : vector<8x1xf32> to vector<8x128xf32>
      %18 = arith.mulf %15, %17 : vector<8x128xf32>
      %c0_16 = arith.constant 0 : index
      %c0_17 = arith.constant 0 : index
      %19 = vector.load %arg6[%c0_16, %c0_17] : memref<8x1xf32, #tpu.memory_space<vmem>>, vector<8x1xf32>
      %20 = vector.broadcast %19 : vector<8x1xf32> to vector<8x128xf32>
      %21 = arith.addf %18, %20 : vector<8x128xf32>
      %c0_18 = arith.constant 0 : index
      %c0_19 = arith.constant 0 : index
      %22 = vector.load %arg7[%c0_18, %c0_19] : memref<8x128xf32, #tpu.memory_space<vmem>>, vector<8x128xf32>
      tpu.vector_store %arg7[%c0_18, %c0_19], %21 {strides = array<i32>} : memref<8x128xf32, #tpu.memory_space<vmem>>, vector<8x128xf32>,
    } else {
    }
    return
  }
  func.func @transform_0(%arg0: i32, %arg1: i32) -> (i32, i32) {
    %c0_i32 = arith.constant 0 : i32
    return %arg0, %arg1 : i32, i32
  }
  func.func @transform_1(%arg0: i32, %arg1: i32) -> (i32, i32) {
    %c0_i32 = arith.constant 0 : i32
    %c0_i32_0 = arith.constant 0 : i32
    return %arg1, %c0_i32 : i32, i32
  }
  func.func @transform_2(%arg0: i32, %arg1: i32) -> (i32, i32) {
    %c0_i32 = arith.constant 0 : i32
    %c0_i32_0 = arith.constant 0 : i32
    %c0_i32_1 = arith.constant 0 : i32
    return %c0_i32, %c0_i32_0 : i32, i32
  }
  func.func @transform_3(%arg0: i32, %arg1: i32) -> (i32, i32) {
    %c0_i32 = arith.constant 0 : i32
    %c0_i32_0 = arith.constant 0 : i32
    return %arg0, %c0_i32 : i32, i32
  }
  func.func @transform_4(%arg0: i32, %arg1: i32) -> (i32, i32) {
    %c0_i32 = arith.constant 0 : i32
    %c0_i32_0 = arith.constant 0 : i32
    return %arg0, %c0_i32 : i32, i32
  }
  func.func @transform_5(%arg0: i32, %arg1: i32) -> (i32, i32) {
    %c0_i32 = arith.constant 0 : i32
    %c0_i32_0 = arith.constant 0 : i32
    return %arg0, %c0_i32 : i32, i32
  }
}

module attributes {stable_mosaic.version = 11 : i64} {
  func.func @_spc_kernel(%arg0: i32, %arg1: memref<8x128xbf16, #tpu.memory_space<vmem>>, %arg2: memref<128x128xbf16, #tpu.memory_space<vmem>>, %arg3: memref<1x128xf32, #tpu.memory_space<vmem>>, %arg4: memref<8x128xf32, #tpu.memory_space<vmem>>) attributes {dimension_semantics = [#tpu.dimension_semantics<parallel>], iteration_bounds = array<i64: 1>, scalar_prefetch = 0 : i64, scratch_operands = 0 : i64, tpu.core_type = #tpu.core_type<tc>, window_params = [{transform_indices = @transform_0, window_bounds = array<i64: 8, 128>}, {pipeline_mode = #tpu.pipeline_mode<synchronous>, transform_indices = @transform_1, window_bounds = array<i64: 128, 128>}, {pipeline_mode = #tpu.pipeline_mode<synchronous>, transform_indices = @transform_2, window_bounds = array<i64: 1, 128>}, {transform_indices = @transform_3, window_bounds = array<i64: 8, 128>}]} {
    %c0 = arith.constant 0 : index
    %c0_0 = arith.constant 0 : index
    %0 = vector.load %arg1[%c0, %c0_0] : memref<8x128xbf16, #tpu.memory_space<vmem>>, vector<8x128xbf16>
    %c0_1 = arith.constant 0 : index
    %c0_2 = arith.constant 0 : index
    %1 = vector.load %arg2[%c0_1, %c0_2] : memref<128x128xbf16, #tpu.memory_space<vmem>>, vector<128x128xbf16>
    %cst = arith.constant dense<0.000000e+00> : vector<8x128xf32>
    %2 = tpu.matmul %0, %1, %cst {dimension_numbers = #tpu.dot_dimension_numbers<[1], [0], [0], [1], [0, 0, 1, 1], [], []>} : vector<8x128xbf16>, vector<128x128xbf16>, vector<8x128xf32> -> vector<8x128xf32>
    %c0_3 = arith.constant 0 : index
    %c0_4 = arith.constant 0 : index
    %3 = vector.load %arg3[%c0_3, %c0_4] : memref<1x128xf32, #tpu.memory_space<vmem>>, vector<1x128xf32>
    %4 = vector.broadcast %3 : vector<1x128xf32> to vector<8x128xf32>
    %5 = arith.addf %2, %4 : vector<8x128xf32>
    %6 = arith.negf %5 : vector<8x128xf32>
    %7 = math.exp %6 : vector<8x128xf32>
    %cst_5 = arith.constant 1.000000e+00 : f32
    %8 = vector.broadcast %cst_5 : f32 to vector<8x128xf32>
    %9 = arith.addf %8, %7 : vector<8x128xf32>
    %10 = arith.divf %8, %9 : vector<8x128xf32>
    %c0_6 = arith.constant 0 : index
    %c0_7 = arith.constant 0 : index
    %11 = vector.load %arg4[%c0_6, %c0_7] : memref<8x128xf32, #tpu.memory_space<vmem>>, vector<8x128xf32>
    tpu.vector_store %arg4[%c0_6, %c0_7], %10 {strides = array<i32>} : memref<8x128xf32, #tpu.memory_space<vmem>>, vector<8x128xf32>,
    return
  }
  func.func @transform_0(%arg0: i32) -> (i32, i32) {
    %c0_i32 = arith.constant 0 : i32
    %c0_i32_0 = arith.constant 0 : i32
    return %arg0, %c0_i32 : i32, i32
  }
  func.func @transform_1(%arg0: i32) -> (i32, i32) {
    %c0_i32 = arith.constant 0 : i32
    %c0_i32_0 = arith.constant 0 : i32
    %c0_i32_1 = arith.constant 0 : i32
    return %c0_i32, %c0_i32_0 : i32, i32
  }
  func.func @transform_2(%arg0: i32) -> (i32, i32) {
    %c0_i32 = arith.constant 0 : i32
    %c0_i32_0 = arith.constant 0 : i32
    %c0_i32_1 = arith.constant 0 : i32
    return %c0_i32, %c0_i32_0 : i32, i32
  }
  func.func @transform_3(%arg0: i32) -> (i32, i32) {
    %c0_i32 = arith.constant 0 : i32
    %c0_i32_0 = arith.constant 0 : i32
    return %arg0, %c0_i32 : i32, i32
  }
}

</mosaic_0001>

<bundles_post_ra>
// kernel: spcpatchbert_forward.7
= control target key start
LH: loop header
LB: loop body
LE: loop exit
PB: predicated region body
PF: predicated region fallthrough
CT: control target
= control target key end

     0   :  { %s549_s15 = smov 0   ;;  %s628_s0 = inlined_call_operand.vmem [shape: bf16[8,3,8], index: 0, kind: input, shape index: {}]   ;;  %s629_s1 = inlined_call_operand.vmem [shape: bf16[8,32], index: 1, kind: input, shape index: {}]   ;;  %s630_s2 = inlined_call_operand.vmem [shape: f32[1,32], index: 2, kind: input, shape index: {}]   ;;  %s631_s3 = inlined_call_operand.vmem [shape: f32[3,32], index: 3, kind: input, shape index: {}]   ;;  %s632_s4 = inlined_call_operand.vmem [shape: bf16[8,3,32], index: 4, kind: output, shape index: {}]  }
   0x1 LB: > { %s491_s16 = sadd.s32 4294967295, %s522_s15   ;;  %p495_p0 = scmp.ge.s32.totalorder %s522_s15, 1  ;;  %s522_s15 = sphi %s549_s15, %s14_s15  }
   0x2   : > { %p163_p1 = scmp.lt.s32.totalorder %s522_s15, 3 }
   0x4   : > { %p164_p2 = pnand %p495_p0, %p163_p1 }
   0x5   : > { %s496_s19 = sshll.u32 (!%p164_p2), %s491_s16, 2 }
   0x6   : > { %167 = sbr.rel (%p164_p2) target bundleno = 213 (0xd5), region = 36  ;;  %p190_p3 = scmp.lt.s32.totalorder (!%p164_p2), %s496_s19, 7 }
   0xb   : > { %v292_v0 = vld [vmem:[%s629_s1] sm:$0xf]  ;;  %vm324_vm0 = vcmask 1043456   ;;  %s636_s19 = smov (!%p190_p3, %s496_s19), 7  ;;  %vm222_vm1 = vcmask 1040384   ;;  %vm226_vm2 = vcmask 1042434  }
   0xc   : > { %v326_v1 = vsel %vm324_vm0, %v292_v0, 0  ;;  %s497_s20 = sshll.u32 %s636_s19, 1  ;;  %vm230_vm3 = vcmask 1041408   ;;  %vm233_vm4 = vcmask 1041409   ;;  %vm235_vm5 = vcmask 1043459  }
   0xd   : > { %335 = vmatpush.bf16.msra.mxu0 %v326_v1  ;;  %s193_s23 = scalar_lea.vmem %s628_s0, %s497_s20  ;;  %vm237_vm6 = vcmask 1042433   ;;  %vm321_vm7 = vcmask 64512   ;;  %v515_v53 = vld [vmem:[%s630_s2] ss:$0 sm:$0xff]  ;;  %s603_s30 = scalar_lea.vmem %s632_s4, %s497_s20  ;;  %vm420_vm8 = vcmask 254976  }
   0xe   : > { %v202_v2 = vld [vmem:[%s193_s23] sm:$0x3]  ;;  %v203_v3 = vld [vmem:[%s193_s23 + $0x2] sm:$0x3]  ;;  %v204_v4 = vld [vmem:[%s193_s23 + $0x4] sm:$0x3] }
   0xf   : > { %v205_v5 = vld [vmem:[%s193_s23 + $0x6] sm:$0x3]  ;;  %v210_v6 = vrot.slane %v202_v2, 1  ;;  %v211_v7 = vrot.slane %v202_v2, 2  ;;  %v212_v8 = vrot.slane %v202_v2, 3  ;;  %v213_v9 = vrot.slane %v203_v3, 1 }
  0x10   : > { %v214_v10 = vrot.slane %v203_v3, 2  ;;  %v215_v11 = vrot.slane %v203_v3, 3  ;;  %v216_v12 = vrot.slane %v204_v4, 1  ;;  %v217_v13 = vrot.slane %v204_v4, 2  ;;  %v364_v54 = vld [vmem:[%s631_s3] sm:$0x7] }
  0x11   : > { %v218_v14 = vrot.slane %v204_v4, 3  ;;  %v219_v15 = vrot.slane %v205_v5, 1  ;;  %v220_v16 = vrot.slane %v205_v5, 2  ;;  %v221_v17 = vrot.slane %v205_v5, 3 }
  0x12   : > { %v225_v18 = vsel %vm222_vm1, %v202_v2, %v210_v6  ;;  %v229_v19 = vsel %vm226_vm2, %v211_v7, %v212_v8  ;;  %v234_v20 = vsel %vm233_vm4, %v202_v2, %v210_v6  ;;  %v236_v21 = vsel %vm235_vm5, %v211_v7, %v212_v8  ;;  %v423_v7 = vld [vmem:[%s603_s30] sm:$0x3] }
  0x13   : > { %v231_v22 = vsel %vm230_vm3, %v225_v18, %v229_v19  ;;  %v238_v23 = vsel %vm237_vm6, %v234_v20, %v236_v21  ;;  %v243_v24 = vsel %vm222_vm1, %v203_v3, %v213_v9  ;;  %v246_v25 = vsel %vm226_vm2, %v214_v10, %v215_v11  ;;  %v426_v20 = vld [vmem:[%s603_s30 + $0x2] sm:$0x3] }
  0x14   : > { %v240_v26 = vrot.slane %v238_v23, 1  ;;  %v247_v27 = vsel %vm230_vm3, %v243_v24, %v246_v25  ;;  %v249_v28 = vsel %vm233_vm4, %v203_v3, %v213_v9  ;;  %v250_v29 = vsel %vm235_vm5, %v214_v10, %v215_v11  ;;  %304 = vst [vmem:[#allocation1] ss:$9 sm:$0xff] %v231_v22 }
  0x15   : > { %v251_v30 = vsel %vm237_vm6, %v249_v28, %v250_v29  ;;  %v256_v31 = vsel %vm222_vm1, %v204_v4, %v216_v12  ;;  %v259_v32 = vsel %vm226_vm2, %v217_v13, %v218_v14  ;;  %v262_v33 = vsel %vm233_vm4, %v204_v4, %v216_v12 }
  0x16   : > { %v253_v34 = vrot.slane %v251_v30, 1  ;;  %v260_v35 = vsel %vm230_vm3, %v256_v31, %v259_v32  ;;  %v263_v36 = vsel %vm235_vm5, %v217_v13, %v218_v14  ;;  %v269_v37 = vsel %vm222_vm1, %v205_v5, %v219_v15  ;;  %v429_v30 = vld [vmem:[%s603_s30 + $0x4] sm:$0x3] }
  0x17   : > { %v264_v38 = vsel %vm237_vm6, %v262_v33, %v263_v36  ;;  %v272_v39 = vsel %vm226_vm2, %v220_v16, %v221_v17  ;;  %v275_v40 = vsel %vm233_vm4, %v205_v5, %v219_v15  ;;  %v276_v41 = vsel %vm235_vm5, %v220_v16, %v221_v17  ;;  %313 = vst [vmem:[#allocation1 + $0x3] ss:$9 sm:$0xff] %v260_v35 }
  0x18   : > { %v266_v42 = vrot.slane %v264_v38, 1  ;;  %v273_v43 = vsel %vm230_vm3, %v269_v37, %v272_v39  ;;  %v277_v44 = vsel %vm237_vm6, %v275_v40, %v276_v41  ;;  %v284_v45 = vunpack.i.h.s16 %v247_v27 }
  0x19   : > { %v279_v46 = vrot.slane %v277_v44, 1  ;;  %v290_v47 = vunpack.i.h.s16 %v273_v43  ;;  %v500_v48 = vpack.i.b16 %v247_v27, %v240_v26  ;;  %v366_v57 = vrot.slane %v364_v54, 1 }
  0x1a   : > { %v501_v49 = vpack.i.b16 %v253_v34, %v284_v45  ;;  %v502_v50 = vpack.i.b16 %v273_v43, %v266_v42  ;;  %v367_v58 = vrot.slane %v364_v54, 2  ;;  %vm421_vm9 = vsmask.f32 1280  ;;  %v432_v34 = vld [vmem:[%s603_s30 + $0x6] sm:$0x3] }
  0x1b   : > { %v503_v51 = vpack.i.b16 %v279_v46, %v290_v47  ;;  %307 = vst [vmem:[#allocation1 + $0x1] ss:$9 sm:$0xff] %v500_v48  ;;  %vm605_vm10 = vmand %vm420_vm8, %vm421_vm9 }
  0x1c   : > { %310 = vst [vmem:[#allocation1 + $0x2] ss:$9 sm:$0xff] %v501_v49 }
  0x1d   : > { %316 = vst [vmem:[#allocation1 + $0x4] ss:$9 sm:$0xff] %v502_v50 }
  0x1e   : > { %319 = vst [vmem:[#allocation1 + $0x5] ss:$9 sm:$0xff] %v503_v51 }
  0x25   : > { %v320_v52 = vld [vmem:[#allocation1] sm:$0xff] }
  0x26   : > { %504 = vmatmul.msk.bf16.vlgmr.msra.gmra.mxu0 %vm321_vm7, %v320_v52 }
  0xa3   : > { %v337_v55 = vpop.f32.mrf.mxu0 }
  0xa4   : > { %v338_v56 = vadd.f32 %v515_v53, %v337_v55 }
  0xa6   : > { %v344_v59 = vrot.slane %v338_v56, 1  ;;  %v345_v60 = vrot.slane %v338_v56, 2  ;;  %v370_v61 = vadd.f32 %v364_v54, %v338_v56  ;;  %v346_v0 = vrot.slane %v338_v56, 3 }
  0xa7   : > { %v347_v1 = vrot.slane %v338_v56, 4  ;;  %v348_v2 = vrot.slane %v338_v56, 5  ;;  %v349_v12 = vrot.slane %v338_v56, 6  ;;  %v350_v13 = vrot.slane %v338_v56, 7 }
  0xa8   : > { %v371_v62 = vadd.f32 %v366_v57, %v344_v59  ;;  %v372_v63 = vadd.f32 %v367_v58, %v345_v60  ;;  %394 = vst [vmem:[#allocation1] ss:$9 sm:$0xff] %v370_v61  ;;  %v373_v3 = vadd.f32 %v364_v54, %v346_v0 }
  0xa9   : > { %v374_v4 = vadd.f32 %v366_v57, %v347_v1  ;;  %v375_v8 = vadd.f32 %v367_v58, %v348_v2  ;;  %v376_v15 = vadd.f32 %v364_v54, %v349_v12  ;;  %v377_v16 = vadd.f32 %v366_v57, %v350_v13 }
  0xaa   : > { %396 = vst [vmem:[#allocation1 + $0x1] ss:$9 sm:$0xff] %v371_v62 }
  0xab   : > { %398 = vst [vmem:[#allocation1 + $0x2] ss:$9 sm:$0xff] %v372_v63  ;;  %v339_v11 = vpop.f32.mrf.mxu0 }
  0xac   : > { %v340_v14 = vadd.f32 %v515_v53, %v339_v11 }
  0xae   : > { %v378_v18 = vadd.f32 %v367_v58, %v340_v14  ;;  %v351_v22 = vrot.slane %v340_v14, 1  ;;  %v352_v23 = vrot.slane %v340_v14, 2  ;;  %v353_v24 = vrot.slane %v340_v14, 3 }
  0xb0   : > { %v379_v25 = vadd.f32 %v364_v54, %v351_v22  ;;  %v380_v26 = vadd.f32 %v366_v57, %v352_v23  ;;  %v381_v28 = vadd.f32 %v367_v58, %v353_v24 }
  0xb2   : > { %v399_v5 = vld [vmem:[#allocation1] sm:$0xff] }
  0xb3   : > { %400 = vst [vmem:[#allocation1] ss:$9 sm:$0xff] %v373_v3  ;;  %v416_v9 = vpack.c.bf16 %v399_v5, %v399_v5 }
  0xb4   : > { %401 = vst [vmem:[#allocation1 + $0x1] ss:$9 sm:$0xff] %v374_v4 }
  0xb5   : > { %402 = vst [vmem:[#allocation1 + $0x2] ss:$9 sm:$0xff] %v375_v8  ;;  %v424_v10 = vsel %vm605_vm10, %v416_v9, %v423_v7 }
  0xb6   : > { %425 = vst [vmem:[%s603_s30] sm:$0x3] %v424_v10 }
  0xbc   : > { %v403_v17 = vld [vmem:[#allocation1] sm:$0xff] }
  0xbd   : > { %404 = vst [vmem:[#allocation1] ss:$9 sm:$0xff] %v376_v15  ;;  %v417_v19 = vpack.c.bf16 %v403_v17, %v403_v17 }
  0xbe   : > { %405 = vst [vmem:[#allocation1 + $0x1] ss:$9 sm:$0xff] %v377_v16 }
  0xbf   : > { %406 = vst [vmem:[#allocation1 + $0x2] ss:$9 sm:$0xff] %v378_v18  ;;  %v427_v21 = vsel %vm605_vm10, %v417_v19, %v426_v20 }
  0xc0   : > { %428 = vst [vmem:[%s603_s30 + $0x2] sm:$0x3] %v427_v21 }
  0xc6   : > { %v407_v27 = vld [vmem:[#allocation1] sm:$0xff] }
  0xc7   : > { %408 = vst [vmem:[#allocation1] ss:$9 sm:$0xff] %v379_v25  ;;  %v418_v29 = vpack.c.bf16 %v407_v27, %v407_v27 }
  0xc8   : > { %409 = vst [vmem:[#allocation1 + $0x1] ss:$9 sm:$0xff] %v380_v26 }
  0xc9   : > { %410 = vst [vmem:[#allocation1 + $0x2] ss:$9 sm:$0xff] %v381_v28  ;;  %v430_v31 = vsel %vm605_vm10, %v418_v29, %v429_v30 }
  0xca   : > { %431 = vst [vmem:[%s603_s30 + $0x4] sm:$0x3] %v430_v31 }
  0xd0   : > { %v411_v32 = vld [vmem:[#allocation1] sm:$0xff] }
  0xd1   : > { %v419_v33 = vpack.c.bf16 %v411_v32, %v411_v32 }
  0xd3   : > { %v433_v35 = vsel %vm605_vm10, %v419_v33, %v432_v34 }
  0xd4   : > { %434 = vst [vmem:[%s603_s30 + $0x6] sm:$0x3] %v433_v35 }
  0xd5 PF: > { %s14_s15 = sadd.s32 1, %s522_s15  }
  0xd6   : > { %p11_p4 = scmp.ge.s32.totalorder %s14_s15, 4  }
  0xd8   :  { %13 = sbr.rel (!%p11_p4) target bundleno = 1 (0x1), region = 73 }

// kernel: squeeze.3
= control target key start
LH: loop header
LB: loop body
LE: loop exit
PB: predicated region body
PF: predicated region fallthrough
CT: control target
= control target key end

     0   :  { %s51_s8 = smov 3  ;;  %s68_s9 = smov 96   ;;  %vm34_vm0 = vcmask 261120   ;;  %vm41_vm1 = vcmask 1048320   ;;  %vm48_vm2 = vcmask 785920   ;;  %vm55_vm3 = vcmask 523520   ;;  %s87_s0 = inlined_call_operand.vmem [shape: bf16[2,4,32], index: 0, kind: input, shape index: {}]   ;;  %s88_s1 = inlined_call_operand.vmem [shape: bf16[2,128], index: 1, kind: output, shape index: {}]  }
   0x1   :  { %v64_v0 = vld [vmem:[%s87_s0] sm:$0xf]   ;;  %s37_s0 = smov 3  ;;  %s69_s10 = smov 32  }
   0x2   :  { %v15_v1 = vunpack.c.l.bf16 %v64_v0  ;;  %s44_s11 = smov 3  ;;  %s70_s12 = smov 64  }
   0x3   :  { %s32_s13 = smov 3 }
   0x4   :  { %18 = vst [vmem:[#allocation1 + $0x4] sm:$0xf0] %v15_v1 }
   0x5   :  { %31 = vst [vmem:[#allocation1] sm:$0xf] %v15_v1 }
   0xc   :  { %v38_v2 = vld [vmem:[#allocation1 + $0x3] ss:$8 sm:%s37_s0]   ;;  %v52_v3 = vld [vmem:[#allocation1 + $0x1] ss:$8 sm:%s51_s8]   ;;  %v45_v4 = vld [vmem:[#allocation1 + $0x2] ss:$8 sm:%s44_s11]  }
   0xd   :  { %39 = vrot.lane.b32.xlu0 %v38_v2, %s68_s9  ;;  %53 = vrot.lane.b32.xlu1 %v52_v3, %s69_s10  ;;  %v33_v5 = vld [vmem:[#allocation1] ss:$8 sm:%s32_s13]  }
   0xe   :  { %35 = vst.msk [vmem:[#allocation0] sm:$0x3] %vm34_vm0, %v33_v5  }
  0x15   :  { %46 = vrot.lane.b32.xlu0 %v45_v4, %s70_s12 }
  0x7f   :  { %v40_v6 = vpop.permute.xlu0 %39   ;;  %v54_v7 = vpop.permute.xlu1 %53  }
  0x80   :  { %42 = vst.msk [vmem:[#allocation0] sm:$0x3] %vm41_vm1, %v40_v6  }
  0x87   :  { %v47_v8 = vpop.permute.xlu0 %46  }
  0x88   :  { %49 = vst.msk [vmem:[#allocation0] sm:$0x3] %vm48_vm2, %v47_v8  }
  0x89   :  { %56 = vst.msk [vmem:[#allocation0] sm:$0x3] %vm55_vm3, %v54_v7  }
  0x90   :  { %v59_v9 = vld [vmem:[#allocation0] sm:$0x3] }
  0x91   :  { %v60_v10 = vpack.c.bf16 0.0, %v59_v9 }
  0x93   :  { %63 = vst [vmem:[%s88_s1] sm:$0x1] %v60_v10 }

// kernel: spcpatchbert_forward.9
= control target key start
LH: loop header
LB: loop body
LE: loop exit
PB: predicated region body
PF: predicated region fallthrough
CT: control target
= control target key end

     0   :  { %vm58_vm0 = vcmask 261120   ;;  %vm148_vm1 = vcmask 523264   ;;  %vm269_vm7 = vcmask 257024   ;;  %s445_s1 = inlined_call_operand.vmem [shape: bf16[32,64], index: 1, kind: input, shape index: {}]   ;;  %s446_s0 = inlined_call_operand.vmem [shape: bf16[24,32], index: 0, kind: input, shape index: {}]   ;;  %s447_s2 = inlined_call_operand.vmem [shape: f32[1,64], index: 2, kind: input, shape index: {}]   ;;  %s448_s4 = inlined_call_operand.vmem [shape: f32[1,32], index: 4, kind: input, shape index: {}]   ;;  %s449_s3 = inlined_call_operand.vmem [shape: bf16[64,32], index: 3, kind: input, shape index: {}]   ;;  %s450_s5 = inlined_call_operand.vmem [shape: f32[1,32], index: 5, kind: input, shape index: {}]   ;;  %s451_s6 = inlined_call_operand.vmem [shape: f32[1,32], index: 6, kind: input, shape index: {}]   ;;  %s452_s7 = inlined_call_operand.vmem [shape: bf16[24,32], index: 7, kind: output, shape index: {}]  }
   0x1   :  { %v311_v0 = vld [vmem:[%s445_s1 + $0x8] sm:$0xff]  ;;  %v310_v2 = vld [vmem:[%s445_s1] sm:$0xff]  ;;  %v315_v6 = vld [vmem:[%s449_s3 + $0x18] sm:$0xff] }
   0x2   :  { %v388_v1 = vld [vmem:[%s446_s0 + $0x8] sm:$0xf]  ;;  %71 = vmatpush.bf16.msra.mxu0 %v311_v0  ;;  %316 = vmatpush.bf16.msra.mxu3 %v311_v0  ;;  %v309_v4 = vld [vmem:[%s446_s0] sm:$0xff]  ;;  %v314_v7 = vld [vmem:[%s449_s3 + $0x10] sm:$0xff] }
   0x3   :  { %v43_v3 = vunpack.c.l.b16 %v388_v1  ;;  %318 = vmatpush.bf16.msra.mxu2 %v315_v6  ;;  %159 = vmatpush.bf16.msra.mxu1 %v315_v6  ;;  %v313_v8 = vld [vmem:[%s449_s3 + $0x8] sm:$0xff]  ;;  %v312_v9 = vld [vmem:[%s449_s3] sm:$0xff]  ;;  %v175_v53 = vunpack.c.l.bf16 %v388_v1 }
   0x4   :  { %v323_v10 = vld [vmem:[%s447_s2] ss:$0 sm:$0xff] }
   0x5   :  { %v45_v5 = vpack.c.b16 %v43_v3, %v43_v3  ;;  %v27_v47 = vld [vmem:[%s446_s0] sm:$0xff]  }
   0x6   :  { %72 = vmatpush.bf16.msra.mxu0 %v310_v2  ;;  %317 = vmatpush.bf16.msra.mxu3 %v310_v2  ;;  %v324_v48 = vld [vmem:[%s448_s4] ss:$0 sm:$0xff]  ;;  %v173_v49 = vunpack.c.l.bf16 %v27_v47  ;;  %v174_v58 = vunpack.c.h.bf16 %v27_v47  ;;  %v341_v2 = vmov 32.0  }
   0x7   :  { %319 = vmatpush.bf16.msra.mxu2 %v314_v7  ;;  %160 = vmatpush.bf16.msra.mxu1 %v314_v7 }
   0x9   :  { %289 = vmatmul.msk.bf16.vlgmr.msra.gmra.mxu0 %vm58_vm0, %v309_v4  ;;  %290 = vmatmul.msk.bf16.vlgmr.msra.gmra.mxu3 %vm58_vm0, %v45_v5 }
   0xb   :  { %320 = vmatpush.bf16.msra.mxu2 %v313_v8  ;;  %161 = vmatpush.bf16.msra.mxu1 %v313_v8 }
   0xf   :  { %321 = vmatpush.bf16.msra.mxu2 %v312_v9  ;;  %162 = vmatpush.bf16.msra.mxu1 %v312_v9 }
  0x86   :  { %v74_v11 = vpop.f32.mrf.mxu0 }
  0x87   :  { %v75_v12 = vadd.f32 %v323_v10, %v74_v11 }
  0x89   :  { %v86_v13 = vmul.f32 0.044715, %v75_v12  ;;  %v83_v40 = vmul.f32 0.5, %v75_v12 }
  0x8b   :  { %v89_v14 = vmul.f32 %v86_v13, %v75_v12 }
  0x8c   :  { %v79_v15 = vpop.f32.mrf.mxu3 }
  0x8d   :  { %v80_v16 = vadd.f32 %v323_v10, %v79_v15  ;;  %v92_v17 = vmul.f32 %v89_v14, %v75_v12 }
  0x8e   :  { %v76_v18 = vpop.f32.mrf.mxu0 }
  0x8f   :  { %v88_v19 = vmul.f32 0.044715, %v80_v16  ;;  %v77_v20 = vadd.f32 %v323_v10, %v76_v18  ;;  %v95_v21 = vadd.f32 %v92_v17, %v75_v12  ;;  %v85_v35 = vmul.f32 0.5, %v80_v16 }
  0x91   :  { %v91_v22 = vmul.f32 %v88_v19, %v80_v16  ;;  %v87_v23 = vmul.f32 0.044715, %v77_v20  ;;  %v98_v26 = vmul.f32 0.7978846, %v95_v21  ;;  %v84_v41 = vmul.f32 0.5, %v77_v20 }
  0x93   :  { %v90_v24 = vmul.f32 %v87_v23, %v77_v20  ;;  %v94_v25 = vmul.f32 %v91_v22, %v80_v16  ;;  %327 = vtanh.f32 %v98_v26 }
  0x94   :  { %v81_v27 = vpop.f32.mrf.mxu3 }
  0x95   :  { %v97_v28 = vadd.f32 %v94_v25, %v80_v16  ;;  %v93_v29 = vmul.f32 %v90_v24, %v77_v20 }
  0x97   :  { %v100_v30 = vmul.f32 0.7978846, %v97_v28  ;;  %v96_v31 = vadd.f32 %v93_v29, %v77_v20 }
  0x99   :  { %329 = vtanh.f32 %v100_v30  ;;  %v99_v32 = vmul.f32 0.7978846, %v96_v31  ;;  %v328_v33 = vpop.eup %327 }
  0x9a   :  { %v104_v37 = vadd.f32 1.0, %v328_v33 }
  0x9b   :  { %331 = vtanh.f32 %v99_v32 }
  0x9c   :  { %v107_v44 = vmul.f32 %v104_v37, %v83_v40  ;;  %333 = vrcp.f32 %v341_v2  ;;  %v325_v40 = vld [vmem:[%s450_s5] ss:$0 sm:$0xff] }
  0x9f   :  { %v330_v34 = vpop.eup %329 }
  0xa0   :  { %v106_v36 = vadd.f32 1.0, %v330_v34 }
  0xa1   :  { %v332_v38 = vpop.eup %331 }
  0xa2   :  { %v109_v39 = vmul.f32 %v106_v36, %v85_v35  ;;  %v105_v42 = vadd.f32 1.0, %v332_v38  ;;  %v334_v1 = vpop.eup %333 }
  0xa3   :  { %v189_v3 = vmul.f32 32.0, %v334_v1  ;;  %vm193_vm2 = vweird.f32 %v334_v1 }
  0xa4   :  { %v111_v43 = vpack.c.bf16 %v109_v39, %v109_v39  ;;  %v108_v45 = vmul.f32 %v105_v42, %v84_v41 }
  0xa5   :  { %v190_v4 = vsub.f32 1.0, %v189_v3 }
  0xa6   :  { %308 = vmatmul.msk.bf16.vlgmr.msra.gmra.mxu2 %vm148_vm1, %v111_v43  ;;  %v110_v46 = vpack.c.bf16 %v108_v45, %v107_v44  ;;  %v326_v43 = vld [vmem:[%s451_s6] ss:$0 sm:$0xff] }
  0xa7   :  { %v191_v5 = vmul.f32 %v334_v1, %v190_v4 }
  0xa8   :  { %307 = vmatmul.msk.bf16.vlgmr.msra.gmra.mxu1 %vm148_vm1, %v110_v46 }
  0xa9   :  { %v192_v6 = vadd.f32 %v334_v1, %v191_v5 }
  0xab   :  { %v194_v7 = vsel %vm193_vm2, %v334_v1, %v192_v6 }
 0x125   :  { %v164_v50 = vpop.f32.mrf.mxu1 }
 0x126   :  { %v165_v51 = vadd.f32 %v324_v48, %v164_v50 }
 0x128   :  { %v176_v52 = vadd.f32 %v173_v49, %v165_v51 }
 0x129   :  { %v169_v54 = vpop.f32.mrf.mxu2 }
 0x12a   :  { %v170_v55 = vadd.f32 %v324_v48, %v169_v54  ;;  %v179_v56 = vsel %vm58_vm0, %v176_v52, 0.0 }
 0x12b   :  { %180 = vadd.xlane.f32.xlu0 %v179_v56 }
 0x12c   :  { %v178_v57 = vadd.f32 %v175_v53, %v170_v55 }
 0x12d   :  { %v166_v59 = vpop.f32.mrf.mxu1 }
 0x12e   :  { %v167_v60 = vadd.f32 %v324_v48, %v166_v59  ;;  %v185_v61 = vsel %vm58_vm0, %v178_v57, 0.0 }
 0x12f   :  { %186 = vadd.xlane.f32.xlu1 %v185_v61 }
 0x130   :  { %v177_v62 = vadd.f32 %v174_v58, %v167_v60 }
 0x131   :  { %v171_v63 = vpop.f32.mrf.mxu2 }
 0x132   :  { %v182_v0 = vsel %vm58_vm0, %v177_v62, 0.0 }
 0x133   :  { %183 = vadd.xlane.f32.xlu0 %v182_v0 }
 0x19e   :  { %v181_v8 = vpop.xlane.xlu0 %180 }
 0x19f   :  { %v195_v9 = vmul.f32 %v194_v7, %v181_v8 }
 0x1a1   :  { %v198_v10 = vsub.f32 %v176_v52, %v195_v9 }
 0x1a2   :  { %v187_v13 = vpop.xlane.xlu1 %186 }
 0x1a3   :  { %v201_v11 = vmul.f32 %v198_v10, %v198_v10  ;;  %v197_v16 = vmul.f32 %v194_v7, %v187_v13 }
 0x1a5   :  { %v204_v12 = vsel %vm58_vm0, %v201_v11, 0.0  ;;  %v200_v19 = vsub.f32 %v178_v57, %v197_v16 }
 0x1a6   :  { %205 = vadd.xlane.f32.xlu1 %v204_v12  ;;  %v184_v14 = vpop.xlane.xlu0 %183 }
 0x1a7   :  { %v196_v15 = vmul.f32 %v194_v7, %v184_v14  ;;  %v203_v21 = vmul.f32 %v200_v19, %v200_v19 }
 0x1a9   :  { %v199_v17 = vsub.f32 %v177_v62, %v196_v15  ;;  %v210_v22 = vsel %vm58_vm0, %v203_v21, 0.0 }
 0x1ab   :  { %v202_v18 = vmul.f32 %v199_v17, %v199_v17 }
 0x1ad   :  { %v207_v20 = vsel %vm58_vm0, %v202_v18, 0.0 }
 0x1ae   :  { %208 = vadd.xlane.f32.xlu2 %v207_v20 }
 0x1b6   :  { %211 = vadd.xlane.f32.xlu2 %v210_v22 }
 0x219   :  { %v206_v23 = vpop.xlane.xlu1 %205 }
 0x21a   :  { %v213_v24 = vmul.f32 %v206_v23, %v194_v7 }
 0x21c   :  { %v216_v25 = vadd.f32 1e-12, %v213_v24 }
 0x21e   :  { %335 = vrsqrt.f32 %v216_v25  ;;  %vm225_vm4 = vweird.f32 %v216_v25 }
 0x221   :  { %v209_v26 = vpop.xlane.xlu2 %208 }
 0x222   :  { %v214_v27 = vmul.f32 %v209_v26, %v194_v7 }
 0x224   :  { %v336_v28 = vpop.eup %335  ;;  %v217_v29 = vadd.f32 1e-12, %v214_v27 }
 0x225   :  { %v220_v30 = vmul.f32 %v336_v28, %v216_v25  ;;  %vm226_vm3 = vweird.f32 %v336_v28 }
 0x226   :  { %337 = vrsqrt.f32 %v217_v29  ;;  %vm227_vm5 = vmor %vm225_vm4, %vm226_vm3  ;;  %vm235_vm8 = vweird.f32 %v217_v29 }
 0x227   :  { %v221_v31 = vmul.f32 %v336_v28, %v220_v30 }
 0x229   :  { %v222_v32 = vmul.f32 0.5, %v221_v31  ;;  %v212_v33 = vpop.xlane.xlu2 %211 }
 0x22a   :  { %v215_v34 = vmul.f32 %v212_v33, %v194_v7 }
 0x22b   :  { %v223_v35 = vsub.f32 1.5, %v222_v32 }
 0x22c   :  { %v338_v36 = vpop.eup %337  ;;  %v218_v37 = vadd.f32 1e-12, %v215_v34 }
 0x22d   :  { %v224_v38 = vmul.f32 %v336_v28, %v223_v35  ;;  %v230_v39 = vmul.f32 %v338_v36, %v217_v29  ;;  %vm236_vm6 = vweird.f32 %v338_v36 }
 0x22e   :  { %339 = vrsqrt.f32 %v218_v37  ;;  %vm237_vm9 = vmor %vm235_vm8, %vm236_vm6  ;;  %vm245_vm11 = vweird.f32 %v218_v37 }
 0x22f   :  { %v228_v41 = vsel %vm227_vm5, %v336_v28, %v224_v38  ;;  %v231_v42 = vmul.f32 %v338_v36, %v230_v39 }
 0x230   :  { %v249_v44 = vmul.f32 %v228_v41, %v198_v10 }
 0x231   :  { %v232_v45 = vmul.f32 0.5, %v231_v42 }
 0x232   :  { %v256_v46 = vmul.f32 %v325_v40, %v249_v44 }
 0x233   :  { %v233_v47 = vsub.f32 1.5, %v232_v45 }
 0x234   :  { %v340_v48 = vpop.eup %339  ;;  %v263_v49 = vadd.f32 %v326_v43, %v256_v46 }
 0x235   :  { %v234_v50 = vmul.f32 %v338_v36, %v233_v47  ;;  %v240_v51 = vmul.f32 %v340_v48, %v218_v37  ;;  %vm246_vm10 = vweird.f32 %v340_v48 }
 0x236   :  { %v266_v52 = vpack.c.bf16 %v263_v49, %v263_v49  ;;  %vm247_vm12 = vmor %vm245_vm11, %vm246_vm10 }
 0x237   :  { %v238_v53 = vsel %vm237_vm9, %v338_v36, %v234_v50  ;;  %v241_v54 = vmul.f32 %v340_v48, %v240_v51 }
 0x238   :  { %270 = vst.msk [vmem:[%s452_s7] sm:$0xf] %vm269_vm7, %v266_v52  ;;  %v250_v55 = vmul.f32 %v238_v53, %v199_v17 }
 0x239   :  { %v242_v56 = vmul.f32 0.5, %v241_v54 }
 0x23a   :  { %v257_v57 = vmul.f32 %v325_v40, %v250_v55 }
 0x23b   :  { %v243_v58 = vsub.f32 1.5, %v242_v56 }
 0x23c   :  { %v264_v59 = vadd.f32 %v326_v43, %v257_v57 }
 0x23d   :  { %v244_v60 = vmul.f32 %v340_v48, %v243_v58 }
 0x23e   :  { %v267_v61 = vpack.c.bf16 %v264_v59, %v264_v59 }
 0x23f   :  { %v248_v62 = vsel %vm247_vm12, %v340_v48, %v244_v60 }
 0x240   :  { %271 = vst.msk [vmem:[%s452_s7 + $0x4] sm:$0xf] %vm269_vm7, %v267_v61  ;;  %v251_v63 = vmul.f32 %v248_v62, %v200_v19 }
 0x242   :  { %v258_v0 = vmul.f32 %v325_v40, %v251_v63 }
 0x244   :  { %v265_v2 = vadd.f32 %v326_v43, %v258_v0 }
 0x246   :  { %v268_v1 = vpack.c.bf16 %v265_v2, %v265_v2 }
 0x248   :  { %272 = vst.msk [vmem:[%s452_s7 + $0x8] sm:$0xf] %vm269_vm7, %v268_v1 }

// kernel: spcpatchbert_forward.13
= control target key start
LH: loop header
LB: loop body
LE: loop exit
PB: predicated region body
PF: predicated region fallthrough
CT: control target
= control target key end

     0   :  { %v171_v1 = vmov 0   ;;  %s230_s0 = inlined_call_operand.vmem [shape: bf16[8,64], index: 0, kind: input, shape index: {}]   ;;  %s231_s1 = inlined_call_operand.vmem [shape: bf16[64,128], index: 1, kind: input, shape index: {}]   ;;  %s232_s2 = inlined_call_operand.vmem [shape: f32[1,128], index: 2, kind: input, shape index: {}]   ;;  %s233_s3 = inlined_call_operand.vmem [shape: f32[8,1], index: 3, kind: input, shape index: {}]   ;;  %s234_s4 = inlined_call_operand.vmem [shape: f32[8,1], index: 4, kind: input, shape index: {}]   ;;  %s235_s5 = inlined_call_operand.hbm [shape: f32[8,128], index: 5, kind: output, shape index: {}]  }
   0x1   :  { %v140_v0 = vld [vmem:[%s231_s1 + $0x18] sm:$0xff]  ;;  %143 = vset.pattern.permute.xlu0 %v171_v1  ;;  %v89_v2 = vld [vmem:[%s233_s3] sm:$0xff]  ;;  %v139_v3 = vld [vmem:[%s231_s1 + $0x10] sm:$0xff] }
   0x2   :  { %69 = vmatpush.bf16.msra.mxu0 %v140_v0  ;;  %92 = vperm.xlu0 %143, %v89_v2  }
   0x3   :  { %10 = vsyncpa [#allocation4], 0  ;;  %v138_v4 = vld [vmem:[%s231_s1 + $0x8] sm:$0xff]  ;;  %v96_v5 = vld [vmem:[%s234_s4] sm:$0xff]  ;;  %vm61_vm0 = vcmask 523264   ;;  %s172_s4 = smov [#allocation3]  }
   0x4   :  { %v137_v6 = vld [vmem:[%s231_s1] sm:$0xff]  ;;  %s109_s8 = sshll.u32 %s172_s4, 4  ;;  %s111_s1 = sshll.u32 %s235_s5, 4  ;;  %s110_s8 = int_to_ptr.vmem [resolvable:$true] %s109_s8  ;;  %s112_s1 = int_to_ptr.hbm [resolvable:$true] %s111_s1 }
   0x5   :  { %v28_v7 = vld [vmem:[%s230_s0] sm:$0xf] }
   0x6   :  { %70 = vmatpush.bf16.msra.mxu0 %v139_v3  ;;  %v144_v9 = vld [vmem:[%s232_s2] ss:$0 sm:$0xff] }
   0xa   :  { %71 = vmatpush.bf16.msra.mxu0 %v138_v4  ;;  %99 = vperm.xlu0 %143, %v96_v5  }
   0xe   :  { %72 = vmatpush.bf16.msra.mxu0 %v137_v6 }
  0x11   :  { %136 = vmatmul.msk.bf16.vlgmr.msra.gmra.mxu0 %vm61_vm0, %v28_v7 }
  0x74   :  { %v93_v8 = vpop.permute.xlu0 %92 }
  0x7c   :  { %v100_v13 = vpop.permute.xlu0 %99 }
  0x8e   :  { %v74_v10 = vpop.f32.mrf.mxu0 }
  0x8f   :  { %v88_v11 = vadd.f32 %v144_v9, %v74_v10 }
  0x91   :  { %v95_v12 = vmul.f32 %v93_v8, %v88_v11 }
  0x93   :  { %v102_v14 = vadd.f32 %v100_v13, %v95_v12 }
  0x95   :  { %103 = vst [vmem:[#allocation3] sm:$0xff] %v102_v14 }
  0x96   :  { %v76_v15 = vpop.f32.mrf.mxu0  ;;  %114 = dma.vmem_to_hbm [thread:$0]  %s110_s8, 128, %s112_s1, [#allocation4]  }
  0x97   :  { %169 = dma.done.wait [#allocation4], 128  }
  0x98   :  { %170 = vsyncadd [#allocation4], 4294967168 }
  0x99   :  { %119 = vsyncpa [#allocation4], 1 }

// kernel: spcpatchbert_forward.8
= control target key start
LH: loop header
LB: loop body
LE: loop exit
PB: predicated region body
PF: predicated region fallthrough
CT: control target
= control target key end

     0   :  { %s2539_s30 = smov 0   ;;  %s3295_s0 = inlined_call_operand.vmem [shape: bf16[8,3,32], index: 0, kind: input, shape index: {}]   ;;  %s3296_s1 = inlined_call_operand.vmem [shape: bf16[32,96], index: 1, kind: input, shape index: {}]   ;;  %s3297_s2 = inlined_call_operand.vmem [shape: f32[1,96], index: 2, kind: input, shape index: {}]   ;;  %s3298_s3 = inlined_call_operand.vmem [shape: bf16[32,32], index: 3, kind: input, shape index: {}]   ;;  %s3299_s4 = inlined_call_operand.vmem [shape: f32[1,32], index: 4, kind: input, shape index: {}]   ;;  %s3300_s5 = inlined_call_operand.vmem [shape: f32[1,32], index: 5, kind: input, shape index: {}]   ;;  %s3301_s6 = inlined_call_operand.vmem [shape: f32[1,32], index: 6, kind: input, shape index: {}]   ;;  %s3302_s7 = inlined_call_operand.vmem [shape: f32[8,3,128], index: 7, kind: input, shape index: {}]   ;;  %s3303_s8 = inlined_call_operand.vmem [shape: bf16[8,3,32], index: 8, kind: output, shape index: {0}]   ;;  %s3304_s9 = inlined_call_operand.vmem [shape: f32[8,3,128], index: 9, kind: output, shape index: {1}]  }
   0x1 LB: > { %s2294_s10 = sadd.s32 4294967295, %s2471_s30   ;;  %p2298_p0 = scmp.ge.s32.totalorder %s2471_s30, 1  ;;  %s2471_s30 = sphi %s2539_s30, %s20_s30  }
   0x2   : > { %p302_p1 = scmp.lt.s32.totalorder %s2471_s30, 3 }
   0x4   : > { %p303_p2 = pnand %p2298_p0, %p302_p1 }
   0x5   : > { %s2299_s13 = sshll.u32 (!%p303_p2), %s2294_s10, 2  ;;  %s2473_s22 = smov (!%p303_p2), 96  }
   0x6   : > { %306 = sbr.rel (%p303_p2) target bundleno = 2949 (0xb85), region = 52  ;;  %p349_p3 = scmp.lt.s32.totalorder (!%p303_p2), %s2299_s13, 7 }
   0x7   : > { %s2474_s23 = smov (!%p303_p2), 64   ;;  %s2476_s24 = smov (!%p303_p2), 88  }
   0x8   : > { %s2477_s25 = smov (!%p303_p2), 120   ;;  %s2478_s26 = smov (!%p303_p2), 56  }
   0x9   : > { %s2479_s27 = smov (!%p303_p2), 80   ;;  %s2480_s28 = smov (!%p303_p2), 112  }
   0xa   : > { %s2481_s29 = smov (!%p303_p2), 48   ;;  %s2482_s10 = smov (!%p303_p2), 72  }
   0xb   : > { %v2364_v0 = vld [vmem:[%s3296_s1 + $0x8] sm:$0xff]  ;;  %v2363_v1 = vld [vmem:[%s3296_s1] sm:$0xff]  ;;  %s3308_s13 = smov (!%p349_p3, %s2299_s13), 7  ;;  %vm393_vm0 = vcmask 1040384   ;;  %vm397_vm1 = vcmask 1042434   ;;  %vm401_vm2 = vcmask 1041408  }
   0xc   : > { %516 = vmatpush.bf16.msra.mxu0 %v2364_v0  ;;  %s2300_s16 = sshll.u32 %s3308_s13, 1  ;;  %vm404_vm3 = vcmask 1041409   ;;  %vm406_vm4 = vcmask 1043459   ;;  %vm408_vm5 = vcmask 1042433   ;;  %vm507_vm6 = vcmask 261120   ;;  %s2483_s11 = smov 104  }
   0xd   : > { %s352_s19 = scalar_lea.vmem %s3295_s0, %s2300_s16  ;;  %v2391_v53 = vld [vmem:[%s3297_s2] ss:$0 sm:$0xff]  ;;  %vm619_vm7 = vcmask 64512   ;;  %vm715_vm8 = vcmask 18432   ;;  %vm769_vm9 = vcmask 23552   ;;  %s2484_s12 = smov 40  }
   0xe   : > { %v373_v2 = vld [vmem:[%s352_s19] sm:$0x3]  ;;  %v374_v3 = vld [vmem:[%s352_s19 + $0x2] sm:$0x3]  ;;  %v375_v4 = vld [vmem:[%s352_s19 + $0x4] sm:$0x3] }
   0xf   : > { %v376_v5 = vld [vmem:[%s352_s19 + $0x6] sm:$0x3]  ;;  %v381_v6 = vrot.slane %v373_v2, 1  ;;  %v382_v7 = vrot.slane %v373_v2, 2  ;;  %v383_v8 = vrot.slane %v373_v2, 3  ;;  %v384_v9 = vrot.slane %v374_v3, 1  ;;  %s3270_s19 = scalar_lea.vmem %s3303_s8, %s2300_s16 }
  0x10   : > { %517 = vmatpush.bf16.msra.mxu0 %v2363_v1  ;;  %v385_v10 = vrot.slane %v374_v3, 2  ;;  %v386_v11 = vrot.slane %v374_v3, 3  ;;  %v387_v12 = vrot.slane %v375_v4, 1  ;;  %v388_v13 = vrot.slane %v375_v4, 2  ;;  %s2485_s14 = smov 8   ;;  %s2486_s15 = smov 16  }
  0x11   : > { %v389_v14 = vrot.slane %v375_v4, 3  ;;  %v390_v15 = vrot.slane %v376_v5, 1  ;;  %v391_v16 = vrot.slane %v376_v5, 2  ;;  %v392_v17 = vrot.slane %v376_v5, 3  ;;  %s2302_s17 = sshll.u32 %s3308_s13, 2 }
  0x12   : > { %v396_v18 = vsel %vm393_vm0, %v373_v2, %v381_v6  ;;  %v400_v19 = vsel %vm397_vm1, %v382_v7, %v383_v8  ;;  %v405_v20 = vsel %vm404_vm3, %v373_v2, %v381_v6  ;;  %v407_v21 = vsel %vm406_vm4, %v382_v7, %v383_v8  ;;  %s3191_s20 = scalar_lea.vmem %s3302_s7, %s2302_s17 }
  0x13   : > { %v2566_v22 = vsel %vm401_vm2, %v396_v18, %v400_v19  ;;  %v409_v23 = vsel %vm408_vm5, %v405_v20, %v407_v21  ;;  %v414_v24 = vsel %vm393_vm0, %v374_v3, %v384_v9  ;;  %v417_v25 = vsel %vm397_vm1, %v385_v10, %v386_v11 }
  0x14   : > { %v411_v26 = vrot.slane %v409_v23, 1  ;;  %v418_v27 = vsel %vm401_vm2, %v414_v24, %v417_v25  ;;  %v420_v28 = vsel %vm404_vm3, %v374_v3, %v384_v9  ;;  %v421_v29 = vsel %vm406_vm4, %v385_v10, %v386_v11  ;;  %478 = vst [vmem:[#allocation1] ss:$9 sm:$0xff] %v2566_v22 }
  0x15   : > { %v422_v30 = vsel %vm408_vm5, %v420_v28, %v421_v29  ;;  %v427_v31 = vsel %vm393_vm0, %v375_v4, %v387_v12  ;;  %v430_v32 = vsel %vm397_vm1, %v388_v13, %v389_v14  ;;  %v433_v33 = vsel %vm404_vm3, %v375_v4, %v387_v12 }
  0x16   : > { %v424_v34 = vrot.slane %v422_v30, 1  ;;  %v2580_v35 = vsel %vm401_vm2, %v427_v31, %v430_v32  ;;  %v434_v36 = vsel %vm406_vm4, %v388_v13, %v389_v14  ;;  %v440_v37 = vsel %vm393_vm0, %v376_v5, %v390_v15 }
  0x17   : > { %v435_v38 = vsel %vm408_vm5, %v433_v33, %v434_v36  ;;  %v443_v39 = vsel %vm397_vm1, %v391_v16, %v392_v17  ;;  %v446_v40 = vsel %vm404_vm3, %v376_v5, %v390_v15  ;;  %v447_v41 = vsel %vm406_vm4, %v391_v16, %v392_v17  ;;  %487 = vst [vmem:[#allocation1 + $0x3] ss:$9 sm:$0xff] %v2580_v35 }
  0x18   : > { %v437_v42 = vrot.slane %v435_v38, 1  ;;  %v444_v43 = vsel %vm401_vm2, %v440_v37, %v443_v39  ;;  %v448_v44 = vsel %vm408_vm5, %v446_v40, %v447_v41  ;;  %v455_v45 = vunpack.i.h.s16 %v418_v27 }
  0x19   : > { %v450_v46 = vrot.slane %v448_v44, 1  ;;  %v461_v47 = vunpack.i.h.s16 %v444_v43  ;;  %v2591_v48 = vpack.i.b16 %v418_v27, %v411_v26  ;;  %vm1953_vm10 = vcmask 130048  }
  0x1a   : > { %v2593_v49 = vpack.i.b16 %v424_v34, %v455_v45  ;;  %v2595_v50 = vpack.i.b16 %v444_v43, %v437_v42  ;;  %vm1958_vm11 = vcmask 195584   ;;  %vm2058_vm12 = vcmask 257024  }
  0x1b   : > { %v2597_v51 = vpack.i.b16 %v450_v46, %v461_v47  ;;  %481 = vst [vmem:[#allocation1 + $0x1] ss:$9 sm:$0xff] %v2591_v48  ;;  %vm2157_vm1 = vcmask 254976  }
  0x1c   : > { %484 = vst [vmem:[#allocation1 + $0x2] ss:$9 sm:$0xff] %v2593_v49 }
  0x1d   : > { %490 = vst [vmem:[#allocation1 + $0x4] ss:$9 sm:$0xff] %v2595_v50 }
  0x1e   : > { %493 = vst [vmem:[#allocation1 + $0x5] ss:$9 sm:$0xff] %v2597_v51 }
  0x25   : > { %v494_v52 = vld [vmem:[#allocation1] sm:$0xff] }
  0x26   : > { %2319 = vmatmul.msk.bf16.vlgmr.msra.gmra.mxu0 %vm507_vm6, %v494_v52  ;;  %v2475_v52 = vmov 65535  }
  0xa3   : > { %v519_v54 = vpop.f32.mrf.mxu0 }
  0xa4   : > { %v2607_v55 = vadd.f32 %v2391_v53, %v519_v54 }
  0xa6   : > { %v2610_v56 = vrot.slane %v2607_v55, 1  ;;  %v2613_v57 = vrot.slane %v2607_v55, 2  ;;  %536 = vst [vmem:[#allocation1] ss:$9 sm:$0xff] %v2607_v55  ;;  %v2619_v58 = vrot.slane %v2607_v55, 3  ;;  %v2622_v59 = vrot.slane %v2607_v55, 4 }
  0xa7   : > { %v2627_v61 = vrot.slane %v2607_v55, 5  ;;  %v2633_v63 = vrot.slane %v2607_v55, 6  ;;  %v2636_v0 = vrot.slane %v2607_v55, 7 }
  0xa8   : > { %538 = vst [vmem:[#allocation1 + $0x1] ss:$9 sm:$0xff] %v2610_v56 }
  0xa9   : > { %540 = vst [vmem:[#allocation1 + $0x2] ss:$9 sm:$0xff] %v2613_v57 }
  0xab   : > { %v521_v62 = vpop.f32.mrf.mxu0 }
  0xac   : > { %v2641_v2 = vadd.f32 %v2391_v53, %v521_v62  ;;  %v773_v53 = vsel %vm393_vm0, 4294967295, %v2475_v52 }
  0xad   : > { %v2754_v62 = vsel %vm401_vm2, %v773_v53, 0  ;;  %vm2158_vm2 = vsmask.f32 1280 }
  0xae   : > { %v2646_v3 = vrot.slane %v2641_v2, 1  ;;  %v2649_v4 = vrot.slane %v2641_v2, 2  ;;  %v2654_v6 = vrot.slane %v2641_v2, 3  ;;  %vm3272_vm3 = vmand %vm2157_vm1, %vm2158_vm2 }
  0xb0   : > { %v2624_v60 = vld [vmem:[#allocation1] sm:$0xff] }
  0xb1   : > { %542 = vst [vmem:[#allocation1] ss:$9 sm:$0xff] %v2619_v58  ;;  %v558_v44 = vpack.c.bf16 %v2624_v60, %v2624_v60 }
  0xb2   : > { %543 = vst [vmem:[#allocation1 + $0x1] ss:$9 sm:$0xff] %v2622_v59 }
  0xb3   : > { %544 = vst [vmem:[#allocation1 + $0x2] ss:$9 sm:$0xff] %v2627_v61 }
  0xba   : > { %v2638_v1 = vld [vmem:[#allocation1] sm:$0xff] }
  0xbb   : > { %546 = vst [vmem:[#allocation1] ss:$9 sm:$0xff] %v2633_v63  ;;  %v559_v54 = vpack.c.bf16 %v2638_v1, %v2638_v1 }
  0xbc   : > { %547 = vst [vmem:[#allocation1 + $0x1] ss:$9 sm:$0xff] %v2636_v0 }
  0xbd   : > { %548 = vst [vmem:[#allocation1 + $0x2] ss:$9 sm:$0xff] %v2641_v2 }
  0xc4   : > { %v2651_v5 = vld [vmem:[#allocation1] sm:$0xff] }
  0xc5   : > { %550 = vst [vmem:[#allocation1] ss:$9 sm:$0xff] %v2646_v3  ;;  %v560_v1 = vpack.c.bf16 %v2651_v5, %v2651_v5 }
  0xc6   : > { %551 = vst [vmem:[#allocation1 + $0x1] ss:$9 sm:$0xff] %v2649_v4 }
  0xc7   : > { %552 = vst [vmem:[#allocation1 + $0x2] ss:$9 sm:$0xff] %v2654_v6 }
  0xce   : > { %v2659_v7 = vld [vmem:[#allocation1] sm:$0xff] }
  0xcf   : > { %562 = vst [vmem:[#allocation1] ss:$9 sm:$0xff] %v2607_v55 }
  0xd0   : > { %564 = vst [vmem:[#allocation1 + $0x1] ss:$9 sm:$0xff] %v2610_v56 }
  0xd1   : > { %566 = vst [vmem:[#allocation1 + $0x2] ss:$9 sm:$0xff] %v2613_v57 }
  0xd8   : > { %v567_v8 = vld [vmem:[#allocation1] sm:$0xff] }
  0xd9   : > { %568 = vst [vmem:[#allocation1] ss:$9 sm:$0xff] %v2619_v58  ;;  %v584_v13 = vpack.c.bf16 %v567_v8, %v567_v8 }
  0xda   : > { %569 = vst [vmem:[#allocation1 + $0x1] ss:$9 sm:$0xff] %v2622_v59 }
  0xdb   : > { %570 = vst [vmem:[#allocation1 + $0x2] ss:$9 sm:$0xff] %v2627_v61  ;;  %v615_v14 = vunpack.c.l.b16 %v584_v13 }
  0xdd   : > { %v616_v15 = vpack.c.b16 %v615_v14, %v615_v14 }
  0xdf   : > { %617 = vrot.lane.b32.xlu1 %v616_v15, %s2473_s22 }
  0xe2   : > { %v571_v9 = vld [vmem:[#allocation1] sm:$0xff] }
  0xe3   : > { %572 = vst [vmem:[#allocation1] ss:$9 sm:$0xff] %v2633_v63  ;;  %v585_v16 = vpack.c.bf16 %v571_v9, %v571_v9 }
  0xe4   : > { %573 = vst [vmem:[#allocation1 + $0x1] ss:$9 sm:$0xff] %v2636_v0 }
  0xe5   : > { %574 = vst [vmem:[#allocation1 + $0x2] ss:$9 sm:$0xff] %v2641_v2  ;;  %v640_v18 = vunpack.c.l.b16 %v585_v16  ;;  %v561_v16 = vpack.c.bf16 %v2659_v7, %v2659_v7 }
  0xe7   : > { %v641_v19 = vpack.c.b16 %v640_v18, %v640_v18 }
  0xe9   : > { %642 = vrot.lane.b32.xlu0 %v641_v19, %s2473_s22 }
  0xec   : > { %v575_v10 = vld [vmem:[#allocation1] sm:$0xff] }
  0xed   : > { %576 = vst [vmem:[#allocation1] ss:$9 sm:$0xff] %v2646_v3  ;;  %v586_v20 = vpack.c.bf16 %v575_v10, %v575_v10 }
  0xee   : > { %577 = vst [vmem:[#allocation1 + $0x1] ss:$9 sm:$0xff] %v2649_v4 }
  0xef   : > { %578 = vst [vmem:[#allocation1 + $0x2] ss:$9 sm:$0xff] %v2654_v6  ;;  %v664_v21 = vunpack.c.l.b16 %v586_v20 }
  0xf1   : > { %v665_v24 = vpack.c.b16 %v664_v21, %v664_v21 }
  0xf3   : > { %666 = vrot.lane.b32.xlu0 %v665_v24, %s2473_s22 }
  0xf6   : > { %v579_v11 = vld [vmem:[#allocation1] sm:$0xff] }
  0xf7   : > { %588 = vst [vmem:[#allocation1] ss:$9 sm:$0xff] %v2607_v55  ;;  %v587_v25 = vpack.c.bf16 %v579_v11, %v579_v11 }
  0xf8   : > { %590 = vst [vmem:[#allocation1 + $0x1] ss:$9 sm:$0xff] %v2610_v56 }
  0xf9   : > { %592 = vst [vmem:[#allocation1 + $0x2] ss:$9 sm:$0xff] %v2613_v57  ;;  %v688_v26 = vunpack.c.l.b16 %v587_v25 }
  0xfb   : > { %v689_v27 = vpack.c.b16 %v688_v26, %v688_v26 }
  0xfd   : > { %690 = vrot.lane.b32.xlu1 %v689_v27, %s2473_s22 }
 0x100   : > { %v2676_v12 = vld [vmem:[#allocation1] sm:$0xff] }
 0x101   : > { %594 = vst [vmem:[#allocation1] ss:$9 sm:$0xff] %v2619_v58 }
 0x102   : > { %595 = vst [vmem:[#allocation1 + $0x1] ss:$9 sm:$0xff] %v2622_v59 }
 0x103   : > { %596 = vst [vmem:[#allocation1 + $0x2] ss:$9 sm:$0xff] %v2627_v61 }
 0x10a   : > { %v597_v17 = vld [vmem:[#allocation1] sm:$0xff] }
 0x10b   : > { %598 = vst [vmem:[#allocation1] ss:$9 sm:$0xff] %v2633_v63  ;;  %v611_v30 = vpack.c.bf16 %v597_v17, %v597_v17 }
 0x10c   : > { %599 = vst [vmem:[#allocation1 + $0x1] ss:$9 sm:$0xff] %v2636_v0 }
 0x10d   : > { %600 = vst [vmem:[#allocation1 + $0x2] ss:$9 sm:$0xff] %v2641_v2  ;;  %v792_v31 = vunpack.c.l.b16 %v611_v30 }
 0x10f   : > { %v793_v32 = vpack.c.b16 %v792_v31, %v792_v31 }
 0x111   : > { %794 = vrot.lane.b32.xlu2 %v793_v32, %s2474_s23 }
 0x114   : > { %v2684_v23 = vld [vmem:[#allocation1] sm:$0xff] }
 0x115   : > { %602 = vst [vmem:[#allocation1] ss:$9 sm:$0xff] %v2646_v3 }
 0x116   : > { %603 = vst [vmem:[#allocation1 + $0x1] ss:$9 sm:$0xff] %v2649_v4 }
 0x117   : > { %604 = vst [vmem:[#allocation1 + $0x2] ss:$9 sm:$0xff] %v2654_v6 }
 0x11e   : > { %v2689_v28 = vld [vmem:[#allocation1] sm:$0xff] }
 0x11f   : > { %863 = vst [vmem:[#allocation1] ss:$9 sm:$0xff] %v2607_v55 }
 0x120   : > { %865 = vst [vmem:[#allocation1 + $0x1] ss:$9 sm:$0xff] %v2610_v56 }
 0x121   : > { %867 = vst [vmem:[#allocation1 + $0x2] ss:$9 sm:$0xff] %v2613_v57 }
 0x128   : > { %v2694_v29 = vld [vmem:[#allocation1] sm:$0xff] }
 0x129   : > { %869 = vst [vmem:[#allocation1] ss:$9 sm:$0xff] %v2619_v58 }
 0x12a   : > { %870 = vst [vmem:[#allocation1 + $0x1] ss:$9 sm:$0xff] %v2622_v59 }
 0x12b   : > { %871 = vst [vmem:[#allocation1 + $0x2] ss:$9 sm:$0xff] %v2627_v61 }
 0x132   : > { %v2700_v33 = vld [vmem:[#allocation1] sm:$0xff] }
 0x133   : > { %873 = vst [vmem:[#allocation1] ss:$9 sm:$0xff] %v2633_v63 }
 0x134   : > { %874 = vst [vmem:[#allocation1 + $0x1] ss:$9 sm:$0xff] %v2636_v0 }
 0x135   : > { %875 = vst [vmem:[#allocation1 + $0x2] ss:$9 sm:$0xff] %v2641_v2 }
 0x13c   : > { %v2705_v34 = vld [vmem:[#allocation1] sm:$0xff] }
 0x13d   : > { %877 = vst [vmem:[#allocation1] ss:$9 sm:$0xff] %v2646_v3 }
 0x13e   : > { %878 = vst [vmem:[#allocation1 + $0x1] ss:$9 sm:$0xff] %v2649_v4 }
 0x13f   : > { %879 = vst [vmem:[#allocation1 + $0x2] ss:$9 sm:$0xff] %v2654_v6 }
 0x146   : > { %v2710_v36 = vld [vmem:[#allocation1] sm:$0xff] }
 0x147   : > { %889 = vst [vmem:[#allocation1] ss:$9 sm:$0xff] %v2607_v55 }
 0x148   : > { %891 = vst [vmem:[#allocation1 + $0x1] ss:$9 sm:$0xff] %v2610_v56 }
 0x149   : > { %893 = vst [vmem:[#allocation1 + $0x2] ss:$9 sm:$0xff] %v2613_v57 }
 0x150   : > { %v2715_v37 = vld [vmem:[#allocation1] sm:$0xff] }
 0x151   : > { %895 = vst [vmem:[#allocation1] ss:$9 sm:$0xff] %v2619_v58  ;;  %v618_v42 = vpop.permute.xlu1 %617 }
 0x152   : > { %896 = vst [vmem:[#allocation1 + $0x1] ss:$9 sm:$0xff] %v2622_v59  ;;  %v624_v43 = vsel %vm619_vm7, %v618_v42, 0 }
 0x153   : > { %897 = vst [vmem:[#allocation1 + $0x2] ss:$9 sm:$0xff] %v2627_v61  ;;  %633 = vmatpush.bf16.xpose.msra.mxu1 %v624_v43 }
 0x15a   : > { %v2720_v38 = vld [vmem:[#allocation1] sm:$0xff]  ;;  %2320 = vmatmul.msk.bf16.vlgmr.msra.gmra.mxu1 %vm619_vm7, %v558_v44 }
 0x15b   : > { %899 = vst [vmem:[#allocation1] ss:$9 sm:$0xff] %v2633_v63  ;;  %v643_v45 = vpop.permute.xlu0 %642  ;;  %v912_v44 = vpack.c.bf16 %v2720_v38, %v2720_v38  ;;  %v886_v38 = vpack.c.bf16 %v2700_v33, %v2700_v33 }
 0x15c   : > { %900 = vst [vmem:[#allocation1 + $0x1] ss:$9 sm:$0xff] %v2636_v0  ;;  %v648_v47 = vsel %vm619_vm7, %v643_v45, 0 }
 0x15d   : > { %901 = vst [vmem:[#allocation1 + $0x2] ss:$9 sm:$0xff] %v2641_v2  ;;  %657 = vmatpush.bf16.xpose.msra.mxu2 %v648_v47  ;;  %v976_v53 = vunpack.c.l.b16 %v912_v44 }
 0x164   : > { %v2725_v39 = vld [vmem:[#allocation1] sm:$0xff]  ;;  %2321 = vmatmul.msk.bf16.vlgmr.msra.gmra.mxu2 %vm619_vm7, %v559_v54 }
 0x165   : > { %903 = vst [vmem:[#allocation1] ss:$9 sm:$0xff] %v2646_v3  ;;  %v667_v60 = vpop.permute.xlu0 %666 }
 0x166   : > { %904 = vst [vmem:[#allocation1 + $0x1] ss:$9 sm:$0xff] %v2649_v4  ;;  %v672_v10 = vsel %vm619_vm7, %v667_v60, 0 }
 0x167   : > { %905 = vst [vmem:[#allocation1 + $0x2] ss:$9 sm:$0xff] %v2654_v6  ;;  %681 = vmatpush.bf16.xpose.msra.mxu3 %v672_v10 }
 0x16b   : > { %v795_v8 = vpop.permute.xlu2 %794 }
 0x16c   : > { %v800_v9 = vand.u32 %v795_v8, %v2754_v62  ;;  %v977_v8 = vpack.c.b16 %v976_v53, %v976_v53 }
 0x16e   : > { %v2730_v40 = vld [vmem:[#allocation1] sm:$0xff]  ;;  %809 = vmatpush.bf16.msrb.mxu2 %v800_v9  ;;  %2322 = vmatmul.msk.bf16.vlgmr.msra.gmra.mxu3 %vm619_vm7, %v560_v1 }
 0x16f   : > { %915 = vst [vmem:[#allocation1] ss:$9 sm:$0xff] %v2607_v55  ;;  %v691_v13 = vpop.permute.xlu1 %690 }
 0x170   : > { %917 = vst [vmem:[#allocation1 + $0x1] ss:$9 sm:$0xff] %v2610_v56  ;;  %v696_v14 = vsel %vm619_vm7, %v691_v13, 0 }
 0x171   : > { %919 = vst [vmem:[#allocation1 + $0x2] ss:$9 sm:$0xff] %v2613_v57  ;;  %705 = vmatpush.bf16.xpose.msrb.mxu0 %v696_v14 }
 0x178   : > { %v2735_v41 = vld [vmem:[#allocation1] sm:$0xff]  ;;  %2323 = vmatmul.msk.bf16.vlgmr.msrb.gmra.mxu0 %vm619_vm7, %v561_v16  ;;  %v971_v16 = vunpack.c.l.b16 %v886_v38 }
 0x179   : > { %921 = vst [vmem:[#allocation1] ss:$9 sm:$0xff] %v2619_v58 }
 0x17a   : > { %922 = vst [vmem:[#allocation1 + $0x1] ss:$9 sm:$0xff] %v2622_v59 }
 0x17b   : > { %923 = vst [vmem:[#allocation1 + $0x2] ss:$9 sm:$0xff] %v2627_v61 }
 0x182   : > { %v2743_v46 = vld [vmem:[#allocation1] sm:$0xff] }
 0x183   : > { %925 = vst [vmem:[#allocation1] ss:$9 sm:$0xff] %v2633_v63 }
 0x184   : > { %926 = vst [vmem:[#allocation1 + $0x1] ss:$9 sm:$0xff] %v2636_v0 }
 0x185   : > { %927 = vst [vmem:[#allocation1 + $0x2] ss:$9 sm:$0xff] %v2641_v2 }
 0x18c   : > { %v2759_v11 = vld [vmem:[#allocation1] sm:$0xff] }
 0x18d   : > { %929 = vst [vmem:[#allocation1] ss:$9 sm:$0xff] %v2646_v3 }
 0x18e   : > { %930 = vst [vmem:[#allocation1 + $0x1] ss:$9 sm:$0xff] %v2649_v4 }
 0x18f   : > { %931 = vst [vmem:[#allocation1 + $0x2] ss:$9 sm:$0xff] %v2654_v6 }
 0x196   : > { %v2768_v15 = vld [vmem:[#allocation1] sm:$0xff] }
 0x197   : > { %1209 = vst [vmem:[#allocation1] ss:$9 sm:$0xff] %v2607_v55 }
 0x198   : > { %1211 = vst [vmem:[#allocation1 + $0x1] ss:$9 sm:$0xff] %v2610_v56 }
 0x199   : > { %1213 = vst [vmem:[#allocation1 + $0x2] ss:$9 sm:$0xff] %v2613_v57 }
 0x1a0   : > { %v2776_v5 = vld [vmem:[#allocation1] sm:$0xff] }
 0x1a1   : > { %1215 = vst [vmem:[#allocation1] ss:$9 sm:$0xff] %v2619_v58 }
 0x1a2   : > { %1216 = vst [vmem:[#allocation1 + $0x1] ss:$9 sm:$0xff] %v2622_v59 }
 0x1a3   : > { %1217 = vst [vmem:[#allocation1 + $0x2] ss:$9 sm:$0xff] %v2627_v61 }
 0x1aa   : > { %v2781_v17 = vld [vmem:[#allocation1] sm:$0xff] }
 0x1ab   : > { %1219 = vst [vmem:[#allocation1] ss:$9 sm:$0xff] %v2633_v63 }
 0x1ac   : > { %1220 = vst [vmem:[#allocation1 + $0x1] ss:$9 sm:$0xff] %v2636_v0 }
 0x1ad   : > { %1221 = vst [vmem:[#allocation1 + $0x2] ss:$9 sm:$0xff] %v2641_v2 }
 0x1b4   : > { %v2786_v7 = vld [vmem:[#allocation1] sm:$0xff] }
 0x1b5   : > { %1223 = vst [vmem:[#allocation1] ss:$9 sm:$0xff] %v2646_v3 }
 0x1b6   : > { %1224 = vst [vmem:[#allocation1 + $0x1] ss:$9 sm:$0xff] %v2649_v4 }
 0x1b7   : > { %1225 = vst [vmem:[#allocation1 + $0x2] ss:$9 sm:$0xff] %v2654_v6 }
 0x1be   : > { %v2791_v18 = vld [vmem:[#allocation1] sm:$0xff] }
 0x1bf   : > { %1235 = vst [vmem:[#allocation1] ss:$9 sm:$0xff] %v2607_v55 }
 0x1c0   : > { %1237 = vst [vmem:[#allocation1 + $0x1] ss:$9 sm:$0xff] %v2610_v56 }
 0x1c1   : > { %1239 = vst [vmem:[#allocation1 + $0x2] ss:$9 sm:$0xff] %v2613_v57 }
 0x1c8   : > { %v2796_v19 = vld [vmem:[#allocation1] sm:$0xff] }
 0x1c9   : > { %1241 = vst [vmem:[#allocation1] ss:$9 sm:$0xff] %v2619_v58 }
 0x1ca   : > { %1242 = vst [vmem:[#allocation1 + $0x1] ss:$9 sm:$0xff] %v2622_v59 }
 0x1cb   : > { %1243 = vst [vmem:[#allocation1 + $0x2] ss:$9 sm:$0xff] %v2627_v61 }
 0x1d2   : > { %v2801_v20 = vld [vmem:[#allocation1] sm:$0xff] }
 0x1d3   : > { %1245 = vst [vmem:[#allocation1] ss:$9 sm:$0xff] %v2633_v63 }
 0x1d4   : > { %1246 = vst [vmem:[#allocation1 + $0x1] ss:$9 sm:$0xff] %v2636_v0 }
 0x1d5   : > { %1247 = vst [vmem:[#allocation1 + $0x2] ss:$9 sm:$0xff] %v2641_v2 }
 0x1d7   : > { %v635_v27 = vpop.f32.mrf.mxu1 }
 0x1d8   : > { %v2826_v30 = vmul.f32 0.35355338, %v635_v27 }
 0x1da   : > { %v716_v31 = vsel %vm715_vm8, %v2826_v30, -inf }
 0x1db   : > { %717 = vmax.xlane.f32.xlu0 %v716_v31  ;;  %v972_v31 = vpack.c.b16 %v971_v16, %v971_v16 }
 0x1dc   : > { %v2806_v21 = vld [vmem:[#allocation1] sm:$0xff] }
 0x1dd   : > { %1249 = vst [vmem:[#allocation1] ss:$9 sm:$0xff] %v2646_v3 }
 0x1de   : > { %1250 = vst [vmem:[#allocation1 + $0x1] ss:$9 sm:$0xff] %v2649_v4 }
 0x1df   : > { %1251 = vst [vmem:[#allocation1 + $0x2] ss:$9 sm:$0xff] %v2654_v6  ;;  %v637_v42 = vpop.f32.mrf.mxu1 }
 0x1e0   : > { %v610_v42 = vpack.c.bf16 %v2676_v12, %v2676_v12 }
 0x1e2   : > { %v765_v44 = vunpack.c.l.b16 %v610_v42 }
 0x1e4   : > { %v766_v53 = vpack.c.b16 %v765_v44, %v765_v44  ;;  %v888_v44 = vpack.c.bf16 %v2710_v36, %v2710_v36 }
 0x1e6   : > { %v2811_v24 = vld [vmem:[#allocation1] sm:$0xff] }
 0x1e7   : > { %1261 = vst [vmem:[#allocation1] ss:$9 sm:$0xff] %v2607_v55  ;;  %v659_v43 = vpop.f32.mrf.mxu2 }
 0x1e8   : > { %1263 = vst [vmem:[#allocation1 + $0x1] ss:$9 sm:$0xff] %v2610_v56  ;;  %v2839_v47 = vmul.f32 0.35355338, %v659_v43 }
 0x1e9   : > { %1265 = vst [vmem:[#allocation1 + $0x2] ss:$9 sm:$0xff] %v2613_v57 }
 0x1ea   : > { %v719_v52 = vsel %vm715_vm8, %v2839_v47, -inf }
 0x1eb   : > { %720 = vmax.xlane.f32.xlu2 %v719_v52 }
 0x1ef   : > { %v661_v54 = vpop.f32.mrf.mxu2  ;;  %978 = vrot.lane.b32.xlu0 %v977_v8, %s2476_s24 }
 0x1f0   : > { %v2816_v25 = vld [vmem:[#allocation1] sm:$0xff]  ;;  %v613_v54 = vpack.c.bf16 %v2689_v28, %v2689_v28 }
 0x1f1   : > { %1267 = vst [vmem:[#allocation1] ss:$9 sm:$0xff] %v2619_v58  ;;  %v683_v60 = vpop.f32.mrf.mxu3 }
 0x1f2   : > { %1268 = vst [vmem:[#allocation1 + $0x1] ss:$9 sm:$0xff] %v2622_v59  ;;  %v2848_v9 = vmul.f32 0.35355338, %v683_v60  ;;  %v840_v12 = vunpack.c.l.b16 %v613_v54  ;;  %v913_v60 = vpack.c.bf16 %v2725_v39, %v2725_v39  ;;  %v887_v39 = vpack.c.bf16 %v2705_v34, %v2705_v34 }
 0x1f3   : > { %1269 = vst [vmem:[#allocation1 + $0x2] ss:$9 sm:$0xff] %v2627_v61 }
 0x1f4   : > { %v722_v14 = vsel %vm715_vm8, %v2848_v9, -inf  ;;  %v841_v38 = vpack.c.b16 %v840_v12, %v840_v12 }
 0x1f5   : > { %v707_v10 = vpop.f32.mrf.mxu0  ;;  %723 = vmax.xlane.f32.xlu2 %v722_v14  ;;  %v1005_v14 = vunpack.c.l.b16 %v913_v60 }
 0x1f6   : > { %v2853_v13 = vmul.f32 0.35355338, %v707_v10  ;;  %v911_v10 = vpack.c.bf16 %v2715_v37, %v2715_v37  ;;  %v1000_v37 = vunpack.c.l.b16 %v887_v39 }
 0x1f7   : > { %973 = vrot.lane.b32.xlu0 %v972_v31, %s2477_s25  ;;  %v1006_v16 = vpack.c.b16 %v1005_v14, %v1005_v14 }
 0x1f8   : > { %v725_v33 = vsel %vm715_vm8, %v2853_v13, -inf  ;;  %v947_v28 = vunpack.c.l.b16 %v911_v10 }
 0x1f9   : > { %726 = vmax.xlane.f32.xlu1 %v725_v33  ;;  %v685_v27 = vpop.f32.mrf.mxu3 }
 0x1fa   : > { %v2821_v26 = vld [vmem:[#allocation1] sm:$0xff]  ;;  %v948_v33 = vpack.c.b16 %v947_v28, %v947_v28  ;;  %v914_v27 = vpack.c.bf16 %v2730_v40, %v2730_v40 }
 0x1fb   : > { %1271 = vst [vmem:[#allocation1] ss:$9 sm:$0xff] %v2633_v63 }
 0x1fc   : > { %1272 = vst [vmem:[#allocation1 + $0x1] ss:$9 sm:$0xff] %v2636_v0  ;;  %v1034_v42 = vunpack.c.l.b16 %v914_v27 }
 0x1fd   : > { %1273 = vst [vmem:[#allocation1 + $0x2] ss:$9 sm:$0xff] %v2641_v2  ;;  %v709_v43 = vpop.f32.mrf.mxu0 }
 0x1fe   : > { %v1001_v43 = vpack.c.b16 %v1000_v37, %v1000_v37  ;;  %v1035_v34 = vpack.c.b16 %v1034_v42, %v1034_v42 }
 0x1ff   : > { %767 = vrot.lane.b32.xlu0 %v766_v53, %s2474_s23  ;;  %v1029_v53 = vunpack.c.l.b16 %v888_v44 }
 0x201   : > { %v1030_v54 = vpack.c.b16 %v1029_v53, %v1029_v53 }
 0x204   : > { %v2830_v32 = vld [vmem:[#allocation1] sm:$0xff] }
 0x205   : > { %1275 = vst [vmem:[#allocation1] ss:$9 sm:$0xff] %v2646_v3 }
 0x206   : > { %1276 = vst [vmem:[#allocation1 + $0x1] ss:$9 sm:$0xff] %v2649_v4 }
 0x207   : > { %1277 = vst [vmem:[#allocation1 + $0x2] ss:$9 sm:$0xff] %v2654_v6  ;;  %842 = vrot.lane.b32.xlu0 %v841_v38, %s2474_s23 }
 0x20e   : > { %v2837_v45 = vld [vmem:[#allocation1] sm:$0xff] }
 0x20f   : > { %1555 = vst [vmem:[#allocation1] ss:$9 sm:$0xff] %v2607_v55  ;;  %949 = vrot.lane.b32.xlu0 %v948_v33, %s2476_s24 }
 0x210   : > { %1557 = vst [vmem:[#allocation1 + $0x1] ss:$9 sm:$0xff] %v2610_v56 }
 0x211   : > { %1559 = vst [vmem:[#allocation1 + $0x2] ss:$9 sm:$0xff] %v2613_v57 }
 0x212   : > { %1007 = vrot.lane.b32.xlu1 %v1006_v16, %s2476_s24 }
 0x217   : > { %1036 = vrot.lane.b32.xlu0 %v1035_v34, %s2476_s24  ;;  %v612_v34 = vpack.c.bf16 %v2684_v23, %v2684_v23  ;;  %v885_v23 = vpack.c.bf16 %v2694_v29, %v2694_v29  ;;  %s2487_s24 = smov 24  }
 0x218   : > { %v2851_v1 = vld [vmem:[#allocation1] sm:$0xff] }
 0x219   : > { %1561 = vst [vmem:[#allocation1] ss:$9 sm:$0xff] %v2619_v58 }
 0x21a   : > { %1562 = vst [vmem:[#allocation1 + $0x1] ss:$9 sm:$0xff] %v2622_v59  ;;  %1002 = vrot.lane.b32.xlu1 %v1001_v43, %s2477_s25 }
 0x21b   : > { %1563 = vst [vmem:[#allocation1 + $0x2] ss:$9 sm:$0xff] %v2627_v61 }
 0x21f   : > { %1031 = vrot.lane.b32.xlu0 %v1030_v54, %s2477_s25  ;;  %v816_v54 = vunpack.c.l.b16 %v612_v34 }
 0x222   : > { %v2865_v52 = vld [vmem:[#allocation1] sm:$0xff] }
 0x223   : > { %1565 = vst [vmem:[#allocation1] ss:$9 sm:$0xff] %v2633_v63 }
 0x224   : > { %1566 = vst [vmem:[#allocation1 + $0x1] ss:$9 sm:$0xff] %v2636_v0 }
 0x225   : > { %1567 = vst [vmem:[#allocation1 + $0x2] ss:$9 sm:$0xff] %v2641_v2 }
 0x22c   : > { %v2875_v8 = vld [vmem:[#allocation1] sm:$0xff] }
 0x22d   : > { %1569 = vst [vmem:[#allocation1] ss:$9 sm:$0xff] %v2646_v3 }
 0x22e   : > { %1570 = vst [vmem:[#allocation1 + $0x1] ss:$9 sm:$0xff] %v2649_v4 }
 0x22f   : > { %1571 = vst [vmem:[#allocation1 + $0x2] ss:$9 sm:$0xff] %v2654_v6 }
 0x236   : > { %v2888_v31 = vld [vmem:[#allocation1] sm:$0xff] }
 0x237   : > { %1581 = vst [vmem:[#allocation1] ss:$9 sm:$0xff] %v2607_v55 }
 0x238   : > { %1583 = vst [vmem:[#allocation1 + $0x1] ss:$9 sm:$0xff] %v2610_v56 }
 0x239   : > { %1585 = vst [vmem:[#allocation1 + $0x2] ss:$9 sm:$0xff] %v2613_v57 }
 0x240   : > { %v2898_v40 = vld [vmem:[#allocation1] sm:$0xff] }
 0x241   : > { %1587 = vst [vmem:[#allocation1] ss:$9 sm:$0xff] %v2619_v58 }
 0x242   : > { %1588 = vst [vmem:[#allocation1 + $0x1] ss:$9 sm:$0xff] %v2622_v59 }
 0x243   : > { %1589 = vst [vmem:[#allocation1 + $0x2] ss:$9 sm:$0xff] %v2627_v61 }
 0x24a   : > { %v2904_v12 = vld [vmem:[#allocation1] sm:$0xff] }
 0x24b   : > { %1591 = vst [vmem:[#allocation1] ss:$9 sm:$0xff] %v2633_v63 }
 0x24c   : > { %1592 = vst [vmem:[#allocation1 + $0x1] ss:$9 sm:$0xff] %v2636_v0 }
 0x24d   : > { %1593 = vst [vmem:[#allocation1 + $0x2] ss:$9 sm:$0xff] %v2641_v2 }
 0x254   : > { %v2909_v36 = vld [vmem:[#allocation1] sm:$0xff] }
 0x255   : > { %1595 = vst [vmem:[#allocation1] ss:$9 sm:$0xff] %v2646_v3 }
 0x256   : > { %1596 = vst [vmem:[#allocation1 + $0x1] ss:$9 sm:$0xff] %v2649_v4 }
 0x257   : > { %1597 = vst [vmem:[#allocation1 + $0x2] ss:$9 sm:$0xff] %v2654_v6 }
 0x25e   : > { %v2914_v60 = vld [vmem:[#allocation1] sm:$0xff] }
 0x25f   : > { %1607 = vst [vmem:[#allocation1] ss:$9 sm:$0xff] %v2607_v55 }
 0x260   : > { %1609 = vst [vmem:[#allocation1 + $0x1] ss:$9 sm:$0xff] %v2610_v56  ;;  %v718_v56 = vpop.xlane.xlu0 %717 }
 0x261   : > { %1611 = vst [vmem:[#allocation1 + $0x2] ss:$9 sm:$0xff] %v2613_v57  ;;  %v721_v57 = vpop.xlane.xlu2 %720 }
 0x268   : > { %v2919_v38 = vld [vmem:[#allocation1] sm:$0xff] }
 0x269   : > { %1613 = vst [vmem:[#allocation1] ss:$9 sm:$0xff] %v2619_v58  ;;  %v729_v58 = vsub.f32 %v2839_v47, %v721_v57  ;;  %v817_v57 = vpack.c.b16 %v816_v54, %v816_v54 }
 0x26a   : > { %1614 = vst [vmem:[#allocation1 + $0x1] ss:$9 sm:$0xff] %v2622_v59 }
 0x26b   : > { %1615 = vst [vmem:[#allocation1 + $0x2] ss:$9 sm:$0xff] %v2627_v61  ;;  %v734_v59 = vmul.f32 1.442695, %v729_v58  ;;  %v979_v61 = vpop.permute.xlu0 %978 }
 0x26c   : > { %v727_v14 = vpop.xlane.xlu1 %726 }
 0x26d   : > { %2395 = vpow2.f32 %v734_v59 }
 0x272   : > { %v2924_v10 = vld [vmem:[#allocation1] sm:$0xff] }
 0x273   : > { %1617 = vst [vmem:[#allocation1] ss:$9 sm:$0xff] %v2633_v63  ;;  %v984_v63 = vsel %vm619_vm7, %v979_v61, 0  ;;  %v2396_v28 = vpop.eup %2395  ;;  %v974_v47 = vpop.permute.xlu0 %973  ;;  %v728_v61 = vsub.f32 %v2826_v30, %v718_v56 }
 0x274   : > { %1618 = vst [vmem:[#allocation1 + $0x1] ss:$9 sm:$0xff] %v2636_v0  ;;  %993 = vmatpush.bf16.xpose.msra.mxu2 %v984_v63  ;;  %v724_v0 = vpop.xlane.xlu2 %723 }
 0x275   : > { %1619 = vst [vmem:[#allocation1 + $0x2] ss:$9 sm:$0xff] %v2641_v2  ;;  %v730_v2 = vsub.f32 %v2848_v9, %v724_v0  ;;  %v732_v63 = vmul.f32 1.442695, %v728_v61 }
 0x27b   : > { %v768_v37 = vpop.permute.xlu0 %767 }
 0x27c   : > { %v2929_v55 = vld [vmem:[#allocation1] sm:$0xff]  ;;  %v776_v9 = vand.u32 %v2754_v62, %v768_v37 }
 0x27d   : > { %1621 = vst [vmem:[#allocation1] ss:$9 sm:$0xff] %v2646_v3  ;;  %v736_v3 = vmul.f32 1.442695, %v730_v2 }
 0x27e   : > { %1622 = vst [vmem:[#allocation1 + $0x1] ss:$9 sm:$0xff] %v2649_v4  ;;  %v731_v4 = vsub.f32 %v2853_v13, %v727_v14  ;;  %785 = vmatpush.bf16.msrb.mxu1 %v776_v9  ;;  %v942_v14 = vunpack.c.l.b16 %v885_v23 }
 0x27f   : > { %1623 = vst [vmem:[#allocation1 + $0x2] ss:$9 sm:$0xff] %v2654_v6  ;;  %v743_v6 = vsel %vm715_vm8, %v2396_v28, 0.0  ;;  %2397 = vpow2.f32 %v736_v3 }
 0x280   : > { %v738_v16 = vmul.f32 1.442695, %v731_v4  ;;  %744 = vadd.xlane.f32.xlu2 %v743_v6  ;;  %v943_v3 = vpack.c.b16 %v942_v14, %v942_v14 }
 0x282   : > { %2399 = vpow2.f32 %v738_v16 }
 0x283   : > { %v843_v13 = vpop.permute.xlu0 %842  ;;  %2401 = vpow2.f32 %v732_v63 }
 0x284   : > { %v848_v43 = vand.u32 %v843_v13, %v2754_v62  ;;  %v1008_v4 = vpop.permute.xlu1 %1007 }
 0x285   : > { %v2398_v39 = vpop.eup %2397 }
 0x286   : > { %v746_v33 = vsel %vm715_vm8, %v2398_v39, 0.0  ;;  %857 = vmatpush.bf16.msra.mxu0 %v848_v43 }
 0x288   : > { %v2400_v27 = vpop.eup %2399  ;;  %747 = vadd.xlane.f32.xlu2 %v746_v33 }
 0x289   : > { %v749_v42 = vsel %vm715_vm8, %v2400_v27, 0.0  ;;  %v2402_v0 = vpop.eup %2401 }
 0x28a   : > { %750 = vadd.xlane.f32.xlu1 %v749_v42  ;;  %v740_v2 = vsel %vm715_vm8, %v2402_v0, 0.0 }
 0x28b   : > { %v950_v44 = vpop.permute.xlu0 %949 }
 0x28c   : > { %v955_v53 = vsel %vm619_vm7, %v950_v44, 0  ;;  %v1003_v16 = vpop.permute.xlu1 %1002 }
 0x28d   : > { %964 = vmatpush.bf16.xpose.msra.mxu1 %v955_v53 }
 0x293   : > { %v1037_v58 = vpop.permute.xlu0 %1036 }
 0x294   : > { %v1042_v59 = vsel %vm619_vm7, %v1037_v58, 0 }
 0x295   : > { %1051 = vmatpush.bf16.xpose.msrb.mxu0 %v1042_v59 }
 0x2a0   : > { %818 = vrot.lane.b32.xlu2 %v817_v57, %s2474_s23  ;;  %s3199_s23 = scalar_lea.vmem %s3304_s9, %s2302_s17 }
 0x2c9   : > { %741 = vadd.xlane.f32.xlu2 %v740_v2 }
 0x2e1   : > { %944 = vrot.lane.b32.xlu2 %v943_v3, %s2477_s25 }
 0x2f3   : > { %v745_v6 = vpop.xlane.xlu2 %744 }
 0x2f4   : > { %2403 = vrcp.f32 %v745_v6 }
 0x2fa   : > { %v2404_v33 = vpop.eup %2403 }
 0x2fb   : > { %v2953_v37 = vmul.f32 %v2404_v33, %v2396_v28  ;;  %v748_v30 = vpop.xlane.xlu2 %747  ;;  %v1013_v28 = vsel %vm619_vm7, %v1008_v4, 0 }
 0x2fc   : > { %2405 = vrcp.f32 %v748_v30 }
 0x2fd   : > { %v751_v56 = vpop.xlane.xlu1 %750  ;;  %v761_v9 = vpack.c.bf16 %v2953_v37, %v2953_v37 }
 0x2fe   : > { %2407 = vrcp.f32 %v751_v56 }
 0x2ff   : > { %2325 = vmatmul.msk.bf16.vlgmr.msrb.gmra.mxu2 %vm769_vm9, %v761_v9 }
 0x302   : > { %v2406_v29 = vpop.eup %2405 }
 0x303   : > { %v2958_v42 = vmul.f32 %v2406_v29, %v2398_v39  ;;  %v819_v13 = vpop.permute.xlu2 %818  ;;  %v1032_v39 = vpop.permute.xlu0 %1031 }
 0x304   : > { %v2408_v43 = vpop.eup %2407  ;;  %v824_v34 = vand.u32 %v819_v13, %v2754_v62  ;;  %v939_v13 = vpack.c.bf16 %v2759_v11, %v2759_v11 }
 0x305   : > { %v2961_v44 = vmul.f32 %v2408_v43, %v2400_v27  ;;  %v762_v54 = vpack.c.bf16 %v2958_v42, %v2958_v42 }
 0x306   : > { %833 = vmatpush.bf16.msrb.mxu3 %v824_v34  ;;  %v1162_v34 = vunpack.c.l.b16 %v939_v13 }
 0x307   : > { %v763_v53 = vpack.c.bf16 %v2961_v44, %v2961_v44 }
 0x309   : > { %2326 = vmatmul.msk.bf16.vlgmr.msrb.gmra.mxu3 %vm769_vm9, %v762_v54  ;;  %2327 = vmatmul.msk.bf16.vlgmr.msra.gmra.mxu0 %vm769_vm9, %v763_v53  ;;  %v1259_v53 = vpack.c.bf16 %v2806_v21, %v2806_v21 }
 0x30a   : > { %1022 = vmatpush.bf16.xpose.msra.mxu3 %v1013_v28  ;;  %v1163_v28 = vpack.c.b16 %v1162_v34, %v1162_v34 }
 0x30b   : > { %v1351_v54 = vunpack.c.l.b16 %v1259_v53 }
 0x30f   : > { %2329 = vmatmul.msk.bf16.vlgmr.msra.gmra.mxu2 %vm619_vm7, %v974_v47 }
 0x319   : > { %2330 = vmatmul.msk.bf16.vlgmr.msra.gmra.mxu3 %vm619_vm7, %v1003_v16  ;;  %2331 = vmatmul.msk.bf16.vlgmr.msrb.gmra.mxu0 %vm619_vm7, %v1032_v39  ;;  %v1258_v39 = vpack.c.bf16 %v2801_v20, %v2801_v20  ;;  %v938_v20 = vpack.c.bf16 %v2743_v46, %v2743_v46  ;;  %v937_v46 = vpack.c.bf16 %v2735_v41, %v2735_v41 }
 0x33c   : > { %v742_v27 = vpop.xlane.xlu2 %741 }
 0x33d   : > { %2409 = vrcp.f32 %v742_v27  ;;  %v1352_v27 = vpack.c.b16 %v1351_v54, %v1351_v54 }
 0x343   : > { %v2410_v57 = vpop.eup %2409 }
 0x344   : > { %v2973_v58 = vmul.f32 %v2410_v57, %v2402_v0  ;;  %v945_v61 = vpop.permute.xlu2 %944  ;;  %v1322_v57 = vunpack.c.l.b16 %v1258_v39 }
 0x346   : > { %v760_v59 = vpack.c.bf16 %v2973_v58, %v2973_v58 }
 0x348   : > { %2324 = vmatmul.msk.bf16.vlgmr.msrb.gmra.mxu1 %vm769_vm9, %v760_v59  ;;  %v1323_v59 = vpack.c.b16 %v1322_v57, %v1322_v57 }
 0x358   : > { %2328 = vmatmul.msk.bf16.vlgmr.msra.gmra.mxu1 %vm619_vm7, %v945_v61 }
 0x382   : > { %v2979_v63 = vpop.f32.mrf.mxu2 }
 0x386   : > { %v2981_v47 = vpop.f32.mrf.mxu0 }
 0x38a   : > { %v813_v2 = vpop.f32.mrf.mxu2 }
 0x38c   : > { %v2983_v23 = vpop.f32.mrf.mxu3 }
 0x38e   : > { %v861_v14 = vpop.f32.mrf.mxu0 }
 0x392   : > { %v995_v3 = vpop.f32.mrf.mxu2 }
 0x393   : > { %v1058_v4 = vmul.f32 0.35355338, %v995_v3 }
 0x394   : > { %v837_v0 = vpop.f32.mrf.mxu3 }
 0x395   : > { %v1064_v6 = vsel %vm715_vm8, %v1058_v4, -inf  ;;  %v1138_v0 = vunpack.c.l.b16 %v938_v20 }
 0x396   : > { %1065 = vmax.xlane.f32.xlu0 %v1064_v6  ;;  %v1053_v16 = vpop.f32.mrf.mxu0 }
 0x397   : > { %v1139_v6 = vpack.c.b16 %v1138_v0, %v1138_v0  ;;  %v1233_v0 = vpack.c.bf16 %v2786_v7, %v2786_v7 }
 0x39a   : > { %v997_v33 = vpop.f32.mrf.mxu2 }
 0x39c   : > { %v1024_v30 = vpop.f32.mrf.mxu3 }
 0x39d   : > { %v2986_v56 = vmul.f32 0.35355338, %v1024_v30  ;;  %v1060_v30 = vmul.f32 0.35355338, %v1053_v16 }
 0x39e   : > { %v1055_v9 = vpop.f32.mrf.mxu0 }
 0x39f   : > { %v1067_v29 = vsel %vm715_vm8, %v2986_v56, -inf  ;;  %v1070_v9 = vsel %vm715_vm8, %v1060_v30, -inf }
 0x3a0   : > { %1068 = vmax.xlane.f32.xlu2 %v1067_v29 }
 0x3a4   : > { %v1026_v43 = vpop.f32.mrf.mxu3 }
 0x3aa   : > { %1164 = vrot.lane.b32.xlu0 %v1163_v28, %s2478_s26  ;;  %v1114_v28 = vunpack.c.l.b16 %v937_v46 }
 0x3ac   : > { %v1115_v53 = vpack.c.b16 %v1114_v28, %v1114_v28  ;;  %v1260_v28 = vpack.c.bf16 %v2811_v24, %v2811_v24 }
 0x3ae   : > { %v1380_v7 = vunpack.c.l.b16 %v1260_v28 }
 0x3b2   : > { %1353 = vrot.lane.b32.xlu0 %v1352_v27, %s2479_s27 }
 0x3b8   : > { %1324 = vrot.lane.b32.xlu2 %v1323_v59, %s2479_s27 }
 0x3c5   : > { %v2999_v11 = vpop.f32.mrf.mxu1 }
 0x3cd   : > { %v789_v61 = vpop.f32.mrf.mxu1 }
 0x3d5   : > { %v966_v2 = vpop.f32.mrf.mxu1 }
 0x3d6   : > { %v1057_v21 = vmul.f32 0.35355338, %v966_v2 }
 0x3d8   : > { %v1061_v14 = vsel %vm715_vm8, %v1057_v21, -inf }
 0x3d9   : > { %1062 = vmax.xlane.f32.xlu1 %v1061_v14 }
 0x3dd   : > { %v968_v3 = vpop.f32.mrf.mxu1 }
 0x3f2   : > { %1140 = vrot.lane.b32.xlu1 %v1139_v6, %s2478_s26  ;;  %v1346_v6 = vunpack.c.l.b16 %v1233_v0  ;;  %v1234_v0 = vpack.c.bf16 %v2791_v18, %v2791_v18 }
 0x409   : > { %v1066_v33 = vpop.xlane.xlu0 %1065 }
 0x40a   : > { %v1074_v16 = vsub.f32 %v1058_v4, %v1066_v33  ;;  %v1232_v33 = vpack.c.bf16 %v2781_v17, %v2781_v17  ;;  %v1381_v17 = vpack.c.b16 %v1380_v7, %v1380_v7 }
 0x40c   : > { %v1079_v57 = vmul.f32 1.442695, %v1074_v16 }
 0x413   : > { %v1069_v2 = vpop.xlane.xlu2 %1068 }
 0x41b   : > { %v1325_v3 = vpop.permute.xlu2 %1324 }
 0x41c   : > { %v1165_v29 = vpop.permute.xlu0 %1164  ;;  %1071 = vmax.xlane.f32.xlu1 %v1070_v9  ;;  %v1330_v20 = vsel %vm619_vm7, %v1325_v3, 0  ;;  %v1347_v9 = vpack.c.b16 %v1346_v6, %v1346_v6  ;;  %v1375_v6 = vunpack.c.l.b16 %v1234_v0 }
 0x41d   : > { %v1170_v13 = vand.u32 %v1165_v29, %v2754_v62  ;;  %v1257_v29 = vpack.c.bf16 %v2796_v19, %v2796_v19  ;;  %v1075_v19 = vsub.f32 %v2986_v56, %v1069_v2  ;;  %v940_v56 = vpack.c.bf16 %v2768_v15, %v2768_v15 }
 0x41f   : > { %1179 = vmatpush.bf16.msrb.mxu3 %v1170_v13  ;;  %v1317_v13 = vunpack.c.l.b16 %v1232_v33  ;;  %v1376_v33 = vpack.c.b16 %v1375_v6, %v1375_v6 }
 0x424   : > { %v1354_v43 = vpop.permute.xlu0 %1353 }
 0x425   : > { %v1359_v34 = vsel %vm619_vm7, %v1354_v43, 0  ;;  %v1293_v43 = vunpack.c.l.b16 %v1257_v29 }
 0x426   : > { %1368 = vmatpush.bf16.xpose.msra.mxu3 %v1359_v34  ;;  %v1318_v34 = vpack.c.b16 %v1317_v13, %v1317_v13 }
 0x427   : > { %v1294_v46 = vpack.c.b16 %v1293_v43, %v1293_v43 }
 0x435   : > { %1116 = vrot.lane.b32.xlu1 %v1115_v53, %s2478_s26 }
 0x44c   : > { %v1063_v54 = vpop.xlane.xlu1 %1062 }
 0x44d   : > { %v1073_v39 = vsub.f32 %v1057_v21, %v1063_v54 }
 0x44f   : > { %v1077_v27 = vmul.f32 1.442695, %v1073_v39  ;;  %v1081_v39 = vmul.f32 1.442695, %v1075_v19 }
 0x451   : > { %2411 = vpow2.f32 %v1077_v27 }
 0x452   : > { %2413 = vpow2.f32 %v1079_v57 }
 0x457   : > { %v3011_v59 = vpop.eup %2411 }
 0x458   : > { %v1085_v61 = vsel %vm715_vm8, %v3011_v59, 0.0  ;;  %v3015_v14 = vpop.eup %2413 }
 0x459   : > { %1086 = vadd.xlane.f32.xlu2 %v1085_v61  ;;  %v1088_v41 = vsel %vm715_vm8, %v3015_v14, 0.0 }
 0x45f   : > { %1089 = vadd.xlane.f32.xlu1 %v1088_v41 }
 0x464   : > { %v1141_v4 = vpop.permute.xlu1 %1140 }
 0x465   : > { %v1146_v21 = vand.u32 %v1141_v4, %v2754_v62  ;;  %v1231_v4 = vpack.c.bf16 %v2776_v5, %v2776_v5 }
 0x467   : > { %1155 = vmatpush.bf16.msrb.mxu2 %v1146_v21  ;;  %v1288_v21 = vunpack.c.l.b16 %v1231_v4 }
 0x46b   : > { %1339 = vmatpush.bf16.xpose.msra.mxu2 %v1330_v20  ;;  %v1289_v20 = vpack.c.b16 %v1288_v21, %v1288_v21 }
 0x471   : > { %1348 = vrot.lane.b32.xlu2 %v1347_v9, %s2480_s28 }
 0x478   : > { %1319 = vrot.lane.b32.xlu1 %v1318_v34, %s2480_s28 }
 0x479   : > { %1295 = vrot.lane.b32.xlu2 %v1294_v46, %s2479_s27 }
 0x481   : > { %1382 = vrot.lane.b32.xlu2 %v1381_v17, %s2479_s27 }
 0x48f   : > { %v1072_v53 = vpop.xlane.xlu1 %1071 }
 0x490   : > { %v1076_v54 = vsub.f32 %v1060_v30, %v1072_v53  ;;  %v1186_v30 = vunpack.c.l.b16 %v940_v56 }
 0x492   : > { %v1083_v16 = vmul.f32 1.442695, %v1076_v54  ;;  %v1187_v2 = vpack.c.b16 %v1186_v30, %v1186_v30 }
 0x494   : > { %2415 = vpow2.f32 %v1083_v16 }
 0x495   : > { %2417 = vpow2.f32 %v1081_v39 }
 0x49a   : > { %v2416_v27 = vpop.eup %2415 }
 0x49b   : > { %v1094_v57 = vsel %vm715_vm8, %v2416_v27, 0.0  ;;  %v2418_v24 = vpop.eup %2417 }
 0x49c   : > { %1095 = vadd.xlane.f32.xlu0 %v1094_v57  ;;  %v1091_v61 = vsel %vm715_vm8, %v2418_v24, 0.0 }
 0x4a2   : > { %1092 = vadd.xlane.f32.xlu1 %v1091_v61 }
 0x4a7   : > { %v1117_v41 = vpop.permute.xlu1 %1116 }
 0x4a8   : > { %v1122_v3 = vand.u32 %v1117_v41, %v2754_v62 }
 0x4aa   : > { %1131 = vmatpush.bf16.msrb.mxu1 %v1122_v3 }
 0x4bb   : > { %1188 = vrot.lane.b32.xlu1 %v1187_v2, %s2478_s26 }
 0x4c3   : > { %1290 = vrot.lane.b32.xlu1 %v1289_v20, %s2480_s28 }
 0x4cb   : > { %1377 = vrot.lane.b32.xlu1 %v1376_v33, %s2480_s28 }
 0x4cc   : > { %v1087_v9 = vpop.xlane.xlu2 %1086 }
 0x4cd   : > { %2419 = vrcp.f32 %v1087_v9  ;;  %v1284_v9 = vpack.c.bf16 %v2821_v26, %v2821_v26  ;;  %v1578_v26 = vpack.c.bf16 %v2865_v52, %v2865_v52 }
 0x4d2   : > { %v1090_v15 = vpop.xlane.xlu1 %1089 }
 0x4d3   : > { %v2420_v29 = vpop.eup %2419  ;;  %2421 = vrcp.f32 %v1090_v15  ;;  %v1484_v15 = vunpack.c.l.b16 %v1284_v9 }
 0x4d4   : > { %v3047_v5 = vmul.f32 %v2420_v29, %v3011_v59  ;;  %v1349_v13 = vpop.permute.xlu2 %1348 }
 0x4d5   : > { %v1485_v29 = vpack.c.b16 %v1484_v15, %v1484_v15 }
 0x4d6   : > { %v1109_v43 = vpack.c.bf16 %v3047_v5, %v3047_v5 }
 0x4d8   : > { %2332 = vmatmul.msk.bf16.vlgmr.msrb.gmra.mxu1 %vm769_vm9, %v1109_v43 }
 0x4d9   : > { %v2422_v18 = vpop.eup %2421 }
 0x4da   : > { %v3053_v34 = vmul.f32 %v2422_v18, %v3015_v14 }
 0x4dc   : > { %v1110_v46 = vpack.c.bf16 %v3053_v34, %v3053_v34  ;;  %v1296_v28 = vpop.permute.xlu2 %1295 }
 0x4dd   : > { %v1301_v7 = vsel %vm619_vm7, %v1296_v28, 0 }
 0x4de   : > { %2333 = vmatmul.msk.bf16.vlgmr.msrb.gmra.mxu2 %vm769_vm9, %v1110_v46  ;;  %1310 = vmatpush.bf16.xpose.msra.mxu1 %v1301_v7  ;;  %v1605_v46 = vpack.c.bf16 %v2909_v36, %v2909_v36 }
 0x4e0   : > { %v1697_v28 = vunpack.c.l.b16 %v1605_v46 }
 0x4e2   : > { %v1698_v7 = vpack.c.b16 %v1697_v28, %v1697_v28 }
 0x4e4   : > { %v1383_v39 = vpop.permute.xlu2 %1382 }
 0x4e5   : > { %v1388_v3 = vsel %vm619_vm7, %v1383_v39, 0 }
 0x4ea   : > { %v1320_v59 = vpop.permute.xlu1 %1319 }
 0x4ee   : > { %2337 = vmatmul.msk.bf16.vlgmr.msra.gmra.mxu2 %vm619_vm7, %v1320_v59  ;;  %v1663_v59 = vunpack.c.l.b16 %v1578_v26 }
 0x50f   : > { %v1096_v54 = vpop.xlane.xlu0 %1095 }
 0x515   : > { %v1093_v17 = vpop.xlane.xlu1 %1092 }
 0x516   : > { %2423 = vrcp.f32 %v1093_v17  ;;  %v1664_v17 = vpack.c.b16 %v1663_v59, %v1663_v59 }
 0x517   : > { %2425 = vrcp.f32 %v1096_v54  ;;  %v1606_v54 = vpack.c.bf16 %v2914_v60, %v2914_v60 }
 0x519   : > { %v1726_v39 = vunpack.c.l.b16 %v1606_v54 }
 0x51c   : > { %v2424_v53 = vpop.eup %2423 }
 0x51d   : > { %v3060_v19 = vmul.f32 %v2424_v53, %v2418_v24  ;;  %v2426_v16 = vpop.eup %2425 }
 0x51e   : > { %v3065_v57 = vmul.f32 %v2426_v16, %v2416_v27 }
 0x51f   : > { %v1111_v14 = vpack.c.bf16 %v3060_v19, %v3060_v19 }
 0x520   : > { %v1112_v24 = vpack.c.bf16 %v3065_v57, %v3065_v57 }
 0x521   : > { %2334 = vmatmul.msk.bf16.vlgmr.msrb.gmra.mxu3 %vm769_vm9, %v1111_v14 }
 0x52d   : > { %v1189_v61 = vpop.permute.xlu1 %1188 }
 0x52e   : > { %v1194_v41 = vand.u32 %v1189_v61, %v2754_v62 }
 0x530   : > { %1203 = vmatpush.bf16.msra.mxu0 %v1194_v41  ;;  %v1727_v41 = vpack.c.b16 %v1726_v39, %v1726_v39 }
 0x531   : > { %2338 = vmatmul.msk.bf16.vlgmr.msra.gmra.mxu3 %vm619_vm7, %v1349_v13  ;;  %v1604_v13 = vpack.c.bf16 %v2904_v12, %v2904_v12  ;;  %v1603_v12 = vpack.c.bf16 %v2898_v40, %v2898_v40 }
 0x533   : > { %2335 = vmatmul.msk.bf16.vlgmr.msra.gmra.mxu0 %vm769_vm9, %v1112_v24  ;;  %v1668_v43 = vunpack.c.l.b16 %v1604_v13  ;;  %v1639_v14 = vunpack.c.l.b16 %v1603_v12 }
 0x534   : > { %1397 = vmatpush.bf16.xpose.msrb.mxu0 %v1388_v3 }
 0x535   : > { %v1291_v56 = vpop.permute.xlu1 %1290  ;;  %v1669_v18 = vpack.c.b16 %v1668_v43, %v1668_v43  ;;  %v1640_v36 = vpack.c.b16 %v1639_v14, %v1639_v14 }
 0x536   : > { %2336 = vmatmul.msk.bf16.vlgmr.msra.gmra.mxu1 %vm619_vm7, %v1291_v56 }
 0x53d   : > { %v1378_v30 = vpop.permute.xlu1 %1377 }
 0x543   : > { %2339 = vmatmul.msk.bf16.vlgmr.msrb.gmra.mxu0 %vm619_vm7, %v1378_v30 }
 0x555   : > { %v3075_v27 = vpop.f32.mrf.mxu1 }
 0x55d   : > { %v1135_v2 = vpop.f32.mrf.mxu1 }
 0x561   : > { %v3077_v4 = vpop.f32.mrf.mxu2 }
 0x569   : > { %v1159_v21 = vpop.f32.mrf.mxu2 }
 0x571   : > { %v1341_v20 = vpop.f32.mrf.mxu2 }
 0x572   : > { %v1404_v0 = vmul.f32 0.35355338, %v1341_v20 }
 0x574   : > { %v1410_v6 = vsel %vm715_vm8, %v1404_v0, -inf }
 0x575   : > { %1411 = vmax.xlane.f32.xlu2 %v1410_v6 }
 0x579   : > { %v1343_v33 = vpop.f32.mrf.mxu2 }
 0x58d   : > { %1486 = vrot.lane.b32.xlu2 %v1485_v29, %s2481_s29 }
 0x595   : > { %1670 = vrot.lane.b32.xlu2 %v1669_v18, %s2482_s10 }
 0x59d   : > { %1699 = vrot.lane.b32.xlu2 %v1698_v7, %s2482_s10 }
 0x5a4   : > { %v3091_v53 = vpop.f32.mrf.mxu3 }
 0x5a5   : > { %1665 = vrot.lane.b32.xlu2 %v1664_v17, %s2483_s11 }
 0x5ac   : > { %v1183_v16 = vpop.f32.mrf.mxu3 }
 0x5ad   : > { %1641 = vrot.lane.b32.xlu2 %v1640_v36, %s2482_s10 }
 0x5b0   : > { %v3096_v52 = vpop.f32.mrf.mxu0 }
 0x5b3   : > { %v1312_v61 = vpop.f32.mrf.mxu1 }
 0x5b4   : > { %v1403_v3 = vmul.f32 0.35355338, %v1312_v61  ;;  %v1370_v24 = vpop.f32.mrf.mxu3 }
 0x5b5   : > { %v1405_v40 = vmul.f32 0.35355338, %v1370_v24  ;;  %1728 = vrot.lane.b32.xlu2 %v1727_v41, %s2482_s10  ;;  %v1285_v41 = vpack.c.bf16 %v2830_v32, %v2830_v32 }
 0x5b6   : > { %v1407_v56 = vsel %vm715_vm8, %v1403_v3, -inf }
 0x5b7   : > { %1408 = vmax.xlane.f32.xlu0 %v1407_v56  ;;  %v1413_v30 = vsel %vm715_vm8, %v1405_v40, -inf  ;;  %v1508_v24 = vunpack.c.l.b16 %v1285_v41 }
 0x5b8   : > { %1414 = vmax.xlane.f32.xlu1 %v1413_v30  ;;  %v1207_v2 = vpop.f32.mrf.mxu0 }
 0x5b9   : > { %v1286_v2 = vpack.c.bf16 %v2837_v45, %v2837_v45 }
 0x5bb   : > { %v1314_v21 = vpop.f32.mrf.mxu1 }
 0x5bc   : > { %v1372_v60 = vpop.f32.mrf.mxu3  ;;  %v1532_v21 = vunpack.c.l.b16 %v1286_v2 }
 0x5be   : > { %v1533_v60 = vpack.c.b16 %v1532_v21, %v1532_v21 }
 0x5c0   : > { %v1399_v20 = vpop.f32.mrf.mxu0 }
 0x5c1   : > { %v1406_v6 = vmul.f32 0.35355338, %v1399_v20  ;;  %v1579_v20 = vpack.c.bf16 %v2875_v8, %v2875_v8 }
 0x5c3   : > { %v1416_v33 = vsel %vm715_vm8, %v1406_v6, -inf  ;;  %v1692_v32 = vunpack.c.l.b16 %v1579_v20 }
 0x5c4   : > { %1417 = vmax.xlane.f32.xlu0 %v1416_v33 }
 0x5c5   : > { %v1693_v33 = vpack.c.b16 %v1692_v32, %v1692_v32 }
 0x5c8   : > { %v1401_v9 = vpop.f32.mrf.mxu0 }
 0x5e8   : > { %v1412_v15 = vpop.xlane.xlu2 %1411 }
 0x5e9   : > { %v1420_v29 = vsub.f32 %v1404_v0, %v1412_v15 }
 0x5eb   : > { %v1425_v13 = vmul.f32 1.442695, %v1420_v29 }
 0x5ed   : > { %2427 = vpow2.f32 %v1425_v13  ;;  %v1580_v13 = vpack.c.bf16 %v2888_v31, %v2888_v31 }
 0x5f0   : > { %v1487_v43 = vpop.permute.xlu2 %1486 }
 0x5f1   : > { %v1492_v18 = vand.u32 %v1487_v43, %v2754_v62 }
 0x5f3   : > { %v2428_v46 = vpop.eup %2427  ;;  %1501 = vmatpush.bf16.msrb.mxu2 %v1492_v18  ;;  %v1721_v18 = vunpack.c.l.b16 %v1580_v13 }
 0x5f4   : > { %v1434_v28 = vsel %vm715_vm8, %v2428_v46, 0.0 }
 0x5f5   : > { %1435 = vadd.xlane.f32.xlu0 %v1434_v28  ;;  %v1722_v28 = vpack.c.b16 %v1721_v18, %v1721_v18 }
 0x5f8   : > { %v1671_v7 = vpop.permute.xlu2 %1670 }
 0x5f9   : > { %v1676_v26 = vsel %vm619_vm7, %v1671_v7, 0 }
 0x5fa   : > { %1685 = vmatpush.bf16.xpose.msra.mxu2 %v1676_v26 }
 0x62a   : > { %v1409_v59 = vpop.xlane.xlu0 %1408 }
 0x62b   : > { %v1419_v17 = vsub.f32 %v1403_v3, %v1409_v59  ;;  %v1415_v12 = vpop.xlane.xlu1 %1414  ;;  %v1283_v3 = vpack.c.bf16 %v2816_v25, %v2816_v25  ;;  %v1577_v25 = vpack.c.bf16 %v2851_v1, %v2851_v1  ;;  %v1106_v1 = vadd.f32 %v3053_v34, %v2953_v37 }
 0x62c   : > { %v1421_v14 = vsub.f32 %v1405_v40, %v1415_v12  ;;  %v1509_v40 = vpack.c.b16 %v1508_v24, %v1508_v24  ;;  %v1700_v12 = vpop.permute.xlu2 %1699 }
 0x62d   : > { %v1423_v36 = vmul.f32 1.442695, %v1419_v17  ;;  %v1460_v56 = vunpack.c.l.b16 %v1283_v3  ;;  %v1634_v15 = vunpack.c.l.b16 %v1577_v25  ;;  %v1705_v2 = vsel %vm619_vm7, %v1700_v12, 0 }
 0x62e   : > { %v1427_v0 = vmul.f32 1.442695, %v1421_v14 }
 0x62f   : > { %2429 = vpow2.f32 %v1423_v36  ;;  %v1461_v30 = vpack.c.b16 %v1460_v56, %v1460_v56  ;;  %v1635_v45 = vpack.c.b16 %v1634_v15, %v1634_v15  ;;  %v1108_v15 = vadd.f32 %v3065_v57, %v2961_v44 }
 0x630   : > { %2431 = vpow2.f32 %v1427_v0  ;;  %v1631_v44 = vpack.c.bf16 %v2929_v55, %v2929_v55 }
 0x632   : > { %v1854_v57 = vunpack.c.l.b16 %v1631_v44 }
 0x634   : > { %v1666_v14 = vpop.permute.xlu2 %1665 }
 0x635   : > { %v2430_v54 = vpop.eup %2429 }
 0x636   : > { %v2432_v16 = vpop.eup %2431  ;;  %v1431_v39 = vsel %vm715_vm8, %v2430_v54, 0.0 }
 0x637   : > { %1432 = vadd.xlane.f32.xlu1 %v1431_v39  ;;  %v1437_v61 = vsel %vm715_vm8, %v2432_v16, 0.0  ;;  %v1418_v9 = vpop.xlane.xlu0 %1417 }
 0x638   : > { %1438 = vadd.xlane.f32.xlu0 %v1437_v61  ;;  %v1422_v29 = vsub.f32 %v1406_v6, %v1418_v9  ;;  %v1107_v61 = vadd.f32 %v3060_v19, %v2958_v42 }
 0x63a   : > { %v1429_v43 = vmul.f32 1.442695, %v1422_v29 }
 0x64c   : > { %1510 = vrot.lane.b32.xlu0 %v1509_v40, %s2481_s29 }
 0x650   : > { %1462 = vrot.lane.b32.xlu1 %v1461_v30, %s2481_s29  ;;  %v1642_v30 = vpop.permute.xlu2 %1641 }
 0x651   : > { %v1647_v42 = vsel %vm619_vm7, %v1642_v30, 0 }
 0x658   : > { %1534 = vrot.lane.b32.xlu1 %v1533_v60, %s2481_s29  ;;  %v1729_v19 = vpop.permute.xlu2 %1728 }
 0x659   : > { %v1734_v20 = vsel %vm619_vm7, %v1729_v19, 0 }
 0x660   : > { %1694 = vrot.lane.b32.xlu1 %v1693_v33, %s2483_s11 }
 0x668   : > { %1636 = vrot.lane.b32.xlu1 %v1635_v45, %s2483_s11  ;;  %v1436_v8 = vpop.xlane.xlu0 %1435 }
 0x669   : > { %2433 = vrcp.f32 %v1436_v8 }
 0x66a   : > { %2435 = vpow2.f32 %v1429_v43 }
 0x66f   : > { %v2434_v7 = vpop.eup %2433 }
 0x670   : > { %v1448_v26 = vmul.f32 %v2434_v7, %v2428_v46  ;;  %1723 = vrot.lane.b32.xlu1 %v1722_v28, %s2483_s11  ;;  %v2436_v6 = vpop.eup %2435  ;;  %v1105_v46 = vadd.f32 %v3047_v5, %v2973_v58 }
 0x671   : > { %v1440_v31 = vsel %vm715_vm8, %v2436_v6, 0.0 }
 0x672   : > { %v3126_v59 = vadd.f32 %v1448_v26, %v1106_v1  ;;  %v1456_v17 = vpack.c.bf16 %v1448_v26, %v1448_v26 }
 0x674   : > { %2341 = vmatmul.msk.bf16.vlgmr.msrb.gmra.mxu2 %vm769_vm9, %v1456_v17  ;;  %v1855_v17 = vpack.c.b16 %v1854_v57, %v1854_v57 }
 0x676   : > { %1441 = vadd.xlane.f32.xlu0 %v1440_v31 }
 0x684   : > { %2345 = vmatmul.msk.bf16.vlgmr.msra.gmra.mxu2 %vm619_vm7, %v1666_v14 }
 0x6aa   : > { %v1433_v36 = vpop.xlane.xlu1 %1432 }
 0x6ab   : > { %2437 = vrcp.f32 %v1433_v36  ;;  %v1439_v0 = vpop.xlane.xlu0 %1438 }
 0x6ac   : > { %2439 = vrcp.f32 %v1439_v0 }
 0x6b1   : > { %v2438_v37 = vpop.eup %2437 }
 0x6b2   : > { %v2440_v34 = vpop.eup %2439  ;;  %v1447_v39 = vmul.f32 %v2438_v37, %v2430_v54 }
 0x6b3   : > { %v1449_v41 = vmul.f32 %v2440_v34, %v2432_v16 }
 0x6b4   : > { %v3135_v24 = vadd.f32 %v1447_v39, %v1105_v46  ;;  %v1455_v5 = vpack.c.bf16 %v1447_v39, %v1447_v39 }
 0x6b5   : > { %v3137_v3 = vadd.f32 %v1449_v41, %v1107_v61  ;;  %v1457_v21 = vpack.c.bf16 %v1449_v41, %v1449_v41 }
 0x6be   : > { %v1511_v40 = vpop.permute.xlu0 %1510 }
 0x6bf   : > { %v1516_v56 = vand.u32 %v1511_v40, %v2754_v62 }
 0x6c1   : > { %1525 = vmatpush.bf16.msrb.mxu3 %v1516_v56 }
 0x6c2   : > { %v1463_v60 = vpop.permute.xlu1 %1462 }
 0x6c3   : > { %v1468_v58 = vand.u32 %v1463_v60, %v2754_v62 }
 0x6c4   : > { %2342 = vmatmul.msk.bf16.vlgmr.msrb.gmra.mxu3 %vm769_vm9, %v1457_v21 }
 0x6c5   : > { %1714 = vmatpush.bf16.xpose.msra.mxu3 %v1705_v2  ;;  %1477 = vmatpush.bf16.msrb.mxu1 %v1468_v58 }
 0x6c8   : > { %2340 = vmatmul.msk.bf16.vlgmr.msrb.gmra.mxu1 %vm769_vm9, %v1455_v5 }
 0x6c9   : > { %1656 = vmatpush.bf16.xpose.msra.mxu1 %v1647_v42 }
 0x6ca   : > { %v1535_v54 = vpop.permute.xlu1 %1534 }
 0x6cb   : > { %v1540_v16 = vand.u32 %v1535_v54, %v2754_v62 }
 0x6cd   : > { %1549 = vmatpush.bf16.msra.mxu0 %v1540_v16 }
 0x6d1   : > { %1743 = vmatpush.bf16.xpose.msrb.mxu0 %v1734_v20 }
 0x6d2   : > { %v1695_v32 = vpop.permute.xlu1 %1694 }
 0x6d4   : > { %2346 = vmatmul.msk.bf16.vlgmr.msra.gmra.mxu3 %vm619_vm7, %v1695_v32 }
 0x6da   : > { %v1637_v33 = vpop.permute.xlu1 %1636 }
 0x6db   : > { %2344 = vmatmul.msk.bf16.vlgmr.msra.gmra.mxu1 %vm619_vm7, %v1637_v33 }
 0x6e2   : > { %v1724_v18 = vpop.permute.xlu1 %1723 }
 0x6e9   : > { %v1442_v25 = vpop.xlane.xlu0 %1441 }
 0x6ea   : > { %2441 = vrcp.f32 %v1442_v25 }
 0x6f0   : > { %v2442_v9 = vpop.eup %2441 }
 0x6f1   : > { %v1450_v29 = vmul.f32 %v2442_v9, %v2436_v6  ;;  %v1624_v6 = vld [vmem:[#allocation1] sm:$0xff] }
 0x6f2   : > { %v1632_v31 = vpack.c.bf16 %v1624_v6, %v1624_v6 }
 0x6f3   : > { %v3151_v45 = vadd.f32 %v1450_v29, %v1108_v15  ;;  %v1458_v13 = vpack.c.bf16 %v1450_v29, %v1450_v29 }
 0x6f4   : > { %v1878_v12 = vunpack.c.l.b16 %v1632_v31 }
 0x6f5   : > { %2343 = vmatmul.msk.bf16.vlgmr.msra.gmra.mxu0 %vm769_vm9, %v1458_v13 }
 0x6f6   : > { %v1879_v14 = vpack.c.b16 %v1878_v12, %v1878_v12 }
 0x6f7   : > { %v1503_v43 = vpop.f32.mrf.mxu2 }
 0x6ff   : > { %v1505_v8 = vpop.f32.mrf.mxu2 }
 0x705   : > { %2347 = vmatmul.msk.bf16.vlgmr.msrb.gmra.mxu0 %vm619_vm7, %v1724_v18 }
 0x707   : > { %v1687_v28 = vpop.f32.mrf.mxu2 }
 0x708   : > { %v1750_v7 = vmul.f32 0.35355338, %v1687_v28 }
 0x70a   : > { %v1756_v1 = vsel %vm715_vm8, %v1750_v7, -inf }
 0x70b   : > { %1757 = vmax.xlane.f32.xlu2 %v1756_v1 }
 0x70f   : > { %v1689_v26 = vpop.f32.mrf.mxu2 }
 0x723   : > { %1856 = vrot.lane.b32.xlu2 %v1855_v17, %s2484_s12  ;;  %v1630_v17 = vpack.c.bf16 %v2924_v10, %v2924_v10 }
 0x725   : > { %v1830_v31 = vunpack.c.l.b16 %v1630_v17 }
 0x727   : > { %v1831_v12 = vpack.c.b16 %v1830_v31, %v1830_v31 }
 0x72b   : > { %1880 = vrot.lane.b32.xlu2 %v1879_v14, %s2484_s12 }
 0x733   : > { %1907 = vrot.lane.b32.xlu2 %v3077_v4, %s2485_s14  ;;  %v1629_v4 = vpack.c.bf16 %v2919_v38, %v2919_v38 }
 0x735   : > { %v1806_v56 = vunpack.c.l.b16 %v1629_v4 }
 0x737   : > { %v1807_v2 = vpack.c.b16 %v1806_v56, %v1806_v56 }
 0x745   : > { %v1479_v36 = vpop.f32.mrf.mxu1 }
 0x746   : > { %1921 = vrot.lane.b32.xlu2 %v1479_v36, %s2486_s15 }
 0x747   : > { %v1527_v55 = vpop.f32.mrf.mxu3 }
 0x74d   : > { %v1481_v0 = vpop.f32.mrf.mxu1 }
 0x74e   : > { %1925 = vrot.lane.b32.xlu2 %v1527_v55, %s2486_s15 }
 0x74f   : > { %v1529_v37 = vpop.f32.mrf.mxu3 }
 0x757   : > { %v1716_v34 = vpop.f32.mrf.mxu3 }
 0x758   : > { %v1658_v46 = vpop.f32.mrf.mxu1  ;;  %v1751_v54 = vmul.f32 0.35355338, %v1716_v34 }
 0x759   : > { %v1749_v39 = vmul.f32 0.35355338, %v1658_v46 }
 0x75a   : > { %v1759_v20 = vsel %vm715_vm8, %v1751_v54, -inf }
 0x75b   : > { %v1753_v61 = vsel %vm715_vm8, %v1749_v39, -inf }
 0x75c   : > { %1754 = vmax.xlane.f32.xlu1 %v1753_v61 }
 0x75f   : > { %v1718_v41 = vpop.f32.mrf.mxu3 }
 0x760   : > { %v1660_v40 = vpop.f32.mrf.mxu1  ;;  %v2180_v41 = vld [vmem:[%s3191_s20] sm:$0x7] }
 0x772   : > { %v3167_v30 = vpop.f32.mrf.mxu0 }
 0x775   : > { %1808 = vrot.lane.b32.xlu1 %v1807_v2, %s2484_s12 }
 0x77a   : > { %v1553_v21 = vpop.f32.mrf.mxu0 }
 0x77d   : > { %1905 = vrot.lane.b32.xlu1 %v3075_v27, %s2485_s14 }
 0x77e   : > { %v1758_v60 = vpop.xlane.xlu2 %1757 }
 0x77f   : > { %v1766_v25 = vsub.f32 %v1750_v7, %v1758_v60  ;;  %v2181_v60 = vld [vmem:[%s3191_s20 + $0x4] sm:$0x7] }
 0x781   : > { %v1771_v15 = vmul.f32 1.442695, %v1766_v25 }
 0x782   : > { %v1745_v58 = vpop.f32.mrf.mxu0 }
 0x783   : > { %v1752_v42 = vmul.f32 0.35355338, %v1745_v58 }
 0x785   : > { %1909 = vrot.lane.b32.xlu1 %v3091_v53, %s2485_s14  ;;  %v1762_v5 = vsel %vm715_vm8, %v1752_v42, -inf }
 0x786   : > { %v1857_v19 = vpop.permute.xlu2 %1856  ;;  %1763 = vmax.xlane.f32.xlu0 %v1762_v5 }
 0x787   : > { %v1862_v38 = vand.u32 %v1857_v19, %v2754_v62 }
 0x789   : > { %1871 = vmatpush.bf16.msrb.mxu3 %v1862_v38 }
 0x78a   : > { %v1747_v16 = vpop.f32.mrf.mxu0 }
 0x78d   : > { %1923 = vrot.lane.b32.xlu1 %v1503_v43, %s2486_s15 }
 0x78e   : > { %v1881_v27 = vpop.permute.xlu2 %1880  ;;  %1760 = vmax.xlane.f32.xlu0 %v1759_v20 }
 0x78f   : > { %v1886_v32 = vand.u32 %v1881_v27, %v2754_v62  ;;  %v2182_v27 = vld [vmem:[%s3191_s20 + $0x8] sm:$0x7] }
 0x791   : > { %1895 = vmatpush.bf16.msra.mxu0 %v1886_v32 }
 0x796   : > { %v1908_v31 = vpop.permute.xlu2 %1907 }
 0x7cf   : > { %v1755_v33 = vpop.xlane.xlu1 %1754 }
 0x7d0   : > { %v1765_v53 = vsub.f32 %v1749_v39, %v1755_v33 }
 0x7d2   : > { %v1769_v9 = vmul.f32 1.442695, %v1765_v53 }
 0x7d4   : > { %2443 = vpow2.f32 %v1769_v9 }
 0x7d5   : > { %2445 = vpow2.f32 %v1771_v15 }
 0x7da   : > { %v2444_v29 = vpop.eup %2443 }
 0x7db   : > { %v1777_v13 = vsel %vm715_vm8, %v2444_v29, 0.0  ;;  %v2446_v8 = vpop.eup %2445 }
 0x7dc   : > { %1778 = vadd.xlane.f32.xlu0 %v1777_v13  ;;  %v1780_v43 = vsel %vm715_vm8, %v2446_v8, 0.0 }
 0x7e4   : > { %1781 = vadd.xlane.f32.xlu0 %v1780_v43  ;;  %v2183_v43 = vld [vmem:[%s3191_s20 + $0xc] sm:$0x7] }
 0x7e7   : > { %v1809_v18 = vpop.permute.xlu1 %1808 }
 0x7e8   : > { %v1814_v28 = vand.u32 %v1809_v18, %v2754_v62 }
 0x7ea   : > { %1823 = vmatpush.bf16.msrb.mxu1 %v1814_v28 }
 0x7f9   : > { %v1764_v1 = vpop.xlane.xlu0 %1763 }
 0x7fa   : > { %v1768_v14 = vsub.f32 %v1752_v42, %v1764_v1 }
 0x7fc   : > { %v1775_v36 = vmul.f32 1.442695, %v1768_v14 }
 0x801   : > { %v1761_v26 = vpop.xlane.xlu0 %1760 }
 0x802   : > { %v1767_v44 = vsub.f32 %v1751_v54, %v1761_v26 }
 0x804   : > { %v1773_v7 = vmul.f32 1.442695, %v1767_v44 }
 0x806   : > { %2447 = vpow2.f32 %v1773_v7 }
 0x807   : > { %2449 = vpow2.f32 %v1775_v36 }
 0x80c   : > { %v2448_v57 = vpop.eup %2447 }
 0x80d   : > { %v1783_v6 = vsel %vm715_vm8, %v2448_v57, 0.0  ;;  %v2450_v55 = vpop.eup %2449 }
 0x80e   : > { %1784 = vadd.xlane.f32.xlu0 %v1783_v6  ;;  %v1786_v0 = vsel %vm715_vm8, %v2450_v55, 0.0  ;;  %v1906_v6 = vpop.permute.xlu1 %1905 }
 0x80f   : > { %v1949_v14 = vsel %vm619_vm7, %v2999_v11, %v1906_v6  ;;  %v2366_v11 = vld [vmem:[%s3298_s3 + $0x8] sm:$0xff] }
 0x810   : > { %2028 = vmatpush.bf16.msra.mxu1 %v2366_v11 }
 0x816   : > { %v1910_v17 = vpop.permute.xlu1 %1909 }
 0x822   : > { %1832 = vrot.lane.b32.xlu0 %v1831_v12, %s2484_s12  ;;  %v1924_v12 = vpop.permute.xlu1 %1923 }
 0x84c   : > { %1787 = vadd.xlane.f32.xlu0 %v1786_v0 }
 0x84f   : > { %v1779_v37 = vpop.xlane.xlu0 %1778 }
 0x850   : > { %2451 = vrcp.f32 %v1779_v37 }
 0x856   : > { %v2452_v34 = vpop.eup %2451 }
 0x857   : > { %v1793_v46 = vmul.f32 %v2452_v34, %v2444_v29  ;;  %v1782_v39 = vpop.xlane.xlu0 %1781 }
 0x858   : > { %2453 = vrcp.f32 %v1782_v39 }
 0x859   : > { %v1797_v10 = vadd.f32 %v1793_v46, %v3135_v24  ;;  %v1801_v61 = vpack.c.bf16 %v1793_v46, %v1793_v46 }
 0x85b   : > { %v2172_v40 = vmul.f32 0.25, %v1797_v10  ;;  %2348 = vmatmul.msk.bf16.vlgmr.msrb.gmra.mxu1 %vm769_vm9, %v1801_v61  ;;  %v1950_v10 = vsel %vm619_vm7, %v2979_v63, %v1908_v31 }
 0x85c   : > { %v1955_v61 = vsel %vm1953_vm10, %v1950_v10, %v1924_v12 }
 0x85d   : > { %v2176_v4 = vsel %vm769_vm9, %v2172_v40, 0.0 }
 0x85e   : > { %v2454_v56 = vpop.eup %2453  ;;  %v2184_v2 = vadd.f32 %v2180_v41, %v2176_v4 }
 0x85f   : > { %v1794_v21 = vmul.f32 %v2454_v56, %v2446_v8 }
 0x860   : > { %2188 = vst [vmem:[%s3199_s23] sm:$0x7] %v2184_v2  ;;  %v1951_v2 = vsel %vm619_vm7, %v2983_v23, %v1910_v17 }
 0x861   : > { %v1798_v24 = vadd.f32 %v1794_v21, %v3126_v59  ;;  %v1802_v9 = vpack.c.bf16 %v1794_v21, %v1794_v21 }
 0x863   : > { %v2173_v58 = vmul.f32 0.25, %v1798_v24 }
 0x865   : > { %v2177_v42 = vsel %vm769_vm9, %v2173_v58, 0.0 }
 0x866   : > { %v2185_v5 = vadd.f32 %v2181_v60, %v2177_v42 }
 0x868   : > { %2189 = vst [vmem:[%s3199_s23 + $0x4] sm:$0x7] %v2185_v5  ;;  %v2365_v5 = vld [vmem:[%s3298_s3] sm:$0xff] }
 0x869   : > { %2029 = vmatpush.bf16.msra.mxu1 %v2365_v5 }
 0x881   : > { %v1785_v19 = vpop.xlane.xlu0 %1784 }
 0x882   : > { %2455 = vrcp.f32 %v1785_v19 }
 0x888   : > { %v2456_v38 = vpop.eup %2455 }
 0x889   : > { %v1795_v54 = vmul.f32 %v2456_v38, %v2448_v57 }
 0x88b   : > { %v1799_v16 = vadd.f32 %v1795_v54, %v3137_v3  ;;  %v1803_v20 = vpack.c.bf16 %v1795_v54, %v1795_v54 }
 0x88d   : > { %v2174_v32 = vmul.f32 0.25, %v1799_v16  ;;  %2350 = vmatmul.msk.bf16.vlgmr.msrb.gmra.mxu3 %vm769_vm9, %v1803_v20 }
 0x88f   : > { %v2178_v59 = vsel %vm769_vm9, %v2174_v32, 0.0 }
 0x890   : > { %v2186_v33 = vadd.f32 %v2182_v27, %v2178_v59 }
 0x892   : > { %2190 = vst [vmem:[%s3199_s23 + $0x8] sm:$0x7] %v2186_v33 }
 0x894   : > { %v1833_v53 = vpop.permute.xlu0 %1832 }
 0x895   : > { %v1838_v25 = vand.u32 %v1833_v53, %v2754_v62  ;;  %v2392_v53 = vld [vmem:[%s3299_s4] ss:$0 sm:$0xff] }
 0x897   : > { %1847 = vmatpush.bf16.msrb.mxu2 %v1838_v25 }
 0x89a   : > { %2349 = vmatmul.msk.bf16.vlgmr.msrb.gmra.mxu2 %vm769_vm9, %v1802_v9 }
 0x8bf   : > { %v1788_v15 = vpop.xlane.xlu0 %1787 }
 0x8c0   : > { %2457 = vrcp.f32 %v1788_v15 }
 0x8c6   : > { %v2458_v3 = vpop.eup %2457 }
 0x8c7   : > { %v1796_v29 = vmul.f32 %v2458_v3, %v2450_v55 }
 0x8c9   : > { %v1800_v13 = vadd.f32 %v1796_v29, %v3151_v45  ;;  %v1804_v8 = vpack.c.bf16 %v1796_v29, %v1796_v29 }
 0x8cb   : > { %v2175_v18 = vmul.f32 0.25, %v1800_v13  ;;  %2351 = vmatmul.msk.bf16.vlgmr.msra.gmra.mxu0 %vm769_vm9, %v1804_v8  ;;  %v2488_v13 = vmov 32.0  }
 0x8cc   : > { %2459 = vrcp.f32 %v2488_v13  ;;  %v2166_v13 = vld [vmem:[%s3270_s19 + $0x4] sm:$0x3] }
 0x8cd   : > { %v2179_v28 = vsel %vm769_vm9, %v2175_v18, 0.0 }
 0x8ce   : > { %v2187_v1 = vadd.f32 %v2183_v43, %v2179_v28 }
 0x8d0   : > { %2191 = vst [vmem:[%s3199_s23 + $0xc] sm:$0x7] %v2187_v1 }
 0x8d2   : > { %v2460_v8 = vpop.eup %2459 }
 0x8d3   : > { %v2063_v43 = vmul.f32 32.0, %v2460_v8  ;;  %vm2067_vm13 = vweird.f32 %v2460_v8 }
 0x8d5   : > { %v2064_v18 = vsub.f32 1.0, %v2063_v43 }
 0x8d7   : > { %v2065_v28 = vmul.f32 %v2460_v8, %v2064_v18 }
 0x8d8   : > { %v1825_v62 = vpop.f32.mrf.mxu1 }
 0x8d9   : > { %1937 = vrot.lane.b32.xlu1 %v1825_v62, %s2487_s24  ;;  %v2066_v1 = vadd.f32 %v2460_v8, %v2065_v28 }
 0x8db   : > { %v2068_v62 = vsel %vm2067_vm13, %v2460_v8, %v2066_v1 }
 0x8e0   : > { %v1827_v26 = vpop.f32.mrf.mxu1 }
 0x8e1   : > { %1911 = vrot.lane.b32.xlu1 %v3096_v52, %s2485_s14  ;;  %v1922_v52 = vpop.permute.xlu2 %1921 }
 0x8e2   : > { %v1954_v55 = vsel %vm1953_vm10, %v1949_v14, %v1922_v52 }
 0x8e9   : > { %v1926_v39 = vpop.permute.xlu2 %1925 }
 0x8ea   : > { %v1956_v21 = vsel %vm1953_vm10, %v1951_v2, %v1926_v39  ;;  %v2393_v39 = vld [vmem:[%s3300_s5] ss:$0 sm:$0xff] }
 0x910   : > { %v1873_v44 = vpop.f32.mrf.mxu3 }
 0x911   : > { %1941 = vrot.lane.b32.xlu0 %v1873_v44, %s2487_s24 }
 0x918   : > { %v1875_v7 = vpop.f32.mrf.mxu3 }
 0x91d   : > { %v1849_v45 = vpop.f32.mrf.mxu2 }
 0x91e   : > { %1939 = vrot.lane.b32.xlu2 %v1849_v45, %s2487_s24 }
 0x925   : > { %v1851_v57 = vpop.f32.mrf.mxu2 }
 0x926   : > { %1927 = vrot.lane.b32.xlu2 %v3167_v30, %s2486_s15 }
 0x948   : > { %v1897_v36 = vpop.f32.mrf.mxu0 }
 0x949   : > { %1943 = vrot.lane.b32.xlu1 %v1897_v36, %s2487_s24 }
 0x94b   : > { %v1938_v0 = vpop.permute.xlu1 %1937 }
 0x94c   : > { %v1959_v37 = vsel %vm1958_vm11, %v1954_v55, %v1938_v0 }
 0x94d   : > { %v1967_v34 = vrot.slane %v1959_v37, 1  ;;  %v1968_v46 = vrot.slane %v1959_v37, 2  ;;  %1975 = vst [vmem:[#allocation1] ss:$9 sm:$0xff] %v1959_v37 }
 0x94f   : > { %1977 = vst [vmem:[#allocation1 + $0x1] ss:$9 sm:$0xff] %v1967_v34 }
 0x950   : > { %1979 = vst [vmem:[#allocation1 + $0x2] ss:$9 sm:$0xff] %v1968_v46  ;;  %v1899_v30 = vpop.f32.mrf.mxu0 }
 0x953   : > { %v1912_v19 = vpop.permute.xlu1 %1911 }
 0x954   : > { %v1952_v23 = vsel %vm619_vm7, %v2981_v47, %v1912_v19 }
 0x978   : > { %v1940_v41 = vpop.permute.xlu2 %1939 }
 0x979   : > { %v1960_v40 = vsel %vm1958_vm11, %v1955_v61, %v1940_v41 }
 0x97a   : > { %v1969_v4 = vrot.slane %v1960_v40, 1  ;;  %v1970_v56 = vrot.slane %v1960_v40, 2  ;;  %1981 = vst [vmem:[#allocation1 + $0x3] ss:$9 sm:$0xff] %v1960_v40  ;;  %v2394_v40 = vld [vmem:[%s3301_s6] ss:$0 sm:$0xff] }
 0x97c   : > { %1983 = vst [vmem:[#allocation1 + $0x4] ss:$9 sm:$0xff] %v1969_v4 }
 0x97d   : > { %1985 = vst [vmem:[#allocation1 + $0x5] ss:$9 sm:$0xff] %v1970_v56 }
 0x980   : > { %v1928_v38 = vpop.permute.xlu2 %1927 }
 0x981   : > { %v1957_v54 = vsel %vm1953_vm10, %v1952_v23, %v1928_v38  ;;  %v2160_v23 = vld [vmem:[%s3270_s19] sm:$0x3] }
 0x983   : > { %v1942_v24 = vpop.permute.xlu0 %1941 }
 0x984   : > { %v1961_v60 = vsel %vm1958_vm11, %v1956_v21, %v1942_v24 }
 0x985   : > { %v1971_v58 = vrot.slane %v1961_v60, 1  ;;  %1987 = vst [vmem:[#allocation1 + $0x6] ss:$9 sm:$0xff] %v1961_v60  ;;  %v1972_v63 = vrot.slane %v1961_v60, 2 }
 0x987   : > { %1989 = vst [vmem:[#allocation1 + $0x7] ss:$9 sm:$0xff] %v1971_v58 }
 0x98e   : > { %v1990_v42 = vld [vmem:[#allocation1] sm:$0xff] }
 0x98f   : > { %1991 = vst [vmem:[#allocation1] ss:$9 sm:$0xff] %v1972_v63 }
 0x9bb   : > { %v1944_v16 = vpop.permute.xlu1 %1943 }
 0x9bc   : > { %v1962_v20 = vsel %vm1958_vm11, %v1957_v54, %v1944_v16 }
 0x9bd   : > { %v1973_v27 = vrot.slane %v1962_v20, 1  ;;  %v1974_v32 = vrot.slane %v1962_v20, 2  ;;  %1992 = vst [vmem:[#allocation1 + $0x1] ss:$9 sm:$0xff] %v1962_v20 }
 0x9bf   : > { %1993 = vst [vmem:[#allocation1 + $0x2] ss:$9 sm:$0xff] %v1973_v27 }
 0x9c0   : > { %1994 = vst [vmem:[#allocation1 + $0x3] ss:$9 sm:$0xff] %v1974_v32 }
 0x9c1   : > { %2044 = vst [vmem:[#allocation1 + $0x20] ss:$4 sm:$0xff] %v2595_v50 }
 0x9c2   : > { %2046 = vst [vmem:[#allocation1 + $0x21] ss:$4 sm:$0xff] %v2597_v51 }
 0x9c7   : > { %v1995_v59 = vld [vmem:[#allocation1] sm:$0xff] }
 0x9c8   : > { %v1998_v33 = vpack.c.bf16 %v1995_v59, %v1990_v42  ;;  %2036 = vst [vmem:[#allocation1] ss:$4 sm:$0xff] %v2566_v22 }
 0x9c9   : > { %2038 = vst [vmem:[#allocation1 + $0x1] ss:$4 sm:$0xff] %v2591_v48  ;;  %v2048_v22 = vld [vmem:[#allocation1 + $0x20] sm:$0xf] }
 0x9ca   : > { %2360 = vmatmul.msk.bf16.vlgmr.msra.gmra.mxu1 %vm507_vm6, %v1998_v33  ;;  %2040 = vst [vmem:[#allocation1 + $0x2] ss:$4 sm:$0xff] %v2593_v49  ;;  %v2052_v29 = vunpack.c.l.bf16 %v2048_v22  ;;  %v2163_v22 = vld [vmem:[%s3270_s19 + $0x2] sm:$0x3] }
 0x9cb   : > { %2042 = vst [vmem:[#allocation1 + $0x3] ss:$4 sm:$0xff] %v2580_v35 }
 0x9d2   : > { %v2047_v47 = vld [vmem:[#allocation1] sm:$0xf] }
 0x9d3   : > { %v2051_v50 = vunpack.c.l.bf16 %v2047_v47 }
 0xa47   : > { %v2031_v25 = vpop.f32.mrf.mxu1 }
 0xa48   : > { %v2032_v51 = vadd.f32 %v2392_v53, %v2031_v25 }
 0xa4a   : > { %v2053_v9 = vadd.f32 %v2051_v50, %v2032_v51 }
 0xa4c   : > { %v2055_v15 = vsel %vm507_vm6, %v2053_v9, 0.0 }
 0xa4d   : > { %2056 = vadd.xlane.f32.xlu2 %v2055_v15 }
 0xa4f   : > { %v2033_v48 = vpop.f32.mrf.mxu1 }
 0xa50   : > { %v2034_v3 = vadd.f32 %v2392_v53, %v2033_v48 }
 0xa52   : > { %v2054_v49 = vadd.f32 %v2052_v29, %v2034_v3 }
 0xa54   : > { %v2059_v35 = vsel %vm2058_vm12, %v2054_v49, 0.0 }
 0xa55   : > { %2060 = vadd.xlane.f32.xlu1 %v2059_v35 }
 0xac0   : > { %v2057_v26 = vpop.xlane.xlu2 %2056 }
 0xac1   : > { %v2069_v44 = vmul.f32 %v2068_v62, %v2057_v26 }
 0xac3   : > { %v2071_v7 = vsub.f32 %v2053_v9, %v2069_v44 }
 0xac5   : > { %v2073_v45 = vmul.f32 %v2071_v7, %v2071_v7 }
 0xac7   : > { %v2075_v57 = vsel %vm507_vm6, %v2073_v45, 0.0 }
 0xac8   : > { %v2061_v6 = vpop.xlane.xlu1 %2060  ;;  %2076 = vadd.xlane.f32.xlu0 %v2075_v57 }
 0xac9   : > { %v2070_v17 = vmul.f32 %v2068_v62, %v2061_v6 }
 0xacb   : > { %v2072_v31 = vsub.f32 %v2054_v49, %v2070_v17 }
 0xacd   : > { %v2074_v12 = vmul.f32 %v2072_v31, %v2072_v31 }
 0xacf   : > { %v2078_v14 = vsel %vm2058_vm12, %v2074_v12, 0.0 }
 0xad0   : > { %2079 = vadd.xlane.f32.xlu2 %v2078_v14 }
 0xb3b   : > { %v2077_v36 = vpop.xlane.xlu0 %2076 }
 0xb3c   : > { %v2081_v52 = vmul.f32 %v2077_v36, %v2068_v62 }
 0xb3e   : > { %v2083_v55 = vadd.f32 1e-12, %v2081_v52 }
 0xb40   : > { %2461 = vrsqrt.f32 %v2083_v55  ;;  %vm2091_vm15 = vweird.f32 %v2083_v55 }
 0xb43   : > { %v2080_v10 = vpop.xlane.xlu2 %2079 }
 0xb44   : > { %v2082_v41 = vmul.f32 %v2080_v10, %v2068_v62  ;;  %v2169_v62 = vld [vmem:[%s3270_s19 + $0x6] sm:$0x3] }
 0xb46   : > { %v2462_v0 = vpop.eup %2461  ;;  %v2084_v56 = vadd.f32 1e-12, %v2082_v41 }
 0xb47   : > { %v2086_v37 = vmul.f32 %v2462_v0, %v2083_v55  ;;  %vm2092_vm14 = vweird.f32 %v2462_v0 }
 0xb48   : > { %vm2093_vm0 = vmor %vm2091_vm15, %vm2092_vm14  ;;  %2463 = vrsqrt.f32 %v2084_v56  ;;  %vm2101_vm5 = vweird.f32 %v2084_v56 }
 0xb49   : > { %v2087_v34 = vmul.f32 %v2462_v0, %v2086_v37 }
 0xb4b   : > { %v2088_v46 = vmul.f32 0.5, %v2087_v34 }
 0xb4d   : > { %v2089_v30 = vsub.f32 1.5, %v2088_v46 }
 0xb4e   : > { %v2464_v58 = vpop.eup %2463 }
 0xb4f   : > { %v2090_v11 = vmul.f32 %v2462_v0, %v2089_v30  ;;  %v2096_v63 = vmul.f32 %v2464_v58, %v2084_v56  ;;  %vm2102_vm4 = vweird.f32 %v2464_v58 }
 0xb50   : > { %vm2103_vm6 = vmor %vm2101_vm5, %vm2102_vm4 }
 0xb51   : > { %v2094_v61 = vsel %vm2093_vm0, %v2462_v0, %v2090_v11  ;;  %v2097_v42 = vmul.f32 %v2464_v58, %v2096_v63 }
 0xb52   : > { %v2105_v4 = vmul.f32 %v2094_v61, %v2071_v7 }
 0xb53   : > { %v2098_v5 = vmul.f32 0.5, %v2097_v42 }
 0xb54   : > { %v2111_v2 = vmul.f32 %v2393_v39, %v2105_v4 }
 0xb55   : > { %v2099_v20 = vsub.f32 1.5, %v2098_v5 }
 0xb56   : > { %v2117_v21 = vadd.f32 %v2394_v40, %v2111_v2 }
 0xb57   : > { %v2100_v59 = vmul.f32 %v2464_v58, %v2099_v20 }
 0xb58   : > { %v2121_v24 = vrot.slane %v2117_v21, 1  ;;  %v2122_v60 = vrot.slane %v2117_v21, 2  ;;  %2131 = vst [vmem:[#allocation1] ss:$9 sm:$0xff] %v2117_v21  ;;  %v2123_v19 = vrot.slane %v2117_v21, 3  ;;  %v2124_v54 = vrot.slane %v2117_v21, 4 }
 0xb59   : > { %v2125_v27 = vrot.slane %v2117_v21, 5  ;;  %v2104_v47 = vsel %vm2103_vm6, %v2464_v58, %v2100_v59  ;;  %v2126_v25 = vrot.slane %v2117_v21, 6  ;;  %v2127_v51 = vrot.slane %v2117_v21, 7 }
 0xb5a   : > { %2133 = vst [vmem:[#allocation1 + $0x1] ss:$9 sm:$0xff] %v2121_v24  ;;  %v2106_v53 = vmul.f32 %v2104_v47, %v2072_v31 }
 0xb5b   : > { %2135 = vst [vmem:[#allocation1 + $0x2] ss:$9 sm:$0xff] %v2122_v60 }
 0xb5c   : > { %v2112_v50 = vmul.f32 %v2393_v39, %v2106_v53 }
 0xb5e   : > { %v2118_v48 = vadd.f32 %v2394_v40, %v2112_v50 }
 0xb60   : > { %v2128_v29 = vrot.slane %v2118_v48, 1  ;;  %v2129_v49 = vrot.slane %v2118_v48, 2  ;;  %v2130_v8 = vrot.slane %v2118_v48, 3 }
 0xb62   : > { %v2136_v16 = vld [vmem:[#allocation1] sm:$0xff] }
 0xb63   : > { %2137 = vst [vmem:[#allocation1] ss:$9 sm:$0xff] %v2123_v19  ;;  %v2153_v32 = vpack.c.bf16 %v2136_v16, %v2136_v16 }
 0xb64   : > { %2138 = vst [vmem:[#allocation1 + $0x1] ss:$9 sm:$0xff] %v2124_v54 }
 0xb65   : > { %2139 = vst [vmem:[#allocation1 + $0x2] ss:$9 sm:$0xff] %v2125_v27  ;;  %v2161_v33 = vsel %vm3272_vm3, %v2153_v32, %v2160_v23 }
 0xb66   : > { %2162 = vst [vmem:[%s3270_s19] sm:$0x3] %v2161_v33 }
 0xb6c   : > { %v2140_v9 = vld [vmem:[#allocation1] sm:$0xff] }
 0xb6d   : > { %2141 = vst [vmem:[#allocation1] ss:$9 sm:$0xff] %v2126_v25  ;;  %v2154_v15 = vpack.c.bf16 %v2140_v9, %v2140_v9 }
 0xb6e   : > { %2142 = vst [vmem:[#allocation1 + $0x1] ss:$9 sm:$0xff] %v2127_v51 }
 0xb6f   : > { %v2164_v3 = vsel %vm3272_vm3, %v2154_v15, %v2163_v22  ;;  %2143 = vst [vmem:[#allocation1 + $0x2] ss:$9 sm:$0xff] %v2118_v48 }
 0xb70   : > { %2165 = vst [vmem:[%s3270_s19 + $0x2] sm:$0x3] %v2164_v3 }
 0xb76   : > { %v2144_v35 = vld [vmem:[#allocation1] sm:$0xff] }
 0xb77   : > { %2145 = vst [vmem:[#allocation1] ss:$9 sm:$0xff] %v2128_v29  ;;  %v2155_v43 = vpack.c.bf16 %v2144_v35, %v2144_v35 }
 0xb78   : > { %2146 = vst [vmem:[#allocation1 + $0x1] ss:$9 sm:$0xff] %v2129_v49 }
 0xb79   : > { %2147 = vst [vmem:[#allocation1 + $0x2] ss:$9 sm:$0xff] %v2130_v8  ;;  %v2167_v18 = vsel %vm3272_vm3, %v2155_v43, %v2166_v13 }
 0xb7a   : > { %2168 = vst [vmem:[%s3270_s19 + $0x4] sm:$0x3] %v2167_v18 }
 0xb80   : > { %v2148_v28 = vld [vmem:[#allocation1] sm:$0xff] }
 0xb81   : > { %v2156_v1 = vpack.c.bf16 %v2148_v28, %v2148_v28 }
 0xb83   : > { %v2170_v26 = vsel %vm3272_vm3, %v2156_v1, %v2169_v62 }
 0xb84   : > { %2171 = vst [vmem:[%s3270_s19 + $0x6] sm:$0x3] %v2170_v26 }
 0xb85 PF: > { %s20_s30 = sadd.s32 1, %s2471_s30  }
 0xb86   : > { %p17_p4 = scmp.ge.s32.totalorder %s20_s30, 4  }
 0xb88   :  { %19 = sbr.rel (!%p17_p4) target bundleno = 1 (0x1), region = 140 }

// kernel: spcpatchbert_forward.12
= control target key start
LH: loop header
LB: loop body
LE: loop exit
PB: predicated region body
PF: predicated region fallthrough
CT: control target
= control target key end

     0   :  { %s219_s1 = inlined_call_operand.vmem [shape: bf16[128,128], index: 1, kind: input, shape index: {}]   ;;  %s220_s2 = inlined_call_operand.vmem [shape: f32[1,128], index: 2, kind: input, shape index: {}]   ;;  %s221_s0 = inlined_call_operand.vmem [shape: bf16[8,128], index: 0, kind: input, shape index: {}]   ;;  %s222_s3 = inlined_call_operand.vmem [shape: f32[8,128], index: 3, kind: output, shape index: {}]  }
   0x1   :  { %v160_v0 = vld [vmem:[%s219_s1 + $0x38] sm:$0xff]  ;;  %v159_v1 = vld [vmem:[%s219_s1 + $0x30] sm:$0xff]  ;;  %v158_v2 = vld [vmem:[%s219_s1 + $0x28] sm:$0xff] }
   0x2   :  { %83 = vmatpush.bf16.msra.mxu0 %v160_v0  ;;  %v157_v3 = vld [vmem:[%s219_s1 + $0x20] sm:$0xff]  ;;  %v156_v4 = vld [vmem:[%s219_s1 + $0x18] sm:$0xff]  ;;  %v155_v5 = vld [vmem:[%s219_s1 + $0x10] sm:$0xff] }
   0x3   :  { %v154_v6 = vld [vmem:[%s219_s1 + $0x8] sm:$0xff]  ;;  %v153_v7 = vld [vmem:[%s219_s1] sm:$0xff] }
   0x4   :  { %v14_v8 = vld [vmem:[%s221_s0] sm:$0xf] }
   0x5   :  { %v161_v9 = vld [vmem:[%s220_s2] ss:$0 sm:$0xff] }
   0x6   :  { %84 = vmatpush.bf16.msra.mxu0 %v159_v1 }
   0xa   :  { %85 = vmatpush.bf16.msra.mxu0 %v158_v2 }
   0xe   :  { %86 = vmatpush.bf16.msra.mxu0 %v157_v3 }
  0x12   :  { %87 = vmatpush.bf16.msra.mxu0 %v156_v4 }
  0x16   :  { %88 = vmatpush.bf16.msra.mxu0 %v155_v5 }
  0x1a   :  { %89 = vmatpush.bf16.msra.mxu0 %v154_v6 }
  0x1e   :  { %90 = vmatpush.bf16.msra.mxu0 %v153_v7 }
  0x21   :  { %91 = vmatmul.bf16.vlgmr.msra.gmra.mxu0 %v14_v8 }
  0x9e   :  { %v92_v10 = vpop.f32.mrf.mxu0 }
  0x9f   :  { %v93_v11 = vadd.f32 %v161_v9, %v92_v10 }
  0xa1   :  { %v152_v12 = vmul.f32 -1.442695, %v93_v11 }
  0xa3   :  { %162 = vpow2.f32 %v152_v12 }
  0xa6   :  { %v94_v13 = vpop.f32.mrf.mxu0 }
  0xa9   :  { %v163_v14 = vpop.eup %162 }
  0xaa   :  { %v99_v15 = vadd.f32 1.0, %v163_v14 }
  0xac   :  { %164 = vrcp.f32 %v99_v15  ;;  %v111_v19 = vand.u32 2147483648, %v99_v15  ;;  %v109_v21 = vand.u32 2147483647, %v99_v15  ;;  %vm105_vm1 = vweird.f32 %v99_v15 }
  0xae   :  { %v112_v23 = vor.u32 1.1754944e-38, %v111_v19  ;;  %vm110_vm3 = vcmp.eq.f32.partialorder %v109_v21, 8.507059e+37 }
  0xb2   :  { %v165_v16 = vpop.eup %164 }
  0xb3   :  { %v101_v17 = vmul.f32 %v165_v16, %v99_v15  ;;  %vm106_vm0 = vweird.f32 %v165_v16 }
  0xb4   :  { %vm107_vm2 = vmor %vm105_vm1, %vm106_vm0 }
  0xb5   :  { %v102_v18 = vsub.f32 1.0, %v101_v17 }
  0xb7   :  { %v103_v20 = vmul.f32 %v165_v16, %v102_v18 }
  0xb9   :  { %v104_v22 = vadd.f32 %v165_v16, %v103_v20 }
  0xbb   :  { %v108_v24 = vsel %vm107_vm2, %v165_v16, %v104_v22 }
  0xbc   :  { %v113_v25 = vsel %vm110_vm3, %v112_v23, %v108_v24 }
  0xbd   :  { %115 = vst [vmem:[%s222_s3] sm:$0xff] %v113_v25 }

</bundles_post_ra>
